<compile_context>
chip_gen: v5e
topology: v5e:2x2
jax: 0.10.0
libtpu: 0.0.40
codegen_flags: <defaults>
</compile_context>

<pallas_src>
import functools
import math

import jax
import jax.numpy as jnp
from jax.experimental import pallas as pl
from jax.experimental.pallas import tpu as pltpu


def _round_up(x: int, m: int) -> int:
    return (x + m - 1) // m * m


def _edgewise_energy_sum_kernel(
    ec_ref,       # [TE//128, 128] int32  edge-center atom ids, lane-dense
    eng_ref,      # [F_pad, TE]    edge energies (native dtype), edges on lanes
    out_ref,      # [F_pad, TN]    f32 per-atom accumulator, atoms on lanes
    ec_col_ref,   # [TE, 1]        int32 VMEM scratch (edge ids as a sublane column)
    *,
    factor,       # python float or None (baked at trace time)
    tn_sub,       # python int: lane width of the one-hot / matmul sub-blocks
):
    C = ec_ref.shape[0]
    TE = C * 128
    TN = out_ref.shape[1]

    e_step = pl.program_id(1)

    @pl.when(e_step == 0)
    def _init():
        out_ref[...] = jnp.zeros_like(out_ref)

    # ---- lane -> sublane relayout of the edge-center ids ---------------------
    # For each 128-edge chunk: sublane-broadcast the [1,128] row, pick the diagonal
    # with an iota compare, lane-reduce to a [128,1] column.  Only standard VPU/XLU
    # ops (broadcast / compare / where / sum), no transposes.
    diag = (jax.lax.broadcasted_iota(jnp.int32, (128, 128), 0)
            == jax.lax.broadcasted_iota(jnp.int32, (128, 128), 1))
    for c in range(C):
        row = ec_ref[c:c + 1, :].astype(jnp.float32)            # [1, 128]
        bcast = jnp.broadcast_to(row, (128, 128))                # [128, 128]
        col = jnp.sum(jnp.where(diag, bcast, 0.0), axis=1, keepdims=True)
        ec_col_ref[c * 128:(c + 1) * 128, :] = col.astype(jnp.int32)

    # Shift the [TE,1] id column by this atom block's base (cheap), not the iota.
    ec_col = ec_col_ref[...] - pl.program_id(0) * TN             # [TE, 1] int32

    eng = eng_ref[...].astype(jnp.float32)                       # [F_pad, TE]
    lane_iota = jax.lax.broadcasted_iota(jnp.int32, (TE, tn_sub), 1)

    # ---- scatter-add as a one-hot MXU matmul over atom sub-blocks ------------
    for s in range(TN // tn_sub):
        hit = ((ec_col - s * tn_sub) == lane_iota).astype(jnp.float32)  # [TE, tn_sub]
        out_ref[:, s * tn_sub:(s + 1) * tn_sub] += jnp.dot(
            eng, hit, preferred_element_type=jnp.float32)

    if factor is not None:
        @pl.when(e_step == pl.num_programs(1) - 1)
        def _finalize():
            out_ref[...] = out_ref[...] * jnp.float32(factor)


def edgewise_energy_sum(edge_index, species, edge_eng, per_edge_scales,
                        *, avg_num_neighbors=None,
                        normalize_edge_energy_sum=True,
                        per_edge_species_scale=None,
                        edge_tile=2048, atom_tile=8192, atom_sub_tile=512):
    """Pallas TPU implementation of EdgewiseEnergySum.forward (returns atom_eng [N, F])."""
    E = edge_index.shape[1]
    N = species.shape[0]
    F = edge_eng.shape[1]

    factor = None
    if normalize_edge_energy_sum and avg_num_neighbors is not None:
        factor = 1.0 / math.sqrt(avg_num_neighbors)
    use_scale = bool(per_edge_species_scale)       # truthiness, as in the module

    if E == 0:  # degenerate: no edges -> all-zero per-atom energies
        return jnp.zeros((N, F), edge_eng.dtype)

    ec = edge_index[0].reshape(-1).astype(jnp.int32)             # [E]
    en = edge_index[1].reshape(-1).astype(jnp.int32)             # [E]
    sp = species.reshape(-1).astype(jnp.int32)                   # [N]

    eng = edge_eng.reshape(E, F)
    if use_scale:
        # One fused O(E) gather-multiply in the wrapper (hoisted out of the kernel).
        # NOTE: jnp.take-style indexing clamps out-of-range species indices, so an
        # edge with an invalid species is scaled by the clamped table entry.
        scale = per_edge_scales[jnp.take(sp, ec), jnp.take(sp, en)]      # [E]
        eng = eng * scale[:, None].astype(eng.dtype)

    # --- tiling / padding (all streams lane-dense) ---------------------------
    TE = min(_round_up(edge_tile, 1024), _round_up(E, 1024))     # edges per tile
    E_pad = _round_up(E, TE)
    TN = min(_round_up(atom_tile, 128), _round_up(N, 128))       # atoms per block (lanes)
    N_pad = _round_up(N, TN)
    tn_sub = min(_round_up(atom_sub_tile, 128), TN)              # one-hot lane width
    while TN % tn_sub:
        tn_sub -= 128
    F_pad = _round_up(F, 8)                                      # sublane-align features

    # Edge-center ids, fully dense in HBM; pad with -1 (never matches any atom).
    ec_pad = jnp.full((E_pad,), -1, jnp.int32).at[:E].set(ec)
    ec_2d = ec_pad.reshape(E_pad // 128, 128)
    # Energies lane-dense (edges on lanes), kept in their native dtype.
    eng_t = jnp.zeros((F_pad, E_pad), eng.dtype).at[:F, :E].set(eng.T)

    grid = (N_pad // TN, E_pad // TE)  # (atom blocks [parallel], edge tiles [reduction])

    kernel = functools.partial(_edgewise_energy_sum_kernel,
                               factor=factor, tn_sub=tn_sub)

    eng_bytes = int(eng_t.size) * eng_t.dtype.itemsize
    cost = pl.CostEstimate(
        flops=2 * E_pad * N_pad * F_pad + 4 * E_pad * N_pad,
        transcendentals=0,
        # edge streams are re-read once per atom block; output written once
        bytes_accessed=grid[0] * (int(ec_2d.size) * 4 + eng_bytes) + F_pad * N_pad * 4,
    )

    out = pl.pallas_call(
        kernel,
        out_shape=jax.ShapeDtypeStruct((F_pad, N_pad), jnp.float32),
        grid=grid,
        in_specs=[
            pl.BlockSpec((TE // 128, 128), lambda a, e: (e, 0)),  # edge-center ids
            pl.BlockSpec((F_pad, TE), lambda a, e: (0, e)),       # edge energies
        ],
        out_specs=pl.BlockSpec((F_pad, TN), lambda a, e: (0, a)),
        scratch_shapes=[pltpu.VMEM((TE, 1), jnp.int32)],
        compiler_params=pltpu.CompilerParams(
            dimension_semantics=("parallel", "arbitrary"),
            vmem_limit_bytes=48 * 1024 * 1024,   # headroom; still under v7x's 64 MiB
        ),
        cost_estimate=cost,
    )(ec_2d, eng_t)

    # [F_pad, N_pad] lane-dense slab -> [N, F] as the module returns.
    return out[:F, :N].T.astype(edge_eng.dtype)


def _reference(edge_index, species, edge_eng, per_edge_scales,
               *, avg_num_neighbors, per_edge_species_scale):
    """Pure-JAX reference reproducing the PyTorch forward."""
    ec, en = edge_index[0], edge_index[1]
    eng = edge_eng.astype(jnp.float32)
    if per_edge_species_scale:
        scale = per_edge_scales[species[ec], species[en]].reshape(-1, 1)
        eng = eng * scale
    atom = jnp.zeros((species.shape[0], edge_eng.shape[1]), jnp.float32)
    atom = atom.at[ec].add(eng)
    if avg_num_neighbors is not None:
        atom = atom * (1.0 / math.sqrt(avg_num_neighbors))
    return atom


if __name__ == "__main__":
    key = jax.random.PRNGKey(0)
    k_eng, k_ei, k_en, k_sp, k_tab = jax.random.split(key, 5)

    # ---- test 1: module-sized demo (matches the PyTorch spec usage) --------
    num_atoms = 8          # N
    num_edges = 32         # E
    num_types = 4          # T
    feat = 1               # F (per-edge scalar energy)
    avg_num_neighbors = 8.0
    per_edge_species_scale = 0.5

    edge_center = jax.random.randint(k_ei, (num_edges,), 0, num_atoms)
    edge_neighbor = jax.random.randint(k_en, (num_edges,), 0, num_atoms)
    edge_index = jnp.stack([edge_center, edge_neighbor], axis=0)        # [2, E]
    species = jax.random.randint(k_sp, (num_atoms,), 0, num_types)      # [N]
    edge_eng = jax.random.normal(k_eng, (num_edges, feat), jnp.float32)  # [E, F]

    per_edge_scales = (
        per_edge_species_scale * jnp.ones((num_types, num_types), jnp.float32)
        + 0.1 * jax.random.normal(k_tab, (num_types, num_types), jnp.float32)
    )

    out = edgewise_energy_sum(
        edge_index, species, edge_eng, per_edge_scales,
        avg_num_neighbors=avg_num_neighbors,
        normalize_edge_energy_sum=True,
        per_edge_species_scale=per_edge_species_scale,
    )
    out = jax.block_until_ready(out)

    ref = _reference(
        edge_index, species, edge_eng, per_edge_scales,
        avg_num_neighbors=avg_num_neighbors,
        per_edge_species_scale=per_edge_species_scale,
    )
    assert out.shape == (num_atoms, feat)
    assert jnp.allclose(out, ref, atol=1e-5, rtol=1e-5), (out, ref)

    # ---- test 2: multi-block grid (atom blocks, edge tiles, lane sub-blocks, F>1)
    k2 = jax.random.PRNGKey(1)
    k_eng2, k_ei2, k_en2, k_sp2, k_tab2 = jax.random.split(k2, 5)
    N2, E2, T2, F2 = 300, 3000, 3, 2
    ei2 = jnp.stack([jax.random.randint(k_ei2, (E2,), 0, N2),
                     jax.random.randint(k_en2, (E2,), 0, N2)], axis=0)
    sp2 = jax.random.randint(k_sp2, (N2,), 0, T2)
    eng2 = jax.random.normal(k_eng2, (E2, F2), jnp.float32)
    tab2 = 1.3 * jnp.ones((T2, T2), jnp.float32) + \
        0.05 * jax.random.normal(k_tab2, (T2, T2), jnp.float32)

    out2 = edgewise_energy_sum(
        ei2, sp2, eng2, tab2,
        avg_num_neighbors=None,
        normalize_edge_energy_sum=True,
        per_edge_species_scale=1.3,
        edge_tile=1024,      # -> 3 edge tiles
        atom_tile=256,       # -> 2 atom blocks (parallel axis)
        atom_sub_tile=128,   # -> 2 one-hot lane sub-blocks per atom block
    )
    out2 = jax.block_until_ready(out2)
    ref2 = _reference(ei2, sp2, eng2, tab2,
                      avg_num_neighbors=None, per_edge_species_scale=1.3)
    assert out2.shape == (N2, F2)
    assert jnp.allclose(out2, ref2, atol=1e-4, rtol=1e-4), (out2, ref2)

    print("KERNEL_OK")
</pallas_src>

<mosaic_0001>
module attributes {stable_mosaic.version = 11 : i64} {
  func.func @_edgewise_energy_sum_kernel(%arg0: i32, %arg1: i32, %arg2: memref<8x128xi32, #tpu.memory_space<vmem>>, %arg3: memref<8x1024xf32, #tpu.memory_space<vmem>>, %arg4: memref<8x128xf32, #tpu.memory_space<vmem>>, %arg5: memref<1024x1xi32, #tpu.memory_space<vmem>>) attributes {dimension_semantics = [#tpu.dimension_semantics<parallel>, #tpu.dimension_semantics<arbitrary>], iteration_bounds = array<i64: 1, 1>, scalar_prefetch = 0 : i64, scratch_operands = 1 : i64, tpu.core_type = #tpu.core_type<tc>, window_params = [{transform_indices = @transform_0, window_bounds = array<i64: 8, 128>}, {transform_indices = @transform_1, window_bounds = array<i64: 8, 1024>}, {transform_indices = @transform_2, window_bounds = array<i64: 8, 128>}]} {
    %c0_i32 = arith.constant 0 : i32
    %0 = arith.cmpi eq, %arg1, %c0_i32 : i32
    %1 = arith.extui %0 : i1 to i32
    %c0_i32_0 = arith.constant 0 : i32
    %2 = arith.cmpi ne, %1, %c0_i32_0 : i32
    scf.if %2 {
      %cst_45 = arith.constant 0.000000e+00 : f32
      %105 = vector.broadcast %cst_45 : f32 to vector<8x128xf32>
      %c0_46 = arith.constant 0 : index
      %c0_47 = arith.constant 0 : index
      %106 = vector.load %arg4[%c0_46, %c0_47] : memref<8x128xf32, #tpu.memory_space<vmem>>, vector<8x128xf32>
      tpu.vector_store %arg4[%c0_46, %c0_47], %105 {strides = array<i32>} : memref<8x128xf32, #tpu.memory_space<vmem>>, vector<8x128xf32>,
    } else {
    }
    %3 = tpu.iota {dimensions = array<i32: 0>} : vector<128x128xi32>
    %4 = tpu.iota {dimensions = array<i32: 1>} : vector<128x128xi32>
    %5 = arith.cmpi eq, %3, %4 : vector<128x128xi32>
    %c0 = arith.constant 0 : index
    %c0_1 = arith.constant 0 : index
    %6 = vector.load %arg2[%c0, %c0_1] : memref<8x128xi32, #tpu.memory_space<vmem>>, vector<1x128xi32>
    %7 = arith.sitofp %6 : vector<1x128xi32> to vector<1x128xf32>
    %8 = vector.shape_cast %7 : vector<1x128xf32> to vector<1x128xf32>
    %9 = vector.broadcast %8 : vector<1x128xf32> to vector<128x128xf32>
    %cst = arith.constant 0.000000e+00 : f32
    %10 = vector.broadcast %cst : f32 to vector<128x128xf32>
    %11 = arith.select %5, %9, %10 : vector<128x128xi1>, vector<128x128xf32>
    %cst_2 = arith.constant dense<0.000000e+00> : vector<128xf32>
    %12 = vector.multi_reduction <add>, %11, %cst_2 [1] : vector<128x128xf32> to vector<128xf32>
    %13 = vector.shape_cast %12 : vector<128xf32> to vector<128x1xf32>
    %14 = arith.fptosi %13 : vector<128x1xf32> to vector<128x1xi32>
    %c0_3 = arith.constant 0 : index
    %c0_4 = arith.constant 0 : index
    %15 = vector.load %arg5[%c0_3, %c0_4] : memref<1024x1xi32, #tpu.memory_space<vmem>>, vector<128x1xi32>
    tpu.vector_store %arg5[%c0_3, %c0_4], %14 {strides = array<i32>} : memref<1024x1xi32, #tpu.memory_space<vmem>>, vector<128x1xi32>,
    %c1 = arith.constant 1 : index
    %c0_5 = arith.constant 0 : index
    %16 = vector.load %arg2[%c1, %c0_5] : memref<8x128xi32, #tpu.memory_space<vmem>>, vector<1x128xi32>
    %17 = arith.sitofp %16 : vector<1x128xi32> to vector<1x128xf32>
    %18 = vector.shape_cast %17 : vector<1x128xf32> to vector<1x128xf32>
    %19 = vector.broadcast %18 : vector<1x128xf32> to vector<128x128xf32>
    %cst_6 = arith.constant 0.000000e+00 : f32
    %20 = vector.broadcast %cst_6 : f32 to vector<128x128xf32>
    %21 = arith.select %5, %19, %20 : vector<128x128xi1>, vector<128x128xf32>
    %cst_7 = arith.constant dense<0.000000e+00> : vector<128xf32>
    %22 = vector.multi_reduction <add>, %21, %cst_7 [1] : vector<128x128xf32> to vector<128xf32>
    %23 = vector.shape_cast %22 : vector<128xf32> to vector<128x1xf32>
    %24 = arith.fptosi %23 : vector<128x1xf32> to vector<128x1xi32>
    %c128 = arith.constant 128 : index
    %c0_8 = arith.constant 0 : index
    %25 = vector.load %arg5[%c128, %c0_8] : memref<1024x1xi32, #tpu.memory_space<vmem>>, vector<128x1xi32>
    tpu.vector_store %arg5[%c128, %c0_8], %24 {strides = array<i32>} : memref<1024x1xi32, #tpu.memory_space<vmem>>, vector<128x1xi32>,
    %c2 = arith.constant 2 : index
    %c0_9 = arith.constant 0 : index
    %26 = vector.load %arg2[%c2, %c0_9] : memref<8x128xi32, #tpu.memory_space<vmem>>, vector<1x128xi32>
    %27 = arith.sitofp %26 : vector<1x128xi32> to vector<1x128xf32>
    %28 = vector.shape_cast %27 : vector<1x128xf32> to vector<1x128xf32>
    %29 = vector.broadcast %28 : vector<1x128xf32> to vector<128x128xf32>
    %cst_10 = arith.constant 0.000000e+00 : f32
    %30 = vector.broadcast %cst_10 : f32 to vector<128x128xf32>
    %31 = arith.select %5, %29, %30 : vector<128x128xi1>, vector<128x128xf32>
    %cst_11 = arith.constant dense<0.000000e+00> : vector<128xf32>
    %32 = vector.multi_reduction <add>, %31, %cst_11 [1] : vector<128x128xf32> to vector<128xf32>
    %33 = vector.shape_cast %32 : vector<128xf32> to vector<128x1xf32>
    %34 = arith.fptosi %33 : vector<128x1xf32> to vector<128x1xi32>
    %c256 = arith.constant 256 : index
    %c0_12 = arith.constant 0 : index
    %35 = vector.load %arg5[%c256, %c0_12] : memref<1024x1xi32, #tpu.memory_space<vmem>>, vector<128x1xi32>
    tpu.vector_store %arg5[%c256, %c0_12], %34 {strides = array<i32>} : memref<1024x1xi32, #tpu.memory_space<vmem>>, vector<128x1xi32>,
    %c3 = arith.constant 3 : index
    %c0_13 = arith.constant 0 : index
    %36 = vector.load %arg2[%c3, %c0_13] : memref<8x128xi32, #tpu.memory_space<vmem>>, vector<1x128xi32>
    %37 = arith.sitofp %36 : vector<1x128xi32> to vector<1x128xf32>
    %38 = vector.shape_cast %37 : vector<1x128xf32> to vector<1x128xf32>
    %39 = vector.broadcast %38 : vector<1x128xf32> to vector<128x128xf32>
    %cst_14 = arith.constant 0.000000e+00 : f32
    %40 = vector.broadcast %cst_14 : f32 to vector<128x128xf32>
    %41 = arith.select %5, %39, %40 : vector<128x128xi1>, vector<128x128xf32>
    %cst_15 = arith.constant dense<0.000000e+00> : vector<128xf32>
    %42 = vector.multi_reduction <add>, %41, %cst_15 [1] : vector<128x128xf32> to vector<128xf32>
    %43 = vector.shape_cast %42 : vector<128xf32> to vector<128x1xf32>
    %44 = arith.fptosi %43 : vector<128x1xf32> to vector<128x1xi32>
    %c384 = arith.constant 384 : index
    %c0_16 = arith.constant 0 : index
    %45 = vector.load %arg5[%c384, %c0_16] : memref<1024x1xi32, #tpu.memory_space<vmem>>, vector<128x1xi32>
    tpu.vector_store %arg5[%c384, %c0_16], %44 {strides = array<i32>} : memref<1024x1xi32, #tpu.memory_space<vmem>>, vector<128x1xi32>,
    %c4 = arith.constant 4 : index
    %c0_17 = arith.constant 0 : index
    %46 = vector.load %arg2[%c4, %c0_17] : memref<8x128xi32, #tpu.memory_space<vmem>>, vector<1x128xi32>
    %47 = arith.sitofp %46 : vector<1x128xi32> to vector<1x128xf32>
    %48 = vector.shape_cast %47 : vector<1x128xf32> to vector<1x128xf32>
    %49 = vector.broadcast %48 : vector<1x128xf32> to vector<128x128xf32>
    %cst_18 = arith.constant 0.000000e+00 : f32
    %50 = vector.broadcast %cst_18 : f32 to vector<128x128xf32>
    %51 = arith.select %5, %49, %50 : vector<128x128xi1>, vector<128x128xf32>
    %cst_19 = arith.constant dense<0.000000e+00> : vector<128xf32>
    %52 = vector.multi_reduction <add>, %51, %cst_19 [1] : vector<128x128xf32> to vector<128xf32>
    %53 = vector.shape_cast %52 : vector<128xf32> to vector<128x1xf32>
    %54 = arith.fptosi %53 : vector<128x1xf32> to vector<128x1xi32>
    %c512 = arith.constant 512 : index
    %c0_20 = arith.constant 0 : index
    %55 = vector.load %arg5[%c512, %c0_20] : memref<1024x1xi32, #tpu.memory_space<vmem>>, vector<128x1xi32>
    tpu.vector_store %arg5[%c512, %c0_20], %54 {strides = array<i32>} : memref<1024x1xi32, #tpu.memory_space<vmem>>, vector<128x1xi32>,
    %c5 = arith.constant 5 : index
    %c0_21 = arith.constant 0 : index
    %56 = vector.load %arg2[%c5, %c0_21] : memref<8x128xi32, #tpu.memory_space<vmem>>, vector<1x128xi32>
    %57 = arith.sitofp %56 : vector<1x128xi32> to vector<1x128xf32>
    %58 = vector.shape_cast %57 : vector<1x128xf32> to vector<1x128xf32>
    %59 = vector.broadcast %58 : vector<1x128xf32> to vector<128x128xf32>
    %cst_22 = arith.constant 0.000000e+00 : f32
    %60 = vector.broadcast %cst_22 : f32 to vector<128x128xf32>
    %61 = arith.select %5, %59, %60 : vector<128x128xi1>, vector<128x128xf32>
    %cst_23 = arith.constant dense<0.000000e+00> : vector<128xf32>
    %62 = vector.multi_reduction <add>, %61, %cst_23 [1] : vector<128x128xf32> to vector<128xf32>
    %63 = vector.shape_cast %62 : vector<128xf32> to vector<128x1xf32>
    %64 = arith.fptosi %63 : vector<128x1xf32> to vector<128x1xi32>
    %c640 = arith.constant 640 : index
    %c0_24 = arith.constant 0 : index
    %65 = vector.load %arg5[%c640, %c0_24] : memref<1024x1xi32, #tpu.memory_space<vmem>>, vector<128x1xi32>
    tpu.vector_store %arg5[%c640, %c0_24], %64 {strides = array<i32>} : memref<1024x1xi32, #tpu.memory_space<vmem>>, vector<128x1xi32>,
    %c6 = arith.constant 6 : index
    %c0_25 = arith.constant 0 : index
    %66 = vector.load %arg2[%c6, %c0_25] : memref<8x128xi32, #tpu.memory_space<vmem>>, vector<1x128xi32>
    %67 = arith.sitofp %66 : vector<1x128xi32> to vector<1x128xf32>
    %68 = vector.shape_cast %67 : vector<1x128xf32> to vector<1x128xf32>
    %69 = vector.broadcast %68 : vector<1x128xf32> to vector<128x128xf32>
    %cst_26 = arith.constant 0.000000e+00 : f32
    %70 = vector.broadcast %cst_26 : f32 to vector<128x128xf32>
    %71 = arith.select %5, %69, %70 : vector<128x128xi1>, vector<128x128xf32>
    %cst_27 = arith.constant dense<0.000000e+00> : vector<128xf32>
    %72 = vector.multi_reduction <add>, %71, %cst_27 [1] : vector<128x128xf32> to vector<128xf32>
    %73 = vector.shape_cast %72 : vector<128xf32> to vector<128x1xf32>
    %74 = arith.fptosi %73 : vector<128x1xf32> to vector<128x1xi32>
    %c768 = arith.constant 768 : index
    %c0_28 = arith.constant 0 : index
    %75 = vector.load %arg5[%c768, %c0_28] : memref<1024x1xi32, #tpu.memory_space<vmem>>, vector<128x1xi32>
    tpu.vector_store %arg5[%c768, %c0_28], %74 {strides = array<i32>} : memref<1024x1xi32, #tpu.memory_space<vmem>>, vector<128x1xi32>,
    %c7 = arith.constant 7 : index
    %c0_29 = arith.constant 0 : index
    %76 = vector.load %arg2[%c7, %c0_29] : memref<8x128xi32, #tpu.memory_space<vmem>>, vector<1x128xi32>
    %77 = arith.sitofp %76 : vector<1x128xi32> to vector<1x128xf32>
    %78 = vector.shape_cast %77 : vector<1x128xf32> to vector<1x128xf32>
    %79 = vector.broadcast %78 : vector<1x128xf32> to vector<128x128xf32>
    %cst_30 = arith.constant 0.000000e+00 : f32
    %80 = vector.broadcast %cst_30 : f32 to vector<128x128xf32>
    %81 = arith.select %5, %79, %80 : vector<128x128xi1>, vector<128x128xf32>
    %cst_31 = arith.constant dense<0.000000e+00> : vector<128xf32>
    %82 = vector.multi_reduction <add>, %81, %cst_31 [1] : vector<128x128xf32> to vector<128xf32>
    %83 = vector.shape_cast %82 : vector<128xf32> to vector<128x1xf32>
    %84 = arith.fptosi %83 : vector<128x1xf32> to vector<128x1xi32>
    %c896 = arith.constant 896 : index
    %c0_32 = arith.constant 0 : index
    %85 = vector.load %arg5[%c896, %c0_32] : memref<1024x1xi32, #tpu.memory_space<vmem>>, vector<128x1xi32>
    tpu.vector_store %arg5[%c896, %c0_32], %84 {strides = array<i32>} : memref<1024x1xi32, #tpu.memory_space<vmem>>, vector<128x1xi32>,
    %c0_33 = arith.constant 0 : index
    %c0_34 = arith.constant 0 : index
    %86 = vector.load %arg5[%c0_33, %c0_34] : memref<1024x1xi32, #tpu.memory_space<vmem>>, vector<1024x1xi32>
    %c128_i32 = arith.constant 128 : i32
    %87 = arith.muli %arg0, %c128_i32 : i32
    %88 = vector.broadcast %87 : i32 to vector<1024x1xi32>
    %89 = arith.subi %86, %88 : vector<1024x1xi32>
    %c0_35 = arith.constant 0 : index
    %c0_36 = arith.constant 0 : index
    %90 = vector.load %arg3[%c0_35, %c0_36] : memref<8x1024xf32, #tpu.memory_space<vmem>>, vector<8x1024xf32>
    %91 = tpu.iota {dimensions = array<i32: 1>} : vector<1024x128xi32>
    %c0_i32_37 = arith.constant 0 : i32
    %92 = vector.broadcast %c0_i32_37 : i32 to vector<1024x1xi32>
    %93 = arith.subi %89, %92 : vector<1024x1xi32>
    %94 = vector.broadcast %93 : vector<1024x1xi32> to vector<1024x128xi32>
    %95 = arith.cmpi eq, %94, %91 : vector<1024x128xi32>
    %96 = arith.extui %95 : vector<1024x128xi1> to vector<1024x128xi32>
    %97 = arith.sitofp %96 : vector<1024x128xi32> to vector<1024x128xf32>
    %c0_38 = arith.constant 0 : index
    %c0_39 = arith.constant 0 : index
    %98 = vector.load %arg4[%c0_38, %c0_39] : memref<8x128xf32, #tpu.memory_space<vmem>>, vector<8x128xf32>
    %cst_40 = arith.constant dense<0.000000e+00> : vector<8x128xf32>
    %99 = tpu.matmul %90, %97, %cst_40 {dimension_numbers = #tpu.dot_dimension_numbers<[1], [0], [0], [1], [0, 0, 1, 1], [], []>} : vector<8x1024xf32>, vector<1024x128xf32>, vector<8x128xf32> -> vector<8x128xf32>
    %100 = arith.addf %98, %99 : vector<8x128xf32>
    %c0_41 = arith.constant 0 : index
    %c0_42 = arith.constant 0 : index
    %101 = vector.load %arg4[%c0_41, %c0_42] : memref<8x128xf32, #tpu.memory_space<vmem>>, vector<8x128xf32>
    tpu.vector_store %arg4[%c0_41, %c0_42], %100 {strides = array<i32>} : memref<8x128xf32, #tpu.memory_space<vmem>>, vector<8x128xf32>,
    %c0_i32_43 = arith.constant 0 : i32
    %102 = arith.cmpi eq, %arg1, %c0_i32_43 : i32
    %103 = arith.extui %102 : i1 to i32
    %c0_i32_44 = arith.constant 0 : i32
    %104 = arith.cmpi ne, %103, %c0_i32_44 : i32
    scf.if %104 {
      %c0_45 = arith.constant 0 : index
      %c0_46 = arith.constant 0 : index
      %105 = vector.load %arg4[%c0_45, %c0_46] : memref<8x128xf32, #tpu.memory_space<vmem>>, vector<8x128xf32>
      %cst_47 = arith.constant 0.353553385 : f32
      %106 = vector.broadcast %cst_47 : f32 to vector<8x128xf32>
      %107 = arith.mulf %105, %106 : vector<8x128xf32>
      %c0_48 = arith.constant 0 : index
      %c0_49 = arith.constant 0 : index
      %108 = vector.load %arg4[%c0_48, %c0_49] : memref<8x128xf32, #tpu.memory_space<vmem>>, vector<8x128xf32>
      tpu.vector_store %arg4[%c0_48, %c0_49], %107 {strides = array<i32>} : memref<8x128xf32, #tpu.memory_space<vmem>>, vector<8x128xf32>,
    } else {
    }
    return
  }
  func.func @transform_0(%arg0: i32, %arg1: i32) -> (i32, i32) {
    %c0_i32 = arith.constant 0 : i32
    %c0_i32_0 = arith.constant 0 : i32
    return %arg1, %c0_i32 : i32, i32
  }
  func.func @transform_1(%arg0: i32, %arg1: i32) -> (i32, i32) {
    %c0_i32 = arith.constant 0 : i32
    %c0_i32_0 = arith.constant 0 : i32
    return %c0_i32, %arg1 : i32, i32
  }
  func.func @transform_2(%arg0: i32, %arg1: i32) -> (i32, i32) {
    %c0_i32 = arith.constant 0 : i32
    %c0_i32_0 = arith.constant 0 : i32
    return %c0_i32, %arg0 : i32, i32
  }
}

</mosaic_0001>

<bundles_post_ra>
// kernel: tpu_custom_call.1
= control target key start
LH: loop header
LB: loop body
LE: loop exit
PB: predicated region body
PF: predicated region fallthrough
CT: control target
= control target key end

     0   :  { %7 = vsyncpa [#allocation4], 0  ;;  %s3994_s0 = inlined_call_operand.hbm [shape: s32[8,128], index: 0, kind: input, shape index: {}]   ;;  %s3995_s1 = inlined_call_operand.hbm [shape: f32[8,1024], index: 1, kind: input, shape index: {}]   ;;  %s3996_s2 = inlined_call_operand.hbm [shape: f32[8,128], index: 2, kind: output, shape index: {}]  }
   0x1   :  { %8 = vsyncpa [#allocation7], 0 }
   0x2   :  { %9 = vsyncpa [#allocation5], 0  ;;  %s15_s11 = sshll.u32 %s3994_s0, 4  ;;  %s2949_s12 = smov [#allocation3]   ;;  %s16_s11 = int_to_ptr.hbm [resolvable:$true] %s15_s11 }
   0x3   :  { %s17_s13 = sshll.u32 %s2949_s12, 4  ;;  %s26_s16 = sshll.u32 %s3995_s1, 4  ;;  %s18_s13 = int_to_ptr.vmem [resolvable:$true] %s17_s13  ;;  %s27_s16 = int_to_ptr.hbm [resolvable:$true] %s26_s16 }
   0x4   :  { %20 = dma.hbm_to_vmem [thread:$0]  %s16_s11, 128, %s18_s13, [#allocation4]  }
   0x5   :  { %s2950_s17 = smov [#allocation6]  }
   0x6   :  { %s28_s18 = sshll.u32 %s2950_s17, 4  ;;  %s29_s18 = int_to_ptr.vmem [resolvable:$true] %s28_s18 }
   0x7   :  { %31 = dma.hbm_to_vmem [thread:$0]  %s27_s16, 1024, %s29_s18, [#allocation7]  }
   0x8   :  { %2943 = dma.done.wait [#allocation4], 128  }
   0x9   :  { %2944 = vsyncadd [#allocation4], 4294967168 }
   0xa   :  { %2945 = dma.done.wait [#allocation7], 1024  }
   0xb   :  { %2946 = vsyncadd [#allocation7], 4294966272  ;;  %v45_v0 = vlaneseq  ;;  %v80_v5 = vld [vmem:[#allocation3] sm:$0x1]  ;;  %v4030_v7 = vmov 0  ;;  %v4032_v8 = vmov 0 }
   0xc   :  { %v81_v6 = vcvt.s32.f32 %v80_v5  ;;  %v4034_v9 = vmov 0  ;;  %v4036_v17 = vmov 0  ;;  %v4042_v26 = vmov 0  ;;  %v164_v46 = vld [vmem:[#allocation3 + $0x1] sm:$0x1]  ;;  %s2953_s0 = smov [#allocation8]  }
   0xd   :  { %v2975_v1 = vshrl.u32 %v45_v0, 7  ;;  %v2978_v3 = vand.u32 127, %v45_v0  ;;  %v4044_v27 = vmov 0  ;;  %v4046_v28 = vmov 0  ;;  %s1953_s1 = sshll.u32 %s2953_s0, 4  ;;  %s1955_s21 = sshll.u32 %s3996_s2, 4  ;;  %s1954_s1 = int_to_ptr.vmem [resolvable:$true] %s1953_s1  ;;  %s1956_s21 = int_to_ptr.hbm [resolvable:$true] %s1955_s21 }
   0xe   :  { %v2997_v10 = vperm.slane %v81_v6, 0  ;;  %v4048_v35 = vmov 0  ;;  %v4050_v36 = vmov 0  ;;  %v4052_v37 = vmov 0 }
   0xf   :  { %v50_v2 = vadd.s32 32, %v2975_v1  ;;  %v48_v4 = vadd.s32 16, %v2975_v1  ;;  %vm2993_vm2 = vcmp.eq.s32.totalorder %v2975_v1, %v2978_v3  ;;  %v51_v11 = vadd.s32 40, %v2975_v1 }
  0x10   :  { %v4035_v9 = vsel %vm2993_vm2, 4294967295, %v4034_v9  ;;  %v49_v12 = vadd.s32 24, %v2975_v1  ;;  %v83_v15 = vsel %vm2993_vm2, %v2997_v10, 0.0  ;;  %v47_v16 = vadd.s32 8, %v2975_v1 }
  0x11   :  { %vm2982_vm0 = vcmp.eq.s32.totalorder %v50_v2, %v2978_v3  ;;  %vm2987_vm1 = vcmp.eq.s32.totalorder %v48_v4, %v2978_v3  ;;  %99 = vadd.xlane.f32.xlu0 %v83_v15  ;;  %vm3012_vm3 = vcmp.eq.s32.totalorder %v51_v11, %v2978_v3  ;;  %v54_v23 = vadd.s32 64, %v2975_v1  ;;  %v247_v4 = vld [vmem:[#allocation3 + $0x2] sm:$0x1] }
  0x12   :  { %v4031_v7 = vsel %vm2982_vm0, 4294967295, %v4030_v7  ;;  %v4033_v8 = vsel %vm2987_vm1, 4294967295, %v4032_v8  ;;  %v87_v13 = vsel %vm2982_vm0, %v2997_v10, 0.0  ;;  %v85_v14 = vsel %vm2987_vm1, %v2997_v10, 0.0 }
  0x13   :  { %107 = vadd.xlane.f32.xlu2 %v87_v13  ;;  %103 = vadd.xlane.f32.xlu1 %v85_v14  ;;  %v4037_v17 = vsel %vm3012_vm3, 4294967295, %v4036_v17  ;;  %vm3017_vm4 = vcmp.eq.s32.totalorder %v49_v12, %v2978_v3  ;;  %vm3022_vm5 = vcmp.eq.s32.totalorder %v47_v16, %v2978_v3  ;;  %v88_v20 = vsel %vm3012_vm3, %v2997_v10, 0.0 }
  0x14   :  { %v86_v21 = vsel %vm3017_vm4, %v2997_v10, 0.0  ;;  %v84_v22 = vsel %vm3022_vm5, %v2997_v10, 0.0  ;;  %v53_v24 = vadd.s32 56, %v2975_v1  ;;  %v52_v25 = vadd.s32 48, %v2975_v1 }
  0x15   :  { %vm3039_vm6 = vcmp.eq.s32.totalorder %v54_v23, %v2978_v3  ;;  %v57_v32 = vadd.s32 88, %v2975_v1  ;;  %v56_v33 = vadd.s32 80, %v2975_v1  ;;  %v55_v34 = vadd.s32 72, %v2975_v1 }
  0x16   :  { %v4043_v26 = vsel %vm3039_vm6, 4294967295, %v4042_v26  ;;  %vm3044_vm7 = vcmp.eq.s32.totalorder %v53_v24, %v2978_v3  ;;  %vm3049_vm8 = vcmp.eq.s32.totalorder %v52_v25, %v2978_v3  ;;  %v91_v29 = vsel %vm3039_vm6, %v2997_v10, 0.0 }
  0x17   :  { %v4045_v27 = vsel %vm3044_vm7, 4294967295, %v4044_v27  ;;  %v4047_v28 = vsel %vm3049_vm8, 4294967295, %v4046_v28  ;;  %v90_v30 = vsel %vm3044_vm7, %v2997_v10, 0.0  ;;  %v89_v31 = vsel %vm3049_vm8, %v2997_v10, 0.0 }
  0x18   :  { %vm3066_vm9 = vcmp.eq.s32.totalorder %v57_v32, %v2978_v3  ;;  %vm3071_vm10 = vcmp.eq.s32.totalorder %v56_v33, %v2978_v3  ;;  %vm3076_vm11 = vcmp.eq.s32.totalorder %v55_v34, %v2978_v3  ;;  %v60_v41 = vadd.s32 112, %v2975_v1  ;;  %v330_v34 = vld [vmem:[#allocation3 + $0x3] sm:$0x1] }
  0x19   :  { %101 = vadd.xlane.f32.xlu0 %v84_v22  ;;  %v4049_v35 = vsel %vm3066_vm9, 4294967295, %v4048_v35  ;;  %v4051_v36 = vsel %vm3071_vm10, 4294967295, %v4050_v36  ;;  %v4053_v37 = vsel %vm3076_vm11, 4294967295, %v4052_v37  ;;  %v94_v38 = vsel %vm3066_vm9, %v2997_v10, 0.0 }
  0x1a   :  { %v93_v39 = vsel %vm3071_vm10, %v2997_v10, 0.0  ;;  %v92_v40 = vsel %vm3076_vm11, %v2997_v10, 0.0  ;;  %v59_v42 = vadd.s32 104, %v2975_v1  ;;  %v58_v43 = vadd.s32 96, %v2975_v1 }
  0x1b   :  { %109 = vadd.xlane.f32.xlu2 %v88_v20  ;;  %105 = vadd.xlane.f32.xlu1 %v86_v21  ;;  %vm3093_vm12 = vcmp.eq.s32.totalorder %v60_v41, %v2978_v3  ;;  %v4054_v44 = vmov 0  ;;  %v4056_v45 = vmov 0  ;;  %v4058_v47 = vmov 0 }
  0x1c   :  { %v4055_v44 = vsel %vm3093_vm12, 4294967295, %v4054_v44  ;;  %vm3098_vm13 = vcmp.eq.s32.totalorder %v59_v42, %v2978_v3  ;;  %vm3103_vm14 = vcmp.eq.s32.totalorder %v58_v43, %v2978_v3  ;;  %v97_v48 = vsel %vm3093_vm12, %v2997_v10, 0.0 }
  0x1d   :  { %v4057_v45 = vsel %vm3098_vm13, 4294967295, %v4056_v45  ;;  %v4059_v47 = vsel %vm3103_vm14, 4294967295, %v4058_v47  ;;  %v96_v49 = vsel %vm3098_vm13, %v2997_v10, 0.0  ;;  %v165_v50 = vcvt.s32.f32 %v164_v46 }
  0x1e   :  { %v95_v51 = vsel %vm3103_vm14, %v2997_v10, 0.0  ;;  %v61_v52 = vadd.s32 120, %v2975_v1  ;;  %v4060_v54 = vmov 0  ;;  %v331_v42 = vcvt.s32.f32 %v330_v34 }
  0x1f   :  { %v166_v53 = vperm.slane %v165_v50, 0 }
  0x20   :  { %vm3118_vm15 = vcmp.eq.s32.totalorder %v61_v52, %v2978_v3 }
  0x21   :  { %111 = vadd.xlane.f32.xlu0 %v89_v31  ;;  %v4061_v54 = vsel %vm3118_vm15, 4294967295, %v4060_v54  ;;  %v168_v55 = vsel %vm3022_vm5, %v166_v53, 0.0  ;;  %v167_v56 = vsel %vm2993_vm2, %v166_v53, 0.0  ;;  %v98_v57 = vsel %vm3118_vm15, %v2997_v10, 0.0 }
  0x22   :  { %v171_v58 = vsel %vm2982_vm0, %v166_v53, 0.0  ;;  %v170_v59 = vsel %vm3017_vm4, %v166_v53, 0.0  ;;  %v169_v60 = vsel %vm2987_vm1, %v166_v53, 0.0  ;;  %v174_v61 = vsel %vm3044_vm7, %v166_v53, 0.0 }
  0x23   :  { %115 = vadd.xlane.f32.xlu2 %v91_v29  ;;  %113 = vadd.xlane.f32.xlu1 %v90_v30  ;;  %v173_v62 = vsel %vm3049_vm8, %v166_v53, 0.0  ;;  %v172_v63 = vsel %vm3012_vm3, %v166_v53, 0.0  ;;  %v177_v0 = vsel %vm3071_vm10, %v166_v53, 0.0  ;;  %v176_v1 = vsel %vm3076_vm11, %v166_v53, 0.0 }
  0x24   :  { %v175_v2 = vsel %vm3039_vm6, %v166_v53, 0.0  ;;  %v180_v5 = vsel %vm3098_vm13, %v166_v53, 0.0  ;;  %v179_v6 = vsel %vm3103_vm14, %v166_v53, 0.0  ;;  %v248_v10 = vcvt.s32.f32 %v247_v4 }
  0x25   :  { %v178_v11 = vsel %vm3066_vm9, %v166_v53, 0.0  ;;  %v182_v14 = vsel %vm3118_vm15, %v166_v53, 0.0  ;;  %v181_v15 = vsel %vm3093_vm12, %v166_v53, 0.0 }
  0x26   :  { %v249_v12 = vperm.slane %v248_v10, 0 }
  0x28   :  { %v250_v13 = vsel %vm2993_vm2, %v249_v12, 0.0  ;;  %v253_v16 = vsel %vm3017_vm4, %v249_v12, 0.0  ;;  %v252_v20 = vsel %vm2987_vm1, %v249_v12, 0.0  ;;  %v251_v21 = vsel %vm3022_vm5, %v249_v12, 0.0 }
  0x29   :  { %117 = vadd.xlane.f32.xlu0 %v92_v40  ;;  %v256_v22 = vsel %vm3049_vm8, %v249_v12, 0.0  ;;  %v255_v23 = vsel %vm3012_vm3, %v249_v12, 0.0  ;;  %v254_v24 = vsel %vm2982_vm0, %v249_v12, 0.0  ;;  %v259_v25 = vsel %vm3076_vm11, %v249_v12, 0.0 }
  0x2a   :  { %v258_v29 = vsel %vm3039_vm6, %v249_v12, 0.0  ;;  %v257_v30 = vsel %vm3044_vm7, %v249_v12, 0.0  ;;  %v262_v31 = vsel %vm3103_vm14, %v249_v12, 0.0  ;;  %v261_v32 = vsel %vm3066_vm9, %v249_v12, 0.0 }
  0x2b   :  { %121 = vadd.xlane.f32.xlu2 %v94_v38  ;;  %119 = vadd.xlane.f32.xlu1 %v93_v39  ;;  %v260_v33 = vsel %vm3071_vm10, %v249_v12, 0.0  ;;  %v265_v40 = vsel %vm3118_vm15, %v249_v12, 0.0  ;;  %v264_v41 = vsel %vm3093_vm12, %v249_v12, 0.0  ;;  %v263_v53 = vsel %vm3098_vm13, %v249_v12, 0.0 }
  0x2c   :  { %vm4009_vm9 = vcmask 7168  }
  0x31   :  { %123 = vadd.xlane.f32.xlu0 %v95_v51 }
  0x33   :  { %127 = vadd.xlane.f32.xlu2 %v97_v48  ;;  %125 = vadd.xlane.f32.xlu1 %v96_v49 }
  0x39   :  { %129 = vadd.xlane.f32.xlu0 %v98_v57 }
  0x3b   :  { %185 = vadd.xlane.f32.xlu2 %v168_v55  ;;  %183 = vadd.xlane.f32.xlu1 %v167_v56 }
  0x41   :  { %187 = vadd.xlane.f32.xlu0 %v169_v60 }
  0x43   :  { %191 = vadd.xlane.f32.xlu2 %v171_v58  ;;  %189 = vadd.xlane.f32.xlu1 %v170_v59  ;;  %v3189_v58 = vperm.slane %v331_v42, 0 }
  0x49   :  { %193 = vadd.xlane.f32.xlu0 %v172_v63 }
  0x4b   :  { %197 = vadd.xlane.f32.xlu2 %v174_v61  ;;  %195 = vadd.xlane.f32.xlu1 %v173_v62 }
  0x51   :  { %199 = vadd.xlane.f32.xlu0 %v175_v2 }
  0x53   :  { %203 = vadd.xlane.f32.xlu2 %v177_v0  ;;  %201 = vadd.xlane.f32.xlu1 %v176_v1  ;;  %v335_v0 = vsel %vm2987_vm1, %v3189_v58, 0.0  ;;  %v334_v1 = vsel %vm3022_vm5, %v3189_v58, 0.0 }
  0x59   :  { %205 = vadd.xlane.f32.xlu0 %v178_v11 }
  0x5b   :  { %209 = vadd.xlane.f32.xlu2 %v180_v5  ;;  %207 = vadd.xlane.f32.xlu1 %v179_v6 }
  0x61   :  { %211 = vadd.xlane.f32.xlu0 %v181_v15 }
  0x63   :  { %266 = vadd.xlane.f32.xlu2 %v250_v13  ;;  %213 = vadd.xlane.f32.xlu1 %v182_v14  ;;  %v333_v13 = vsel %vm2993_vm2, %v3189_v58, 0.0 }
  0x69   :  { %268 = vadd.xlane.f32.xlu0 %v251_v21 }
  0x6b   :  { %272 = vadd.xlane.f32.xlu2 %v253_v16  ;;  %270 = vadd.xlane.f32.xlu1 %v252_v20 }
  0x71   :  { %274 = vadd.xlane.f32.xlu0 %v254_v24 }
  0x73   :  { %278 = vadd.xlane.f32.xlu2 %v256_v22  ;;  %276 = vadd.xlane.f32.xlu1 %v255_v23 }
  0x79   :  { %280 = vadd.xlane.f32.xlu0 %v257_v30 }
  0x7b   :  { %284 = vadd.xlane.f32.xlu2 %v259_v25  ;;  %282 = vadd.xlane.f32.xlu1 %v258_v29  ;;  %v338_v25 = vsel %vm3012_vm3, %v3189_v58, 0.0  ;;  %v337_v29 = vsel %vm2982_vm0, %v3189_v58, 0.0 }
  0x81   :  { %286 = vadd.xlane.f32.xlu0 %v260_v33 }
  0x83   :  { %290 = vadd.xlane.f32.xlu2 %v262_v31  ;;  %288 = vadd.xlane.f32.xlu1 %v261_v32 }
  0x84   :  { %v100_v48 = vpop.xlane.xlu0 %99 }
  0x85   :  { %vm2222_vm10 = vcmp.lt.s32.totalorder %v100_v48, 0  ;;  %v2223_v51 = vceil.f32 %v100_v48  ;;  %v2224_v55 = vfloor.f32 %v100_v48 }
  0x86   :  { %v108_v38 = vpop.xlane.xlu2 %107  ;;  %v104_v39 = vpop.xlane.xlu1 %103 }
  0x87   :  { %vm2242_vm14 = vcmp.lt.s32.totalorder %v108_v38, 0  ;;  %v2243_v43 = vceil.f32 %v108_v38  ;;  %v2244_v46 = vfloor.f32 %v108_v38  ;;  %vm2232_vm11 = vcmp.lt.s32.totalorder %v104_v39, 0 }
  0x88   :  { %v2233_v49 = vceil.f32 %v104_v39  ;;  %v2234_v50 = vfloor.f32 %v104_v39  ;;  %v2225_v60 = vsel %vm2222_vm10, %v2223_v51, %v2224_v55 }
  0x89   :  { %v2245_v52 = vsel %vm2242_vm14, %v2243_v43, %v2244_v46  ;;  %292 = vadd.xlane.f32.xlu0 %v263_v53  ;;  %v2226_v61 = vcvt.f32.s32 %v2225_v60  ;;  %v340_v53 = vsel %vm3044_vm7, %v3189_v58, 0.0 }
  0x8a   :  { %v2246_v56 = vcvt.f32.s32 %v2245_v52  ;;  %v2235_v57 = vsel %vm2232_vm11, %v2233_v49, %v2234_v50  ;;  %v341_v52 = vsel %vm3039_vm6, %v3189_v58, 0.0 }
  0x8b   :  { %v2236_v59 = vcvt.f32.s32 %v2235_v57  ;;  %296 = vadd.xlane.f32.xlu2 %v265_v40  ;;  %294 = vadd.xlane.f32.xlu1 %v264_v41  ;;  %148 = vst.msk [vmem:[#allocation2] sm:$0xff] %vm4009_vm9, %v2226_v61  ;;  %v336_v40 = vsel %vm3017_vm4, %v3189_v58, 0.0 }
  0x8c   :  { %152 = vst.msk [vmem:[#allocation2 + $0x20] sm:$0xff] %vm4009_vm9, %v2246_v56  ;;  %v102_v5 = vpop.xlane.xlu0 %101 }
  0x8d   :  { %150 = vst.msk [vmem:[#allocation2 + $0x10] sm:$0xff] %vm4009_vm9, %v2236_v59  ;;  %vm2227_vm14 = vcmp.lt.s32.totalorder %v102_v5, 0  ;;  %v2228_v11 = vceil.f32 %v102_v5  ;;  %v2229_v14 = vfloor.f32 %v102_v5 }
  0x8e   :  { %v110_v62 = vpop.xlane.xlu2 %109  ;;  %v106_v63 = vpop.xlane.xlu1 %105 }
  0x8f   :  { %vm2247_vm11 = vcmp.lt.s32.totalorder %v110_v62, 0  ;;  %v2248_v2 = vceil.f32 %v110_v62  ;;  %v2249_v4 = vfloor.f32 %v110_v62  ;;  %vm2237_vm10 = vcmp.lt.s32.totalorder %v106_v63, 0 }
  0x90   :  { %v2238_v6 = vceil.f32 %v106_v63  ;;  %v2239_v10 = vfloor.f32 %v106_v63  ;;  %v2230_v21 = vsel %vm2227_vm14, %v2228_v11, %v2229_v14  ;;  %v339_v63 = vsel %vm3049_vm8, %v3189_v58, 0.0 }
  0x91   :  { %v2250_v12 = vsel %vm2247_vm11, %v2248_v2, %v2249_v4  ;;  %349 = vadd.xlane.f32.xlu0 %v333_v13  ;;  %v2231_v22 = vcvt.f32.s32 %v2230_v21 }
  0x92   :  { %v2251_v15 = vcvt.f32.s32 %v2250_v12  ;;  %v2240_v16 = vsel %vm2237_vm10, %v2238_v6, %v2239_v10 }
  0x93   :  { %v2241_v20 = vcvt.f32.s32 %v2240_v16  ;;  %353 = vadd.xlane.f32.xlu2 %v335_v0  ;;  %351 = vadd.xlane.f32.xlu1 %v334_v1  ;;  %149 = vst.msk [vmem:[#allocation2 + $0x8] sm:$0xff] %vm4009_vm9, %v2231_v22 }
  0x94   :  { %153 = vst.msk [vmem:[#allocation2 + $0x28] sm:$0xff] %vm4009_vm9, %v2251_v15  ;;  %v112_v32 = vpop.xlane.xlu0 %111 }
  0x95   :  { %151 = vst.msk [vmem:[#allocation2 + $0x18] sm:$0xff] %vm4009_vm9, %v2241_v20  ;;  %vm2252_vm14 = vcmp.lt.s32.totalorder %v112_v32, 0  ;;  %v2253_v38 = vceil.f32 %v112_v32  ;;  %v2254_v41 = vfloor.f32 %v112_v32 }
  0x96   :  { %v116_v23 = vpop.xlane.xlu2 %115  ;;  %v114_v24 = vpop.xlane.xlu1 %113 }
  0x97   :  { %vm2262_vm11 = vcmp.lt.s32.totalorder %v116_v23, 0  ;;  %v2263_v30 = vceil.f32 %v116_v23  ;;  %v2264_v31 = vfloor.f32 %v116_v23  ;;  %vm2257_vm10 = vcmp.lt.s32.totalorder %v114_v24, 0 }
  0x98   :  { %v2258_v33 = vceil.f32 %v114_v24  ;;  %v2259_v34 = vfloor.f32 %v114_v24  ;;  %v2255_v48 = vsel %vm2252_vm14, %v2253_v38, %v2254_v41  ;;  %v346_v41 = vsel %vm3098_vm13, %v3189_v58, 0.0 }
  0x99   :  { %v2265_v39 = vsel %vm2262_vm11, %v2263_v30, %v2264_v31  ;;  %355 = vadd.xlane.f32.xlu0 %v336_v40  ;;  %v2256_v49 = vcvt.f32.s32 %v2255_v48  ;;  %v347_v40 = vsel %vm3093_vm12, %v3189_v58, 0.0 }
  0x9a   :  { %v2266_v42 = vcvt.f32.s32 %v2265_v39  ;;  %v2260_v43 = vsel %vm2257_vm10, %v2258_v33, %v2259_v34  ;;  %v413_v33 = vld [vmem:[#allocation3 + $0x4] sm:$0x1] }
  0x9b   :  { %v2261_v46 = vcvt.f32.s32 %v2260_v43  ;;  %359 = vadd.xlane.f32.xlu2 %v338_v25  ;;  %357 = vadd.xlane.f32.xlu1 %v337_v29  ;;  %154 = vst.msk [vmem:[#allocation2 + $0x30] sm:$0xff] %vm4009_vm9, %v2256_v49 }
  0x9c   :  { %156 = vst.msk [vmem:[#allocation2 + $0x40] sm:$0xff] %vm4009_vm9, %v2266_v42  ;;  %v118_v57 = vpop.xlane.xlu0 %117  ;;  %v414_v42 = vcvt.s32.f32 %v413_v33 }
  0x9d   :  { %155 = vst.msk [vmem:[#allocation2 + $0x38] sm:$0xff] %vm4009_vm9, %v2261_v46  ;;  %vm2267_vm14 = vcmp.lt.s32.totalorder %v118_v57, 0  ;;  %v2268_v61 = vceil.f32 %v118_v57  ;;  %v2269_v0 = vfloor.f32 %v118_v57 }
  0x9e   :  { %v122_v50 = vpop.xlane.xlu2 %121  ;;  %v120_v51 = vpop.xlane.xlu1 %119 }
  0x9f   :  { %vm2277_vm11 = vcmp.lt.s32.totalorder %v122_v50, 0  ;;  %v2278_v55 = vceil.f32 %v122_v50  ;;  %v2279_v56 = vfloor.f32 %v122_v50  ;;  %vm2272_vm10 = vcmp.lt.s32.totalorder %v120_v51, 0 }
  0xa0   :  { %v2273_v59 = vceil.f32 %v120_v51  ;;  %v2274_v60 = vfloor.f32 %v120_v51  ;;  %v2270_v5 = vsel %vm2267_vm14, %v2268_v61, %v2269_v0 }
  0xa1   :  { %v2280_v62 = vsel %vm2277_vm11, %v2278_v55, %v2279_v56  ;;  %361 = vadd.xlane.f32.xlu0 %v339_v63  ;;  %v2271_v6 = vcvt.f32.s32 %v2270_v5  ;;  %vm4062_vm11 = vnez %v4049_v35 }
  0xa2   :  { %v2281_v1 = vcvt.f32.s32 %v2280_v62  ;;  %v2275_v2 = vsel %vm2272_vm10, %v2273_v59, %v2274_v60  ;;  %v344_v12 = vsel %vm4062_vm11, %v3189_v58, 0.0  ;;  %vm4063_vm10 = vnez %v4051_v36 }
  0xa3   :  { %v2276_v4 = vcvt.f32.s32 %v2275_v2  ;;  %365 = vadd.xlane.f32.xlu2 %v341_v52  ;;  %363 = vadd.xlane.f32.xlu1 %v340_v53  ;;  %157 = vst.msk [vmem:[#allocation2 + $0x48] sm:$0xff] %vm4009_vm9, %v2271_v6  ;;  %v343_v13 = vsel %vm4063_vm10, %v3189_v58, 0.0  ;;  %vm4065_vm11 = vcmask 7168   ;;  %v3251_v59 = vperm.slane %v414_v42, 0 }
  0xa4   :  { %159 = vst.msk [vmem:[#allocation2 + $0x58] sm:$0xff] %vm4009_vm9, %v2281_v1  ;;  %v124_v16 = vpop.xlane.xlu0 %123  ;;  %vm4066_vm10 = vmmov %vm4065_vm11 }
  0xa5   :  { %158 = vst.msk [vmem:[#allocation2 + $0x50] sm:$0xff] %vm4009_vm9, %v2276_v4  ;;  %vm2282_vm3 = vcmp.lt.s32.totalorder %v124_v16, 0  ;;  %v2283_v22 = vceil.f32 %v124_v16  ;;  %vm4064_vm9 = vnez %v4053_v37  ;;  %v2284_v25 = vfloor.f32 %v124_v16 }
  0xa6   :  { %v128_v10 = vpop.xlane.xlu2 %127  ;;  %v126_v11 = vpop.xlane.xlu1 %125  ;;  %v342_v24 = vsel %vm4064_vm9, %v3189_v58, 0.0  ;;  %v417_v1 = vsel %vm3022_vm5, %v3251_v59, 0.0  ;;  %v416_v2 = vsel %vm2993_vm2, %v3251_v59, 0.0 }
  0xa7   :  { %vm2292_vm6 = vcmp.lt.s32.totalorder %v128_v10, 0  ;;  %v2293_v14 = vceil.f32 %v128_v10  ;;  %v2294_v15 = vfloor.f32 %v128_v10  ;;  %vm2287_vm14 = vcmp.lt.s32.totalorder %v126_v11, 0 }
  0xa8   :  { %v2288_v20 = vceil.f32 %v126_v11  ;;  %v2289_v21 = vfloor.f32 %v126_v11  ;;  %v2285_v32 = vsel %vm2282_vm3, %v2283_v22, %v2284_v25 }
  0xa9   :  { %v2295_v23 = vsel %vm2292_vm6, %v2293_v14, %v2294_v15  ;;  %367 = vadd.xlane.f32.xlu0 %v342_v24  ;;  %v2286_v34 = vcvt.f32.s32 %v2285_v32  ;;  %vm4067_vm6 = vmmov %vm4066_vm10  ;;  %v348_v14 = vsel %vm3118_vm15, %v3189_v58, 0.0 }
  0xaa   :  { %v2296_v29 = vcvt.f32.s32 %v2295_v23  ;;  %v2290_v30 = vsel %vm2287_vm14, %v2288_v20, %v2289_v21  ;;  %vm4068_vm14 = vnez %v4059_v47  ;;  %vm4069_vm12 = vmmov %vm4067_vm6 }
  0xab   :  { %v2291_v31 = vcvt.f32.s32 %v2290_v30  ;;  %371 = vadd.xlane.f32.xlu2 %v344_v12  ;;  %369 = vadd.xlane.f32.xlu1 %v343_v13  ;;  %160 = vst.msk [vmem:[#allocation2 + $0x60] sm:$0xff] %vm4067_vm6, %v2286_v34  ;;  %v345_v53 = vsel %vm4068_vm14, %v3189_v58, 0.0  ;;  %v420_v58 = vsel %vm2982_vm0, %v3251_v59, 0.0  ;;  %vm4078_vm0 = vnez %v4051_v36 }
  0xac   :  { %162 = vst.msk [vmem:[#allocation2 + $0x70] sm:$0xff] %vm4065_vm11, %v2296_v29  ;;  %v130_v48 = vpop.xlane.xlu0 %129  ;;  %v419_v29 = vsel %vm3017_vm4, %v3251_v59, 0.0 }
  0xad   :  { %161 = vst.msk [vmem:[#allocation2 + $0x68] sm:$0xff] %vm4066_vm10, %v2291_v31  ;;  %vm2297_vm10 = vcmp.lt.s32.totalorder %v130_v48, 0  ;;  %v2298_v51 = vceil.f32 %v130_v48  ;;  %v2299_v55 = vfloor.f32 %v130_v48 }
  0xae   :  { %v186_v38 = vpop.xlane.xlu2 %185  ;;  %v184_v39 = vpop.xlane.xlu1 %183 }
  0xaf   :  { %vm2307_vm3 = vcmp.lt.s32.totalorder %v186_v38, 0  ;;  %v2308_v43 = vceil.f32 %v186_v38  ;;  %v2309_v46 = vfloor.f32 %v186_v38  ;;  %vm2302_vm11 = vcmp.lt.s32.totalorder %v184_v39, 0 }
  0xb0   :  { %v2303_v49 = vceil.f32 %v184_v39  ;;  %v2304_v50 = vfloor.f32 %v184_v39  ;;  %v2300_v61 = vsel %vm2297_vm10, %v2298_v51, %v2299_v55 }
  0xb1   :  { %v2310_v52 = vsel %vm2307_vm3, %v2308_v43, %v2309_v46  ;;  %373 = vadd.xlane.f32.xlu0 %v345_v53  ;;  %v2301_v62 = vcvt.f32.s32 %v2300_v61  ;;  %vm4070_vm3 = vmmov %vm4067_vm6  ;;  %v422_v53 = vsel %vm3049_vm8, %v3251_v59, 0.0 }
  0xb2   :  { %v2311_v56 = vcvt.f32.s32 %v2310_v52  ;;  %v2305_v57 = vsel %vm2302_vm11, %v2303_v49, %v2304_v50  ;;  %v423_v52 = vsel %vm3044_vm7, %v3251_v59, 0.0 }
  0xb3   :  { %v2306_v60 = vcvt.f32.s32 %v2305_v57  ;;  %377 = vadd.xlane.f32.xlu2 %v347_v40  ;;  %375 = vadd.xlane.f32.xlu1 %v346_v41  ;;  %163 = vst.msk [vmem:[#allocation2 + $0x78] sm:$0xff] %vm4070_vm3, %v2301_v62  ;;  %v418_v40 = vsel %vm2987_vm1, %v3251_v59, 0.0 }
  0xb4   :  { %232 = vst.msk [vmem:[#allocation2 + $0x88] sm:$0xff] %vm4067_vm6, %v2311_v56  ;;  %v188_v6 = vpop.xlane.xlu0 %187  ;;  %vm4071_vm6 = vmmov %vm4070_vm3 }
  0xb5   :  { %231 = vst.msk [vmem:[#allocation2 + $0x80] sm:$0xff] %vm4069_vm12, %v2306_v60  ;;  %vm2312_vm12 = vcmp.lt.s32.totalorder %v188_v6, 0  ;;  %v2313_v12 = vceil.f32 %v188_v6  ;;  %v2314_v15 = vfloor.f32 %v188_v6 }
  0xb6   :  { %v192_v63 = vpop.xlane.xlu2 %191  ;;  %v190_v0 = vpop.xlane.xlu1 %189 }
  0xb7   :  { %vm2322_vm11 = vcmp.lt.s32.totalorder %v192_v63, 0  ;;  %v2323_v4 = vceil.f32 %v192_v63  ;;  %v2324_v5 = vfloor.f32 %v192_v63  ;;  %vm2317_vm10 = vcmp.lt.s32.totalorder %v190_v0, 0 }
  0xb8   :  { %v2318_v10 = vceil.f32 %v190_v0  ;;  %v2319_v11 = vfloor.f32 %v190_v0  ;;  %v2315_v22 = vsel %vm2312_vm12, %v2313_v12, %v2314_v15 }
  0xb9   :  { %v2325_v13 = vsel %vm2322_vm11, %v2323_v4, %v2324_v5  ;;  %379 = vadd.xlane.f32.xlu0 %v348_v14  ;;  %v2316_v23 = vcvt.f32.s32 %v2315_v22  ;;  %vm4072_vm11 = vmmov %vm4070_vm3  ;;  %v425_v14 = vsel %vm4064_vm9, %v3251_v59, 0.0 }
  0xba   :  { %v2326_v16 = vcvt.f32.s32 %v2325_v13  ;;  %v2320_v20 = vsel %vm2317_vm10, %v2318_v10, %v2319_v11  ;;  %v426_v13 = vsel %vm4078_vm0, %v3251_v59, 0.0 }
  0xbb   :  { %v2321_v21 = vcvt.f32.s32 %v2320_v20  ;;  %434 = vadd.xlane.f32.xlu2 %v417_v1  ;;  %432 = vadd.xlane.f32.xlu1 %v416_v2  ;;  %233 = vst.msk [vmem:[#allocation2 + $0x90] sm:$0xff] %vm4072_vm11, %v2316_v23  ;;  %vm4073_vm11 = vmmov %vm4070_vm3 }
  0xbc   :  { %235 = vst.msk [vmem:[#allocation2 + $0xa0] sm:$0xff] %vm4071_vm6, %v2326_v16  ;;  %v194_v32 = vpop.xlane.xlu0 %193 }
  0xbd   :  { %234 = vst.msk [vmem:[#allocation2 + $0x98] sm:$0xff] %vm4070_vm3, %v2321_v21  ;;  %vm2327_vm6 = vcmp.lt.s32.totalorder %v194_v32, 0  ;;  %v2328_v38 = vceil.f32 %v194_v32  ;;  %v2329_v41 = vfloor.f32 %v194_v32 }
  0xbe   :  { %v198_v24 = vpop.xlane.xlu2 %197  ;;  %v196_v25 = vpop.xlane.xlu1 %195 }
  0xbf   :  { %vm2337_vm10 = vcmp.lt.s32.totalorder %v198_v24, 0  ;;  %v2338_v30 = vceil.f32 %v198_v24  ;;  %v2339_v31 = vfloor.f32 %v198_v24  ;;  %vm2332_vm12 = vcmp.lt.s32.totalorder %v196_v25, 0 }
  0xc0   :  { %v2333_v33 = vceil.f32 %v196_v25  ;;  %v2334_v34 = vfloor.f32 %v196_v25  ;;  %v2330_v48 = vsel %vm2327_vm6, %v2328_v38, %v2329_v41  ;;  %v428_v41 = vsel %vm4068_vm14, %v3251_v59, 0.0 }
  0xc1   :  { %v2340_v39 = vsel %vm2337_vm10, %v2338_v30, %v2339_v31  ;;  %436 = vadd.xlane.f32.xlu0 %v418_v40  ;;  %v2331_v49 = vcvt.f32.s32 %v2330_v48  ;;  %vm4074_vm10 = vmmov %vm4070_vm3  ;;  %v429_v40 = vsel %vm3098_vm13, %v3251_v59, 0.0 }
  0xc2   :  { %v2341_v42 = vcvt.f32.s32 %v2340_v39  ;;  %v2335_v43 = vsel %vm2332_vm12, %v2333_v33, %v2334_v34  ;;  %vm4076_vm7 = vmmov %vm4074_vm10  ;;  %v496_v33 = vld [vmem:[#allocation3 + $0x5] sm:$0x1] }
  0xc3   :  { %v2336_v46 = vcvt.f32.s32 %v2335_v43  ;;  %440 = vadd.xlane.f32.xlu2 %v420_v58  ;;  %438 = vadd.xlane.f32.xlu1 %v419_v29  ;;  %236 = vst.msk [vmem:[#allocation2 + $0xa8] sm:$0xff] %vm4074_vm10, %v2331_v49 }
  0xc4   :  { %238 = vst.msk [vmem:[#allocation2 + $0xb8] sm:$0xff] %vm4070_vm3, %v2341_v42  ;;  %v200_v57 = vpop.xlane.xlu0 %199  ;;  %v497_v42 = vcvt.s32.f32 %v496_v33 }
  0xc5   :  { %237 = vst.msk [vmem:[#allocation2 + $0xb0] sm:$0xff] %vm4073_vm11, %v2336_v46  ;;  %vm2342_vm3 = vcmp.lt.s32.totalorder %v200_v57, 0  ;;  %v2343_v62 = vceil.f32 %v200_v57  ;;  %vm4075_vm11 = vnez %v4037_v17  ;;  %v2344_v1 = vfloor.f32 %v200_v57 }
  0xc6   :  { %v204_v50 = vpop.xlane.xlu2 %203  ;;  %v202_v51 = vpop.xlane.xlu1 %201  ;;  %v421_v0 = vsel %vm4075_vm11, %v3251_v59, 0.0 }
  0xc7   :  { %vm2352_vm12 = vcmp.lt.s32.totalorder %v204_v50, 0  ;;  %v2353_v55 = vceil.f32 %v204_v50  ;;  %v2354_v56 = vfloor.f32 %v204_v50  ;;  %vm2347_vm6 = vcmp.lt.s32.totalorder %v202_v51, 0 }
  0xc8   :  { %v2348_v60 = vceil.f32 %v202_v51  ;;  %v2349_v61 = vfloor.f32 %v202_v51  ;;  %v2345_v6 = vsel %vm2342_vm3, %v2343_v62, %v2344_v1 }
  0xc9   :  { %v2355_v63 = vsel %vm2352_vm12, %v2353_v55, %v2354_v56  ;;  %442 = vadd.xlane.f32.xlu0 %v421_v0  ;;  %v2346_v10 = vcvt.f32.s32 %v2345_v6  ;;  %vm4077_vm12 = vmmov %vm4076_vm7 }
  0xca   :  { %v2356_v2 = vcvt.f32.s32 %v2355_v63  ;;  %v2350_v4 = vsel %vm2347_vm6, %v2348_v60, %v2349_v61  ;;  %vm4080_vm0 = vmmov %vm4077_vm12  ;;  %v3313_v60 = vperm.slane %v497_v42, 0 }
  0xcb   :  { %v2351_v5 = vcvt.f32.s32 %v2350_v4  ;;  %446 = vadd.xlane.f32.xlu2 %v423_v52  ;;  %444 = vadd.xlane.f32.xlu1 %v422_v53  ;;  %239 = vst.msk [vmem:[#allocation2 + $0xc0] sm:$0xff] %vm4077_vm12, %v2346_v10  ;;  %v431_v4 = vsel %vm3118_vm15, %v3251_v59, 0.0 }
  0xcc   :  { %241 = vst.msk [vmem:[#allocation2 + $0xd0] sm:$0xff] %vm4074_vm10, %v2356_v2  ;;  %v206_v20 = vpop.xlane.xlu0 %205  ;;  %vm4079_vm10 = vnez %v4043_v26  ;;  %v499_v2 = vsel %vm2993_vm2, %v3313_v60, 0.0 }
  0xcd   :  { %240 = vst.msk [vmem:[#allocation2 + $0xc8] sm:$0xff] %vm4076_vm7, %v2351_v5  ;;  %vm2357_vm7 = vcmp.lt.s32.totalorder %v206_v20, 0  ;;  %v2358_v23 = vceil.f32 %v206_v20  ;;  %v424_v25 = vsel %vm4079_vm10, %v3251_v59, 0.0  ;;  %v2359_v58 = vfloor.f32 %v206_v20 }
  0xce   :  { %v210_v11 = vpop.xlane.xlu2 %209  ;;  %v208_v12 = vpop.xlane.xlu1 %207 }
  0xcf   :  { %vm2367_vm6 = vcmp.lt.s32.totalorder %v210_v11, 0  ;;  %v2368_v15 = vceil.f32 %v210_v11  ;;  %v2369_v16 = vfloor.f32 %v210_v11  ;;  %vm2362_vm3 = vcmp.lt.s32.totalorder %v208_v12, 0 }
  0xd0   :  { %v2363_v21 = vceil.f32 %v208_v12  ;;  %v2364_v22 = vfloor.f32 %v208_v12  ;;  %v2360_v32 = vsel %vm2357_vm7, %v2358_v23, %v2359_v58 }
  0xd1   :  { %v2370_v24 = vsel %vm2367_vm6, %v2368_v15, %v2369_v16  ;;  %448 = vadd.xlane.f32.xlu0 %v424_v25  ;;  %v2361_v34 = vcvt.f32.s32 %v2360_v32  ;;  %vm4081_vm6 = vmmov %vm4080_vm0 }
  0xd2   :  { %v2371_v29 = vcvt.f32.s32 %v2370_v24  ;;  %v2365_v30 = vsel %vm2362_vm3, %v2363_v21, %v2364_v22  ;;  %vm4083_vm13 = vmmov %vm4081_vm6 }
  0xd3   :  { %v2366_v31 = vcvt.f32.s32 %v2365_v30  ;;  %452 = vadd.xlane.f32.xlu2 %v426_v13  ;;  %450 = vadd.xlane.f32.xlu1 %v425_v14  ;;  %242 = vst.msk [vmem:[#allocation2 + $0xd8] sm:$0xff] %vm4081_vm6, %v2361_v34 }
  0xd4   :  { %244 = vst.msk [vmem:[#allocation2 + $0xe8] sm:$0xff] %vm4077_vm12, %v2371_v29  ;;  %v212_v48 = vpop.xlane.xlu0 %211  ;;  %vm4082_vm12 = vnez %v4049_v35  ;;  %v501_v29 = vsel %vm2987_vm1, %v3313_v60, 0.0 }
  0xd5   :  { %243 = vst.msk [vmem:[#allocation2 + $0xe0] sm:$0xff] %vm4080_vm0, %v2366_v31  ;;  %vm2372_vm0 = vcmp.lt.s32.totalorder %v212_v48, 0  ;;  %v2373_v51 = vceil.f32 %v212_v48  ;;  %v427_v53 = vsel %vm4082_vm12, %v3251_v59, 0.0  ;;  %v2374_v55 = vfloor.f32 %v212_v48 }
  0xd6   :  { %v267_v38 = vpop.xlane.xlu2 %266  ;;  %v214_v39 = vpop.xlane.xlu1 %213 }
  0xd7   :  { %vm2382_vm3 = vcmp.lt.s32.totalorder %v267_v38, 0  ;;  %v2383_v43 = vceil.f32 %v267_v38  ;;  %v2384_v46 = vfloor.f32 %v267_v38  ;;  %vm2377_vm7 = vcmp.lt.s32.totalorder %v214_v39, 0 }
  0xd8   :  { %v2378_v49 = vceil.f32 %v214_v39  ;;  %v2379_v50 = vfloor.f32 %v214_v39  ;;  %v2375_v62 = vsel %vm2372_vm0, %v2373_v51, %v2374_v55 }
  0xd9   :  { %v2385_v52 = vsel %vm2382_vm3, %v2383_v43, %v2384_v46  ;;  %454 = vadd.xlane.f32.xlu0 %v427_v53  ;;  %v2376_v63 = vcvt.f32.s32 %v2375_v62  ;;  %vm4084_vm3 = vmmov %vm4081_vm6  ;;  %v504_v53 = vsel %vm4075_vm11, %v3313_v60, 0.0 }
  0xda   :  { %v2386_v56 = vcvt.f32.s32 %v2385_v52  ;;  %v2380_v57 = vsel %vm2377_vm7, %v2378_v49, %v2379_v50  ;;  %vm4086_vm2 = vmmov %vm4084_vm3  ;;  %v505_v52 = vsel %vm3049_vm8, %v3313_v60, 0.0 }
  0xdb   :  { %v2381_v61 = vcvt.f32.s32 %v2380_v57  ;;  %458 = vadd.xlane.f32.xlu2 %v429_v40  ;;  %456 = vadd.xlane.f32.xlu1 %v428_v41  ;;  %245 = vst.msk [vmem:[#allocation2 + $0xf0] sm:$0xff] %vm4084_vm3, %v2376_v63  ;;  %v500_v40 = vsel %vm3022_vm5, %v3313_v60, 0.0 }
  0xdc   :  { %314 = vst.msk [vmem:[#allocation2 + $0x100] sm:$0xff] %vm4081_vm6, %v2386_v56  ;;  %v269_v10 = vpop.xlane.xlu0 %268  ;;  %vm4085_vm6 = vnez %v4055_v44 }
  0xdd   :  { %246 = vst.msk [vmem:[#allocation2 + $0xf8] sm:$0xff] %vm4083_vm13, %v2381_v61  ;;  %vm2387_vm13 = vcmp.lt.s32.totalorder %v269_v10, 0  ;;  %v2388_v13 = vceil.f32 %v269_v10  ;;  %v430_v15 = vsel %vm4085_vm6, %v3251_v59, 0.0  ;;  %v2389_v16 = vfloor.f32 %v269_v10 }
  0xde   :  { %v273_v0 = vpop.xlane.xlu2 %272  ;;  %v271_v1 = vpop.xlane.xlu1 %270  ;;  %v502_v59 = vsel %vm3017_vm4, %v3313_v60, 0.0 }
  0xdf   :  { %vm2397_vm7 = vcmp.lt.s32.totalorder %v273_v0, 0  ;;  %v2398_v5 = vceil.f32 %v273_v0  ;;  %v2399_v6 = vfloor.f32 %v273_v0  ;;  %vm2392_vm0 = vcmp.lt.s32.totalorder %v271_v1, 0 }
  0xe0   :  { %v2393_v11 = vceil.f32 %v271_v1  ;;  %v2394_v12 = vfloor.f32 %v271_v1  ;;  %v2390_v23 = vsel %vm2387_vm13, %v2388_v13, %v2389_v16 }
  0xe1   :  { %v2400_v14 = vsel %vm2397_vm7, %v2398_v5, %v2399_v6  ;;  %460 = vadd.xlane.f32.xlu0 %v430_v15  ;;  %v2391_v24 = vcvt.f32.s32 %v2390_v23  ;;  %vm4087_vm7 = vmmov %vm4086_vm2  ;;  %v507_v15 = vsel %vm4079_vm10, %v3313_v60, 0.0 }
  0xe2   :  { %v2401_v20 = vcvt.f32.s32 %v2400_v14  ;;  %v2395_v21 = vsel %vm2392_vm0, %v2393_v11, %v2394_v12  ;;  %v508_v14 = vsel %vm4064_vm9, %v3313_v60, 0.0 }
  0xe3   :  { %v2396_v22 = vcvt.f32.s32 %v2395_v21  ;;  %515 = vadd.xlane.f32.xlu2 %v499_v2  ;;  %462 = vadd.xlane.f32.xlu1 %v431_v4  ;;  %315 = vst.msk [vmem:[#allocation2 + $0x108] sm:$0xff] %vm4087_vm7, %v2391_v24  ;;  %vm4088_vm7 = vmmov %vm4084_vm3 }
  0xe4   :  { %317 = vst.msk [vmem:[#allocation2 + $0x118] sm:$0xff] %vm4084_vm3, %v2401_v20  ;;  %v275_v32 = vpop.xlane.xlu0 %274 }
  0xe5   :  { %316 = vst.msk [vmem:[#allocation2 + $0x110] sm:$0xff] %vm4086_vm2, %v2396_v22  ;;  %vm2402_vm2 = vcmp.lt.s32.totalorder %v275_v32, 0  ;;  %v2403_v38 = vceil.f32 %v275_v32  ;;  %v2404_v41 = vfloor.f32 %v275_v32 }
  0xe6   :  { %v279_v25 = vpop.xlane.xlu2 %278  ;;  %v277_v58 = vpop.xlane.xlu1 %276 }
  0xe7   :  { %vm2412_vm0 = vcmp.lt.s32.totalorder %v279_v25, 0  ;;  %v2413_v30 = vceil.f32 %v279_v25  ;;  %v2414_v31 = vfloor.f32 %v279_v25  ;;  %vm2407_vm13 = vcmp.lt.s32.totalorder %v277_v58, 0 }
  0xe8   :  { %v2408_v33 = vceil.f32 %v277_v58  ;;  %v2409_v34 = vfloor.f32 %v277_v58  ;;  %v2405_v48 = vsel %vm2402_vm2, %v2403_v38, %v2404_v41 }
  0xe9   :  { %v2415_v39 = vsel %vm2412_vm0, %v2413_v30, %v2414_v31  ;;  %517 = vadd.xlane.f32.xlu0 %v500_v40  ;;  %v2406_v49 = vcvt.f32.s32 %v2405_v48  ;;  %vm4089_vm0 = vmmov %vm4084_vm3  ;;  %v510_v40 = vsel %vm4082_vm12, %v3313_v60, 0.0 }
  0xea   :  { %v2416_v42 = vcvt.f32.s32 %v2415_v39  ;;  %v2410_v43 = vsel %vm2407_vm13, %v2408_v33, %v2409_v34  ;;  %vm4091_vm8 = vmmov %vm4089_vm0  ;;  %v511_v39 = vsel %vm4068_vm14, %v3313_v60, 0.0 }
  0xeb   :  { %v2411_v46 = vcvt.f32.s32 %v2410_v43  ;;  %521 = vadd.xlane.f32.xlu2 %v502_v59  ;;  %519 = vadd.xlane.f32.xlu1 %v501_v29  ;;  %318 = vst.msk [vmem:[#allocation2 + $0x120] sm:$0xff] %vm4089_vm0, %v2406_v49 }
  0xec   :  { %320 = vst.msk [vmem:[#allocation2 + $0x130] sm:$0xff] %vm4084_vm3, %v2416_v42  ;;  %v281_v57 = vpop.xlane.xlu0 %280 }
  0xed   :  { %319 = vst.msk [vmem:[#allocation2 + $0x128] sm:$0xff] %vm4088_vm7, %v2411_v46  ;;  %vm2417_vm3 = vcmp.lt.s32.totalorder %v281_v57, 0  ;;  %v2418_v63 = vceil.f32 %v281_v57  ;;  %vm4090_vm7 = vnez %v4031_v7  ;;  %v2419_v2 = vfloor.f32 %v281_v57 }
  0xee   :  { %v285_v50 = vpop.xlane.xlu2 %284  ;;  %v283_v51 = vpop.xlane.xlu1 %282  ;;  %v503_v1 = vsel %vm4090_vm7, %v3313_v60, 0.0 }
  0xef   :  { %vm2427_vm13 = vcmp.lt.s32.totalorder %v285_v50, 0  ;;  %v2428_v55 = vceil.f32 %v285_v50  ;;  %v2429_v56 = vfloor.f32 %v285_v50  ;;  %vm2422_vm2 = vcmp.lt.s32.totalorder %v283_v51, 0 }
  0xf0   :  { %v2423_v61 = vceil.f32 %v283_v51  ;;  %v2424_v62 = vfloor.f32 %v283_v51  ;;  %v2420_v10 = vsel %vm2417_vm3, %v2418_v63, %v2419_v2  ;;  %v513_v2 = vsel %vm4085_vm6, %v3313_v60, 0.0 }
  0xf1   :  { %v2430_v0 = vsel %vm2427_vm13, %v2428_v55, %v2429_v56  ;;  %523 = vadd.xlane.f32.xlu0 %v503_v1  ;;  %v2421_v11 = vcvt.f32.s32 %v2420_v10  ;;  %vm4092_vm13 = vmmov %vm4089_vm0  ;;  %v514_v1 = vsel %vm3118_vm15, %v3313_v60, 0.0 }
  0xf2   :  { %v2431_v4 = vcvt.f32.s32 %v2430_v0  ;;  %v2425_v5 = vsel %vm2422_vm2, %v2423_v61, %v2424_v62  ;;  %vm4094_vm9 = vmmov %vm4092_vm13  ;;  %v579_v61 = vld [vmem:[#allocation3 + $0x6] sm:$0x1] }
  0xf3   :  { %v2426_v6 = vcvt.f32.s32 %v2425_v5  ;;  %527 = vadd.xlane.f32.xlu2 %v505_v52  ;;  %525 = vadd.xlane.f32.xlu1 %v504_v53  ;;  %321 = vst.msk [vmem:[#allocation2 + $0x138] sm:$0xff] %vm4092_vm13, %v2421_v11 }
  0xf4   :  { %323 = vst.msk [vmem:[#allocation2 + $0x148] sm:$0xff] %vm4089_vm0, %v2431_v4  ;;  %v287_v21 = vpop.xlane.xlu0 %286  ;;  %vm4093_vm0 = vnez %v4045_v27  ;;  %v580_v4 = vcvt.s32.f32 %v579_v61 }
  0xf5   :  { %322 = vst.msk [vmem:[#allocation2 + $0x140] sm:$0xff] %vm4091_vm8, %v2426_v6  ;;  %vm2432_vm8 = vcmp.lt.s32.totalorder %v287_v21, 0  ;;  %v2433_v24 = vceil.f32 %v287_v21  ;;  %v506_v58 = vsel %vm4093_vm0, %v3313_v60, 0.0  ;;  %v2434_v59 = vfloor.f32 %v287_v21 }
  0xf6   :  { %v291_v12 = vpop.xlane.xlu2 %290  ;;  %v289_v13 = vpop.xlane.xlu1 %288 }
  0xf7   :  { %vm2442_vm2 = vcmp.lt.s32.totalorder %v291_v12, 0  ;;  %v2443_v16 = vceil.f32 %v291_v12  ;;  %v2444_v20 = vfloor.f32 %v291_v12  ;;  %vm2437_vm3 = vcmp.lt.s32.totalorder %v289_v13, 0 }
  0xf8   :  { %v2438_v22 = vceil.f32 %v289_v13  ;;  %v2439_v23 = vfloor.f32 %v289_v13  ;;  %v2435_v32 = vsel %vm2432_vm8, %v2433_v24, %v2434_v59 }
  0xf9   :  { %v2445_v25 = vsel %vm2442_vm2, %v2443_v16, %v2444_v20  ;;  %529 = vadd.xlane.f32.xlu0 %v506_v58  ;;  %v2436_v33 = vcvt.f32.s32 %v2435_v32  ;;  %vm4095_vm2 = vmmov %vm4094_vm9 }
  0xfa   :  { %v2446_v29 = vcvt.f32.s32 %v2445_v25  ;;  %v2440_v30 = vsel %vm2437_vm3, %v2438_v22, %v2439_v23  ;;  %vm4097_vm14 = vmmov %vm4095_vm2  ;;  %v3387_v22 = vperm.slane %v580_v4, 0 }
  0xfb   :  { %v2441_v31 = vcvt.f32.s32 %v2440_v30  ;;  %533 = vadd.xlane.f32.xlu2 %v508_v14  ;;  %531 = vadd.xlane.f32.xlu1 %v507_v15  ;;  %324 = vst.msk [vmem:[#allocation2 + $0x150] sm:$0xff] %vm4095_vm2, %v2436_v33 }
  0xfc   :  { %326 = vst.msk [vmem:[#allocation2 + $0x160] sm:$0xff] %vm4092_vm13, %v2446_v29  ;;  %v293_v43 = vpop.xlane.xlu0 %292  ;;  %vm4096_vm13 = vnez %v4051_v36  ;;  %v583_v29 = vsel %vm3022_vm5, %v3387_v22, 0.0 }
  0xfd   :  { %325 = vst.msk [vmem:[#allocation2 + $0x158] sm:$0xff] %vm4094_vm9, %v2441_v31  ;;  %vm2447_vm9 = vcmp.lt.s32.totalorder %v293_v43, 0  ;;  %v2448_v49 = vceil.f32 %v293_v43  ;;  %v509_v51 = vsel %vm4096_vm13, %v3313_v60, 0.0  ;;  %v2449_v52 = vfloor.f32 %v293_v43 }
  0xfe   :  { %v297_v34 = vpop.xlane.xlu2 %296  ;;  %v295_v38 = vpop.xlane.xlu1 %294 }
  0xff   :  { %vm2457_vm3 = vcmp.lt.s32.totalorder %v297_v34, 0  ;;  %v2458_v41 = vceil.f32 %v297_v34  ;;  %v2459_v42 = vfloor.f32 %v297_v34  ;;  %vm2452_vm8 = vcmp.lt.s32.totalorder %v295_v38, 0 }
 0x100   :  { %v2453_v46 = vceil.f32 %v295_v38  ;;  %v2454_v48 = vfloor.f32 %v295_v38  ;;  %v2450_v57 = vsel %vm2447_vm9, %v2448_v49, %v2449_v52  ;;  %v587_v52 = vsel %vm4075_vm11, %v3387_v22, 0.0 }
 0x101   :  { %v2460_v50 = vsel %vm2457_vm3, %v2458_v41, %v2459_v42  ;;  %535 = vadd.xlane.f32.xlu0 %v509_v51  ;;  %v2451_v62 = vcvt.f32.s32 %v2450_v57  ;;  %vm4098_vm3 = vmmov %vm4095_vm2 }
 0x102   :  { %v2461_v53 = vcvt.f32.s32 %v2460_v50  ;;  %v2455_v55 = vsel %vm2452_vm8, %v2453_v46, %v2454_v48  ;;  %vm4100_vm15 = vmmov %vm4098_vm3 }
 0x103   :  { %v2456_v56 = vcvt.f32.s32 %v2455_v55  ;;  %539 = vadd.xlane.f32.xlu2 %v511_v39  ;;  %537 = vadd.xlane.f32.xlu1 %v510_v40  ;;  %327 = vst.msk [vmem:[#allocation2 + $0x168] sm:$0xff] %vm4098_vm3, %v2451_v62 }
 0x104   :  { %329 = vst.msk [vmem:[#allocation2 + $0x178] sm:$0xff] %vm4095_vm2, %v2461_v53  ;;  %v350_v10 = vpop.xlane.xlu0 %349  ;;  %vm4099_vm2 = vnez %v4057_v45  ;;  %v586_v53 = vsel %vm4090_vm7, %v3387_v22, 0.0 }
 0x105   :  { %328 = vst.msk [vmem:[#allocation2 + $0x170] sm:$0xff] %vm4097_vm14, %v2456_v56  ;;  %vm2462_vm14 = vcmp.lt.s32.totalorder %v350_v10, 0  ;;  %v2463_v13 = vceil.f32 %v350_v10  ;;  %v512_v15 = vsel %vm4099_vm2, %v3313_v60, 0.0  ;;  %v2464_v16 = vfloor.f32 %v350_v10 }
 0x106   :  { %v354_v63 = vpop.xlane.xlu2 %353  ;;  %v352_v0 = vpop.xlane.xlu1 %351  ;;  %v584_v60 = vsel %vm2987_vm1, %v3387_v22, 0.0 }
 0x107   :  { %vm2472_vm8 = vcmp.lt.s32.totalorder %v354_v63, 0  ;;  %v2473_v5 = vceil.f32 %v354_v63  ;;  %v2474_v6 = vfloor.f32 %v354_v63  ;;  %vm2467_vm9 = vcmp.lt.s32.totalorder %v352_v0, 0 }
 0x108   :  { %v2468_v11 = vceil.f32 %v352_v0  ;;  %v2469_v12 = vfloor.f32 %v352_v0  ;;  %v2465_v24 = vsel %vm2462_vm14, %v2463_v13, %v2464_v16 }
 0x109   :  { %v2475_v14 = vsel %vm2472_vm8, %v2473_v5, %v2474_v6  ;;  %541 = vadd.xlane.f32.xlu0 %v512_v15  ;;  %v2466_v25 = vcvt.f32.s32 %v2465_v24  ;;  %vm4101_vm8 = vmmov %vm4098_vm3  ;;  %v589_v15 = vsel %vm4093_vm0, %v3387_v22, 0.0 }
 0x10a   :  { %v2476_v20 = vcvt.f32.s32 %v2475_v14  ;;  %v2470_v21 = vsel %vm2467_vm9, %v2468_v11, %v2469_v12  ;;  %vm4103_vm1 = vmmov %vm4101_vm8  ;;  %v590_v14 = vsel %vm4079_vm10, %v3387_v22, 0.0 }
 0x10b   :  { %v2471_v23 = vcvt.f32.s32 %v2470_v21  ;;  %545 = vadd.xlane.f32.xlu2 %v514_v1  ;;  %543 = vadd.xlane.f32.xlu1 %v513_v2  ;;  %397 = vst.msk [vmem:[#allocation2 + $0x180] sm:$0xff] %vm4101_vm8, %v2466_v25  ;;  %v585_v1 = vsel %vm3017_vm4, %v3387_v22, 0.0 }
 0x10c   :  { %399 = vst.msk [vmem:[#allocation2 + $0x190] sm:$0xff] %vm4098_vm3, %v2476_v20  ;;  %v356_v32 = vpop.xlane.xlu0 %355  ;;  %vm4102_vm3 = vnez %v4035_v9 }
 0x10d   :  { %398 = vst.msk [vmem:[#allocation2 + $0x188] sm:$0xff] %vm4100_vm15, %v2471_v23  ;;  %vm2477_vm15 = vcmp.lt.s32.totalorder %v356_v32, 0  ;;  %v2478_v38 = vceil.f32 %v356_v32  ;;  %v582_v40 = vsel %vm4102_vm3, %v3387_v22, 0.0  ;;  %v2479_v41 = vfloor.f32 %v356_v32 }
 0x10e   :  { %v360_v58 = vpop.xlane.xlu2 %359  ;;  %v358_v59 = vpop.xlane.xlu1 %357 }
 0x10f   :  { %vm2487_vm9 = vcmp.lt.s32.totalorder %v360_v58, 0  ;;  %v2488_v30 = vceil.f32 %v360_v58  ;;  %v2489_v31 = vfloor.f32 %v360_v58  ;;  %vm2482_vm14 = vcmp.lt.s32.totalorder %v358_v59, 0 }
 0x110   :  { %v2483_v33 = vceil.f32 %v358_v59  ;;  %v2484_v34 = vfloor.f32 %v358_v59  ;;  %v2480_v48 = vsel %vm2477_vm15, %v2478_v38, %v2479_v41 }
 0x111   :  { %v2490_v39 = vsel %vm2487_vm9, %v2488_v30, %v2489_v31  ;;  %598 = vadd.xlane.f32.xlu0 %v582_v40  ;;  %v2481_v49 = vcvt.f32.s32 %v2480_v48  ;;  %vm4104_vm9 = vmmov %vm4103_vm1  ;;  %v592_v40 = vsel %vm4096_vm13, %v3387_v22, 0.0 }
 0x112   :  { %v2491_v42 = vcvt.f32.s32 %v2490_v39  ;;  %v2485_v43 = vsel %vm2482_vm14, %v2483_v33, %v2484_v34  ;;  %v593_v39 = vsel %vm4082_vm12, %v3387_v22, 0.0 }
 0x113   :  { %v2486_v46 = vcvt.f32.s32 %v2485_v43  ;;  %602 = vadd.xlane.f32.xlu2 %v584_v60  ;;  %600 = vadd.xlane.f32.xlu1 %v583_v29  ;;  %400 = vst.msk [vmem:[#allocation2 + $0x198] sm:$0xff] %vm4104_vm9, %v2481_v49  ;;  %vm4105_vm9 = vmmov %vm4101_vm8 }
 0x114   :  { %402 = vst.msk [vmem:[#allocation2 + $0x1a8] sm:$0xff] %vm4101_vm8, %v2491_v42  ;;  %v362_v57 = vpop.xlane.xlu0 %361 }
 0x115   :  { %401 = vst.msk [vmem:[#allocation2 + $0x1a0] sm:$0xff] %vm4103_vm1, %v2486_v46  ;;  %vm2492_vm1 = vcmp.lt.s32.totalorder %v362_v57, 0  ;;  %v2493_v63 = vceil.f32 %v362_v57  ;;  %v2494_v2 = vfloor.f32 %v362_v57 }
 0x116   :  { %v366_v50 = vpop.xlane.xlu2 %365  ;;  %v364_v51 = vpop.xlane.xlu1 %363 }
 0x117   :  { %vm2502_vm14 = vcmp.lt.s32.totalorder %v366_v50, 0  ;;  %v2503_v55 = vceil.f32 %v366_v50  ;;  %v2504_v56 = vfloor.f32 %v366_v50  ;;  %vm2497_vm15 = vcmp.lt.s32.totalorder %v364_v51, 0 }
 0x118   :  { %v2498_v61 = vceil.f32 %v364_v51  ;;  %v2499_v62 = vfloor.f32 %v364_v51  ;;  %v2495_v10 = vsel %vm2492_vm1, %v2493_v63, %v2494_v2  ;;  %v595_v2 = vsel %vm4099_vm2, %v3387_v22, 0.0 }
 0x119   :  { %v2505_v0 = vsel %vm2502_vm14, %v2503_v55, %v2504_v56  ;;  %604 = vadd.xlane.f32.xlu0 %v585_v1  ;;  %v2496_v11 = vcvt.f32.s32 %v2495_v10  ;;  %vm4106_vm14 = vmmov %vm4101_vm8  ;;  %v596_v1 = vsel %vm4085_vm6, %v3387_v22, 0.0 }
 0x11a   :  { %v2506_v4 = vcvt.f32.s32 %v2505_v0  ;;  %v2500_v5 = vsel %vm2497_vm15, %v2498_v61, %v2499_v62  ;;  %vm4108_vm10 = vmmov %vm4106_vm14  ;;  %v662_v61 = vld [vmem:[#allocation3 + $0x7] sm:$0x1] }
 0x11b   :  { %v2501_v6 = vcvt.f32.s32 %v2500_v5  ;;  %608 = vadd.xlane.f32.xlu2 %v587_v52  ;;  %606 = vadd.xlane.f32.xlu1 %v586_v53  ;;  %403 = vst.msk [vmem:[#allocation2 + $0x1b0] sm:$0xff] %vm4106_vm14, %v2496_v11 }
 0x11c   :  { %405 = vst.msk [vmem:[#allocation2 + $0x1c0] sm:$0xff] %vm4101_vm8, %v2506_v4  ;;  %v368_v21 = vpop.xlane.xlu0 %367  ;;  %v663_v4 = vcvt.s32.f32 %v662_v61 }
 0x11d   :  { %404 = vst.msk [vmem:[#allocation2 + $0x1b8] sm:$0xff] %vm4105_vm9, %v2501_v6  ;;  %vm2507_vm8 = vcmp.lt.s32.totalorder %v368_v21, 0  ;;  %v2508_v25 = vceil.f32 %v368_v21  ;;  %vm4107_vm9 = vnez %v4047_v28  ;;  %v2509_v60 = vfloor.f32 %v368_v21 }
 0x11e   :  { %v372_v12 = vpop.xlane.xlu2 %371  ;;  %v370_v13 = vpop.xlane.xlu1 %369  ;;  %v588_v59 = vsel %vm4107_vm9, %v3387_v22, 0.0 }
 0x11f   :  { %vm2517_vm15 = vcmp.lt.s32.totalorder %v372_v12, 0  ;;  %v2518_v16 = vceil.f32 %v372_v12  ;;  %v2519_v20 = vfloor.f32 %v372_v12  ;;  %vm2512_vm1 = vcmp.lt.s32.totalorder %v370_v13, 0 }
 0x120   :  { %v2513_v23 = vceil.f32 %v370_v13  ;;  %v2514_v24 = vfloor.f32 %v370_v13  ;;  %v2510_v32 = vsel %vm2507_vm8, %v2508_v25, %v2509_v60 }
 0x121   :  { %v2520_v58 = vsel %vm2517_vm15, %v2518_v16, %v2519_v20  ;;  %610 = vadd.xlane.f32.xlu0 %v588_v59  ;;  %v2511_v33 = vcvt.f32.s32 %v2510_v32  ;;  %vm4109_vm15 = vmmov %vm4108_vm10 }
 0x122   :  { %v2521_v29 = vcvt.f32.s32 %v2520_v58  ;;  %v2515_v30 = vsel %vm2512_vm1, %v2513_v23, %v2514_v24  ;;  %vm4111_vm12 = vmmov %vm4109_vm15  ;;  %v3449_v23 = vperm.slane %v663_v4, 0 }
 0x123   :  { %v2516_v31 = vcvt.f32.s32 %v2515_v30  ;;  %614 = vadd.xlane.f32.xlu2 %v590_v14  ;;  %612 = vadd.xlane.f32.xlu1 %v589_v15  ;;  %406 = vst.msk [vmem:[#allocation2 + $0x1c8] sm:$0xff] %vm4109_vm15, %v2511_v33 }
 0x124   :  { %408 = vst.msk [vmem:[#allocation2 + $0x1d8] sm:$0xff] %vm4106_vm14, %v2521_v29  ;;  %v374_v43 = vpop.xlane.xlu0 %373  ;;  %vm4110_vm14 = vnez %v4053_v37  ;;  %v666_v29 = vsel %vm3022_vm5, %v3449_v23, 0.0  ;;  %v665_v30 = vsel %vm4102_vm3, %v3449_v23, 0.0  ;;  %v675_v17 = vsel %vm4096_vm13, %v3449_v23, 0.0 }
 0x125   :  { %407 = vst.msk [vmem:[#allocation2 + $0x1d0] sm:$0xff] %vm4108_vm10, %v2516_v31  ;;  %vm2522_vm10 = vcmp.lt.s32.totalorder %v374_v43, 0  ;;  %v2523_v49 = vceil.f32 %v374_v43  ;;  %v591_v51 = vsel %vm4110_vm14, %v3387_v22, 0.0  ;;  %v2524_v52 = vfloor.f32 %v374_v43 }
 0x126   :  { %v378_v34 = vpop.xlane.xlu2 %377  ;;  %v376_v38 = vpop.xlane.xlu1 %375 }
 0x127   :  { %vm2532_vm1 = vcmp.lt.s32.totalorder %v378_v34, 0  ;;  %v2533_v41 = vceil.f32 %v378_v34  ;;  %v2534_v42 = vfloor.f32 %v378_v34  ;;  %vm2527_vm8 = vcmp.lt.s32.totalorder %v376_v38, 0 }
 0x128   :  { %v2528_v46 = vceil.f32 %v376_v38  ;;  %v2529_v48 = vfloor.f32 %v376_v38  ;;  %v2525_v57 = vsel %vm2522_vm10, %v2523_v49, %v2524_v52 }
 0x129   :  { %v2535_v50 = vsel %vm2532_vm1, %v2533_v41, %v2534_v42  ;;  %616 = vadd.xlane.f32.xlu0 %v591_v51  ;;  %v2526_v62 = vcvt.f32.s32 %v2525_v57  ;;  %vm4112_vm1 = vmmov %vm4111_vm12  ;;  %v668_v51 = vsel %vm3017_vm4, %v3449_v23, 0.0 }
 0x12a   :  { %v2536_v53 = vcvt.f32.s32 %v2535_v50  ;;  %v2530_v55 = vsel %vm2527_vm8, %v2528_v46, %v2529_v48  ;;  %vm4114_vm6 = vmmov %vm4112_vm1 }
 0x12b   :  { %v2531_v56 = vcvt.f32.s32 %v2530_v55  ;;  %620 = vadd.xlane.f32.xlu2 %v593_v39  ;;  %618 = vadd.xlane.f32.xlu1 %v592_v40  ;;  %409 = vst.msk [vmem:[#allocation2 + $0x1e0] sm:$0xff] %vm4112_vm1, %v2526_v62 }
 0x12c   :  { %411 = vst.msk [vmem:[#allocation2 + $0x1f0] sm:$0xff] %vm4109_vm15, %v2536_v53  ;;  %v380_v10 = vpop.xlane.xlu0 %379  ;;  %vm4113_vm15 = vnez %v4059_v47 }
 0x12d   :  { %410 = vst.msk [vmem:[#allocation2 + $0x1e8] sm:$0xff] %vm4111_vm12, %v2531_v56  ;;  %vm2537_vm12 = vcmp.lt.s32.totalorder %v380_v10, 0  ;;  %v2538_v13 = vceil.f32 %v380_v10  ;;  %v594_v15 = vsel %vm4113_vm15, %v3387_v22, 0.0  ;;  %v2539_v16 = vfloor.f32 %v380_v10 }
 0x12e   :  { %v435_v63 = vpop.xlane.xlu2 %434  ;;  %v433_v0 = vpop.xlane.xlu1 %432  ;;  %v671_v10 = vsel %vm4107_vm9, %v3449_v23, 0.0 }
 0x12f   :  { %vm2547_vm8 = vcmp.lt.s32.totalorder %v435_v63, 0  ;;  %v2548_v5 = vceil.f32 %v435_v63  ;;  %v2549_v6 = vfloor.f32 %v435_v63  ;;  %vm2542_vm10 = vcmp.lt.s32.totalorder %v433_v0, 0 }
 0x130   :  { %v2543_v11 = vceil.f32 %v433_v0  ;;  %v2544_v12 = vfloor.f32 %v433_v0  ;;  %v2540_v25 = vsel %vm2537_vm12, %v2538_v13, %v2539_v16 }
 0x131   :  { %v2550_v14 = vsel %vm2547_vm8, %v2548_v5, %v2549_v6  ;;  %622 = vadd.xlane.f32.xlu0 %v594_v15  ;;  %v2541_v58 = vcvt.f32.s32 %v2540_v25  ;;  %vm4115_vm8 = vmmov %vm4112_vm1 }
 0x132   :  { %v2551_v20 = vcvt.f32.s32 %v2550_v14  ;;  %v2545_v21 = vsel %vm2542_vm10, %v2543_v11, %v2544_v12  ;;  %vm4117_vm5 = vmmov %vm4115_vm8 }
 0x133   :  { %v2546_v24 = vcvt.f32.s32 %v2545_v21  ;;  %626 = vadd.xlane.f32.xlu2 %v596_v1  ;;  %624 = vadd.xlane.f32.xlu1 %v595_v2  ;;  %412 = vst.msk [vmem:[#allocation2 + $0x1f8] sm:$0xff] %vm4115_vm8, %v2541_v58  ;;  %vm4118_vm3 = vmmov %vm4117_vm5  ;;  %v670_v21 = vsel %vm4075_vm11, %v3449_v23, 0.0 }
 0x134   :  { %481 = vst.msk [vmem:[#allocation2 + $0x208] sm:$0xff] %vm4112_vm1, %v2551_v20  ;;  %v437_v33 = vpop.xlane.xlu0 %436  ;;  %vm4116_vm1 = vnez %v4061_v54  ;;  %vm4119_vm8 = vmmov %vm4118_vm3 }
 0x135   :  { %480 = vst.msk [vmem:[#allocation2 + $0x200] sm:$0xff] %vm4114_vm6, %v2546_v24  ;;  %vm2552_vm6 = vcmp.lt.s32.totalorder %v437_v33, 0  ;;  %v2553_v39 = vceil.f32 %v437_v33  ;;  %v597_v41 = vsel %vm4116_vm1, %v3387_v22, 0.0  ;;  %v2554_v19 = vfloor.f32 %v437_v33  ;;  %vm4121_vm4 = vmmov %vm4118_vm3 }
 0x136   :  { %v441_v59 = vpop.xlane.xlu2 %440  ;;  %v439_v60 = vpop.xlane.xlu1 %438  ;;  %v669_v22 = vsel %vm4090_vm7, %v3449_v23, 0.0  ;;  %vm4122_vm7 = vmmov %vm4118_vm3 }
 0x137   :  { %vm2562_vm10 = vcmp.lt.s32.totalorder %v441_v59, 0  ;;  %v2563_v31 = vceil.f32 %v441_v59  ;;  %v2564_v32 = vfloor.f32 %v441_v59  ;;  %vm2557_vm12 = vcmp.lt.s32.totalorder %v439_v60, 0 }
 0x138   :  { %v2558_v34 = vceil.f32 %v439_v60  ;;  %v2559_v38 = vfloor.f32 %v439_v60  ;;  %v2555_v9 = vsel %vm2552_vm6, %v2553_v39, %v2554_v19 }
 0x139   :  { %v2565_v40 = vsel %vm2562_vm10, %v2563_v31, %v2564_v32  ;;  %628 = vadd.xlane.f32.xlu0 %v597_v41  ;;  %v2556_v48 = vcvt.f32.s32 %v2555_v9  ;;  %v2951_v9 = vmov 0  }
 0x13a   :  { %v2566_v42 = vcvt.f32.s32 %v2565_v40  ;;  %v2560_v43 = vsel %vm2557_vm12, %v2558_v34, %v2559_v38  ;;  %2868 = vset.pattern.permute.xlu2 %v2951_v9  ;;  %2869 = vset.pattern.permute.xlu0 %v2951_v9 }
 0x13b   :  { %v2561_v46 = vcvt.f32.s32 %v2560_v43  ;;  %683 = vadd.xlane.f32.xlu2 %v666_v29  ;;  %681 = vadd.xlane.f32.xlu1 %v665_v30  ;;  %482 = vst.msk [vmem:[#allocation2 + $0x210] sm:$0xff] %vm4119_vm8, %v2556_v48  ;;  %v674_v30 = vsel %vm4110_vm14, %v3449_v23, 0.0 }
 0x13c   :  { %484 = vst.msk [vmem:[#allocation2 + $0x220] sm:$0xff] %vm4117_vm5, %v2566_v42  ;;  %v443_v55 = vpop.xlane.xlu0 %442  ;;  %vm4120_vm5 = vnez %v4033_v8  ;;  %v672_v8 = vsel %vm4093_vm0, %v3449_v23, 0.0  ;;  %vm4123_vm0 = vmmov %vm4118_vm3  ;;  %2870 = vset.pattern.permute.xlu1 %v2951_v9  ;;  %v745_v9 = vld [vmem:[#allocation2] sm:$0xff] }
 0x13d   :  { %483 = vst.msk [vmem:[#allocation2 + $0x218] sm:$0xff] %vm4118_vm3, %v2561_v46  ;;  %vm2567_vm6 = vcmp.lt.s32.totalorder %v443_v55, 0  ;;  %v2568_v61 = vceil.f32 %v443_v55  ;;  %v667_v63 = vsel %vm4120_vm5, %v3449_v23, 0.0  ;;  %v2569_v7 = vfloor.f32 %v443_v55  ;;  %vm4124_vm9 = vmmov %vm4123_vm0 }
 0x13e   :  { %v447_v49 = vpop.xlane.xlu2 %446  ;;  %v445_v50 = vpop.xlane.xlu1 %444  ;;  %vm4127_vm13 = vmmov %vm4123_vm0 }
 0x13f   :  { %vm2577_vm10 = vcmp.lt.s32.totalorder %v447_v49, 0  ;;  %v2578_v52 = vceil.f32 %v447_v49  ;;  %v2579_v53 = vfloor.f32 %v447_v49  ;;  %vm2572_vm12 = vcmp.lt.s32.totalorder %v445_v50, 0  ;;  %vm4128_vm14 = vmmov %vm4123_vm0 }
 0x140   :  { %v2573_v56 = vceil.f32 %v445_v50  ;;  %v2574_v57 = vfloor.f32 %v445_v50  ;;  %v2570_v18 = vsel %vm2567_vm6, %v2568_v61, %v2569_v7  ;;  %vm4125_vm6 = vmmov %vm4123_vm0  ;;  %v678_v49 = vsel %vm4099_vm2, %v3449_v23, 0.0 }
 0x141   :  { %v2580_v62 = vsel %vm2577_vm10, %v2578_v52, %v2579_v53  ;;  %685 = vadd.xlane.f32.xlu0 %v667_v63  ;;  %v2571_v4 = vcvt.f32.s32 %v2570_v18  ;;  %v677_v50 = vsel %vm4113_vm15, %v3449_v23, 0.0 }
 0x142   :  { %v2581_v0 = vcvt.f32.s32 %v2580_v62  ;;  %v2575_v1 = vsel %vm2572_vm12, %v2573_v56, %v2574_v57 }
 0x143   :  { %v2576_v2 = vcvt.f32.s32 %v2575_v1  ;;  %689 = vadd.xlane.f32.xlu2 %v669_v22  ;;  %687 = vadd.xlane.f32.xlu1 %v668_v51  ;;  %485 = vst.msk [vmem:[#allocation2 + $0x228] sm:$0xff] %vm4118_vm3, %v2571_v4  ;;  %vm4129_vm3 = vmmov %vm4123_vm0 }
 0x144   :  { %487 = vst.msk [vmem:[#allocation2 + $0x238] sm:$0xff] %vm4121_vm4, %v2581_v0  ;;  %v449_v13 = vpop.xlane.xlu0 %448  ;;  %vm4131_vm2 = vmmov %vm4129_vm3 }
 0x145   :  { %486 = vst.msk [vmem:[#allocation2 + $0x230] sm:$0xff] %vm4122_vm7, %v2576_v2  ;;  %vm2582_vm12 = vcmp.lt.s32.totalorder %v449_v13, 0  ;;  %v2583_v16 = vceil.f32 %v449_v13  ;;  %v2584_v27 = vfloor.f32 %v449_v13  ;;  %vm4126_vm7 = vnez %v4043_v26  ;;  %vm4132_vm15 = vmmov %vm4131_vm2 }
 0x146   :  { %v453_v5 = vpop.xlane.xlu2 %452  ;;  %v451_v6 = vpop.xlane.xlu1 %450  ;;  %v673_v41 = vsel %vm4126_vm7, %v3449_v23, 0.0 }
 0x147   :  { %vm2592_vm8 = vcmp.lt.s32.totalorder %v453_v5, 0  ;;  %v2593_v11 = vceil.f32 %v453_v5  ;;  %v2594_v12 = vfloor.f32 %v453_v5  ;;  %vm2587_vm10 = vcmp.lt.s32.totalorder %v451_v6, 0 }
 0x148   :  { %v2588_v14 = vceil.f32 %v451_v6  ;;  %v2589_v15 = vfloor.f32 %v451_v6  ;;  %v2585_v28 = vsel %vm2582_vm12, %v2583_v16, %v2584_v27 }
 0x149   :  { %v2595_v20 = vsel %vm2592_vm8, %v2593_v11, %v2594_v12  ;;  %691 = vadd.xlane.f32.xlu0 %v670_v21  ;;  %v2586_v59 = vcvt.f32.s32 %v2585_v28 }
 0x14a   :  { %v2596_v24 = vcvt.f32.s32 %v2595_v20  ;;  %v2590_v25 = vsel %vm2587_vm10, %v2588_v14, %v2589_v15 }
 0x14b   :  { %v2591_v58 = vcvt.f32.s32 %v2590_v25  ;;  %695 = vadd.xlane.f32.xlu2 %v672_v8  ;;  %693 = vadd.xlane.f32.xlu1 %v671_v10  ;;  %488 = vst.msk [vmem:[#allocation2 + $0x240] sm:$0xff] %vm4125_vm6, %v2586_v59 }
 0x14c   :  { %490 = vst.msk [vmem:[#allocation2 + $0x250] sm:$0xff] %vm4123_vm0, %v2596_v24  ;;  %v455_v33 = vpop.xlane.xlu0 %454  ;;  %vm4130_vm0 = vnez %v4049_v35  ;;  %v680_v35 = vsel %vm4116_vm1, %v3449_v23, 0.0  ;;  %vm4135_vm1 = vmmov %vm4131_vm2 }
 0x14d   :  { %489 = vst.msk [vmem:[#allocation2 + $0x248] sm:$0xff] %vm4124_vm9, %v2591_v58  ;;  %vm2597_vm4 = vcmp.lt.s32.totalorder %v455_v33, 0  ;;  %v2598_v39 = vceil.f32 %v455_v33  ;;  %v2599_v36 = vfloor.f32 %v455_v33  ;;  %v676_v61 = vsel %vm4130_vm0, %v3449_v23, 0.0  ;;  %vm4133_vm9 = vmmov %vm4131_vm2 }
 0x14e   :  { %v459_v60 = vpop.xlane.xlu2 %458  ;;  %v457_v29 = vpop.xlane.xlu1 %456  ;;  %vm4136_vm7 = vmmov %vm4135_vm1 }
 0x14f   :  { %vm2607_vm11 = vcmp.lt.s32.totalorder %v459_v60, 0  ;;  %v2608_v31 = vceil.f32 %v459_v60  ;;  %v2609_v32 = vfloor.f32 %v459_v60  ;;  %vm2602_vm5 = vcmp.lt.s32.totalorder %v457_v29, 0  ;;  %vm4140_vm0 = vmmov %vm4135_vm1 }
 0x150   :  { %v2603_v34 = vceil.f32 %v457_v29  ;;  %v2604_v38 = vfloor.f32 %v457_v29  ;;  %v2600_v37 = vsel %vm2597_vm4, %v2598_v39, %v2599_v36  ;;  %vm4134_vm4 = vnez %v4055_v44 }
 0x151   :  { %v2610_v40 = vsel %vm2607_vm11, %v2608_v31, %v2609_v32  ;;  %697 = vadd.xlane.f32.xlu0 %v673_v41  ;;  %v2601_v46 = vcvt.f32.s32 %v2600_v37  ;;  %v679_v12 = vsel %vm4134_vm4, %v3449_v23, 0.0 }
 0x152   :  { %v2611_v19 = vcvt.f32.s32 %v2610_v40  ;;  %v2605_v42 = vsel %vm2602_vm5, %v2603_v34, %v2604_v38 }
 0x153   :  { %v2606_v43 = vcvt.f32.s32 %v2605_v42  ;;  %701 = vadd.xlane.f32.xlu2 %v675_v17  ;;  %699 = vadd.xlane.f32.xlu1 %v674_v30  ;;  %491 = vst.msk [vmem:[#allocation2 + $0x258] sm:$0xff] %vm4129_vm3, %v2601_v46 }
 0x154   :  { %493 = vst.msk [vmem:[#allocation2 + $0x268] sm:$0xff] %vm4127_vm13, %v2611_v19  ;;  %v461_v52 = vpop.xlane.xlu0 %460  ;;  %vm4137_vm13 = vmmov %vm4135_vm1 }
 0x155   :  { %492 = vst.msk [vmem:[#allocation2 + $0x260] sm:$0xff] %vm4128_vm14, %v2606_v43  ;;  %vm2612_vm12 = vcmp.lt.s32.totalorder %v461_v52, 0  ;;  %v2613_v56 = vceil.f32 %v461_v52  ;;  %v2614_v45 = vfloor.f32 %v461_v52 }
 0x156   :  { %v516_v48 = vpop.xlane.xlu2 %515  ;;  %v463_v26 = vpop.xlane.xlu1 %462 }
 0x157   :  { %vm2622_vm8 = vcmp.lt.s32.totalorder %v516_v48, 0  ;;  %v2623_v22 = vceil.f32 %v516_v48  ;;  %v2624_v51 = vfloor.f32 %v516_v48  ;;  %vm2617_vm10 = vcmp.lt.s32.totalorder %v463_v26, 0 }
 0x158   :  { %v2618_v53 = vceil.f32 %v463_v26  ;;  %v2619_v55 = vfloor.f32 %v463_v26  ;;  %v2615_v47 = vsel %vm2612_vm12, %v2613_v56, %v2614_v45  ;;  %vm4139_vm12 = vmmov %vm4135_vm1 }
 0x159   :  { %v2625_v57 = vsel %vm2622_vm8, %v2623_v22, %v2624_v51  ;;  %703 = vadd.xlane.f32.xlu0 %v676_v61  ;;  %v2616_v0 = vcvt.f32.s32 %v2615_v47  ;;  %v748_v47 = vld [vmem:[#allocation2 + $0x18] sm:$0xff] }
 0x15a   :  { %v2626_v62 = vcvt.f32.s32 %v2625_v57  ;;  %v2620_v63 = vsel %vm2617_vm10, %v2618_v53, %v2619_v55  ;;  %vm4138_vm10 = vmmov %vm4135_vm1  ;;  %v746_v53 = vld [vmem:[#allocation2 + $0x8] sm:$0xff] }
 0x15b   :  { %v2621_v7 = vcvt.f32.s32 %v2620_v63  ;;  %707 = vadd.xlane.f32.xlu2 %v678_v49  ;;  %705 = vadd.xlane.f32.xlu1 %v677_v50  ;;  %494 = vst.msk [vmem:[#allocation2 + $0x270] sm:$0xff] %vm4133_vm9, %v2616_v0 }
 0x15c   :  { %563 = vst.msk [vmem:[#allocation2 + $0x280] sm:$0xff] %vm4131_vm2, %v2626_v62  ;;  %v518_v5 = vpop.xlane.xlu0 %517 }
 0x15d   :  { %495 = vst.msk [vmem:[#allocation2 + $0x278] sm:$0xff] %vm4132_vm15, %v2621_v7  ;;  %vm2627_vm5 = vcmp.lt.s32.totalorder %v518_v5, 0  ;;  %v2628_v10 = vceil.f32 %v518_v5  ;;  %v2629_v13 = vfloor.f32 %v518_v5 }
 0x15e   :  { %v522_v1 = vpop.xlane.xlu2 %521  ;;  %v520_v2 = vpop.xlane.xlu1 %519 }
 0x15f   :  { %vm2637_vm6 = vcmp.lt.s32.totalorder %v522_v1, 0  ;;  %v2638_v18 = vceil.f32 %v522_v1  ;;  %v2639_v4 = vfloor.f32 %v522_v1  ;;  %vm2632_vm11 = vcmp.lt.s32.totalorder %v520_v2, 0  ;;  %v747_v1 = vld [vmem:[#allocation2 + $0x10] sm:$0xff] }
 0x160   :  { %v2633_v6 = vceil.f32 %v520_v2  ;;  %v2634_v8 = vfloor.f32 %v520_v2  ;;  %v2630_v54 = vsel %vm2627_vm5, %v2628_v10, %v2629_v13  ;;  %vm4143_vm5 = vmmov %vm4140_vm0 }
 0x161   :  { %v2640_v11 = vsel %vm2637_vm6, %v2638_v18, %v2639_v4  ;;  %709 = vadd.xlane.f32.xlu0 %v679_v12  ;;  %v2631_v20 = vcvt.f32.s32 %v2630_v54  ;;  %vm4141_vm6 = vmmov %vm4140_vm0 }
 0x162   :  { %v2641_v14 = vcvt.f32.s32 %v2640_v11  ;;  %v2635_v15 = vsel %vm2632_vm11, %v2633_v6, %v2634_v8  ;;  %vm4142_vm11 = vmmov %vm4140_vm0  ;;  %v753_v8 = vld [vmem:[#allocation2 + $0x40] sm:$0xff] }
 0x163   :  { %v2636_v16 = vcvt.f32.s32 %v2635_v15  ;;  %711 = vadd.xlane.f32.xlu1 %v680_v35  ;;  %564 = vst.msk [vmem:[#allocation2 + $0x288] sm:$0xff] %vm4137_vm13, %v2631_v20  ;;  %vm4144_vm13 = vmmov %vm4140_vm0  ;;  %v749_v20 = vld [vmem:[#allocation2 + $0x20] sm:$0xff] }
 0x164   :  { %566 = vst.msk [vmem:[#allocation2 + $0x298] sm:$0xff] %vm4135_vm1, %v2641_v14  ;;  %v524_v23 = vpop.xlane.xlu0 %523 }
 0x165   :  { %565 = vst.msk [vmem:[#allocation2 + $0x290] sm:$0xff] %vm4136_vm7, %v2636_v16  ;;  %vm2642_vm8 = vcmp.lt.s32.totalorder %v524_v23, 0  ;;  %v2643_v28 = vceil.f32 %v524_v23  ;;  %v2644_v60 = vfloor.f32 %v524_v23 }
 0x166   :  { %v528_v21 = vpop.xlane.xlu2 %527  ;;  %v526_v27 = vpop.xlane.xlu1 %525 }
 0x167   :  { %vm2652_vm14 = vcmp.lt.s32.totalorder %v528_v21, 0  ;;  %v2653_v24 = vceil.f32 %v528_v21  ;;  %v2654_v44 = vfloor.f32 %v528_v21  ;;  %vm2647_vm3 = vcmp.lt.s32.totalorder %v526_v27, 0 }
 0x168   :  { %v2648_v25 = vceil.f32 %v526_v27  ;;  %v2649_v58 = vfloor.f32 %v526_v27  ;;  %v2645_v31 = vsel %vm2642_vm8, %v2643_v28, %v2644_v60  ;;  %v750_v27 = vld [vmem:[#allocation2 + $0x28] sm:$0xff] }
 0x169   :  { %v2655_v59 = vsel %vm2652_vm14, %v2653_v24, %v2654_v44  ;;  %v2646_v32 = vcvt.f32.s32 %v2645_v31  ;;  %vm4145_vm14 = vmmov %vm4140_vm0 }
 0x16a   :  { %v2656_v29 = vcvt.f32.s32 %v2655_v59  ;;  %v2650_v17 = vsel %vm2647_vm3, %v2648_v25, %v2649_v58  ;;  %vm4146_vm3 = vmmov %vm4140_vm0  ;;  %v756_v59 = vld [vmem:[#allocation2 + $0x58] sm:$0xff] }
 0x16b   :  { %v2651_v30 = vcvt.f32.s32 %v2650_v17  ;;  %567 = vst.msk [vmem:[#allocation2 + $0x2a0] sm:$0xff] %vm4140_vm0, %v2646_v32 }
 0x16c   :  { %569 = vst.msk [vmem:[#allocation2 + $0x2b0] sm:$0xff] %vm4138_vm10, %v2656_v29  ;;  %v530_v40 = vpop.xlane.xlu0 %529 }
 0x16d   :  { %568 = vst.msk [vmem:[#allocation2 + $0x2a8] sm:$0xff] %vm4139_vm12, %v2651_v30  ;;  %vm2657_vm9 = vcmp.lt.s32.totalorder %v530_v40, 0  ;;  %v2658_v19 = vceil.f32 %v530_v40  ;;  %v2659_v43 = vfloor.f32 %v530_v40  ;;  %v752_v40 = vld [vmem:[#allocation2 + $0x38] sm:$0xff] }
 0x16e   :  { %v534_v33 = vpop.xlane.xlu2 %533  ;;  %v532_v34 = vpop.xlane.xlu1 %531 }
 0x16f   :  { %vm2667_vm2 = vcmp.lt.s32.totalorder %v534_v33, 0  ;;  %v2668_v38 = vceil.f32 %v534_v33  ;;  %v2669_v39 = vfloor.f32 %v534_v33  ;;  %vm2662_vm15 = vcmp.lt.s32.totalorder %v532_v34, 0 }
 0x170   :  { %v2663_v41 = vceil.f32 %v532_v34  ;;  %v2664_v36 = vfloor.f32 %v532_v34  ;;  %v2660_v26 = vsel %vm2657_vm9, %v2658_v19, %v2659_v43 }
 0x171   :  { %v2670_v42 = vsel %vm2667_vm2, %v2668_v38, %v2669_v39  ;;  %v2661_v49 = vcvt.f32.s32 %v2660_v26  ;;  %vm4147_vm2 = vmmov %vm4140_vm0  ;;  %v751_v38 = vld [vmem:[#allocation2 + $0x30] sm:$0xff] }
 0x172   :  { %v2671_v37 = vcvt.f32.s32 %v2670_v42  ;;  %v2665_v46 = vsel %vm2662_vm15, %v2663_v41, %v2664_v36  ;;  %vm4148_vm15 = vmmov %vm4140_vm0 }
 0x173   :  { %v2666_v48 = vcvt.f32.s32 %v2665_v46  ;;  %1012 = vperm.xlu2 %2868, %v745_v9   ;;  %570 = vst.msk [vmem:[#allocation2 + $0x2b8] sm:$0xff] %vm4143_vm5, %v2661_v49  ;;  %vm4149_vm5 = vmmov %vm4140_vm0  ;;  %v759_v46 = vld [vmem:[#allocation2 + $0x70] sm:$0xff] }
 0x174   :  { %572 = vst.msk [vmem:[#allocation2 + $0x2c8] sm:$0xff] %vm4141_vm6, %v2671_v37  ;;  %v536_v55 = vpop.xlane.xlu0 %535 }
 0x175   :  { %571 = vst.msk [vmem:[#allocation2 + $0x2c0] sm:$0xff] %vm4142_vm11, %v2666_v48  ;;  %1015 = vperm.xlu0 %2869, %v746_v53   ;;  %vm2672_vm7 = vcmp.lt.s32.totalorder %v536_v55, 0  ;;  %v2673_v61 = vceil.f32 %v536_v55  ;;  %v2674_v62 = vfloor.f32 %v536_v55  ;;  %v754_v53 = vld [vmem:[#allocation2 + $0x48] sm:$0xff] }
 0x176   :  { %v540_v50 = vpop.xlane.xlu2 %539  ;;  %v538_v22 = vpop.xlane.xlu1 %537 }
 0x177   :  { %vm2682_vm4 = vcmp.lt.s32.totalorder %v540_v50, 0  ;;  %v2683_v51 = vceil.f32 %v540_v50  ;;  %v2684_v52 = vfloor.f32 %v540_v50  ;;  %vm2677_vm1 = vcmp.lt.s32.totalorder %v538_v22, 0 }
 0x178   :  { %v2678_v56 = vceil.f32 %v538_v22  ;;  %v2679_v57 = vfloor.f32 %v538_v22  ;;  %v2675_v2 = vsel %vm2672_vm7, %v2673_v61, %v2674_v62 }
 0x179   :  { %v2685_v45 = vsel %vm2682_vm4, %v2683_v51, %v2684_v52  ;;  %v2676_v35 = vcvt.f32.s32 %v2675_v2  ;;  %vm4150_vm4 = vmmov %vm4140_vm0 }
 0x17a   :  { %v2686_v63 = vcvt.f32.s32 %v2685_v45  ;;  %v2680_v7 = vsel %vm2677_vm1, %v2678_v56, %v2679_v57  ;;  %vm4151_vm1 = vmmov %vm4140_vm0  ;;  %v755_v56 = vld [vmem:[#allocation2 + $0x50] sm:$0xff] }
 0x17b   :  { %v2681_v0 = vcvt.f32.s32 %v2680_v7  ;;  %1021 = vperm.xlu2 %2868, %v748_v47   ;;  %573 = vst.msk [vmem:[#allocation2 + $0x2d0] sm:$0xff] %vm4146_vm3, %v2676_v35  ;;  %vm4152_vm3 = vmmov %vm4140_vm0  ;;  %v762_v47 = vld [vmem:[#allocation2 + $0x88] sm:$0xff] }
 0x17c   :  { %575 = vst.msk [vmem:[#allocation2 + $0x2e0] sm:$0xff] %vm4144_vm13, %v2686_v63  ;;  %1018 = vperm.xlu1 %2870, %v747_v1   ;;  %v542_v10 = vpop.xlane.xlu0 %541 }
 0x17d   :  { %574 = vst.msk [vmem:[#allocation2 + $0x2d8] sm:$0xff] %vm4145_vm14, %v2681_v0  ;;  %1036 = vperm.xlu0 %2869, %v753_v8   ;;  %vm2687_vm12 = vcmp.lt.s32.totalorder %v542_v10, 0  ;;  %v2688_v13 = vceil.f32 %v542_v10  ;;  %v2689_v15 = vfloor.f32 %v542_v10  ;;  %v757_v8 = vld [vmem:[#allocation2 + $0x60] sm:$0xff] }
 0x17e   :  { %v546_v18 = vpop.xlane.xlu2 %545  ;;  %v544_v4 = vpop.xlane.xlu1 %543 }
 0x17f   :  { %vm2697_vm8 = vcmp.lt.s32.totalorder %v546_v18, 0  ;;  %v2698_v5 = vceil.f32 %v546_v18  ;;  %v2699_v6 = vfloor.f32 %v546_v18  ;;  %vm2692_vm10 = vcmp.lt.s32.totalorder %v544_v4, 0 }
 0x180   :  { %v2693_v11 = vceil.f32 %v544_v4  ;;  %v2694_v12 = vfloor.f32 %v544_v4  ;;  %v2690_v24 = vsel %vm2687_vm12, %v2688_v13, %v2689_v15 }
 0x181   :  { %v2700_v14 = vsel %vm2697_vm8, %v2698_v5, %v2699_v6  ;;  %v2691_v44 = vcvt.f32.s32 %v2690_v24  ;;  %vm4153_vm8 = vmmov %vm4140_vm0 }
 0x182   :  { %v2701_v16 = vcvt.f32.s32 %v2700_v14  ;;  %v2695_v54 = vsel %vm2692_vm10, %v2693_v11, %v2694_v12  ;;  %vm4154_vm10 = vmmov %vm4140_vm0  ;;  %v758_v11 = vld [vmem:[#allocation2 + $0x68] sm:$0xff] }
 0x183   :  { %v2696_v21 = vcvt.f32.s32 %v2695_v54  ;;  %1024 = vperm.xlu2 %2868, %v749_v20   ;;  %576 = vst.msk [vmem:[#allocation2 + $0x2e8] sm:$0xff] %vm4148_vm15, %v2691_v44  ;;  %vm4155_vm15 = vmmov %vm4151_vm1  ;;  %v765_v20 = vld [vmem:[#allocation2 + $0xa0] sm:$0xff] }
 0x184   :  { %578 = vst.msk [vmem:[#allocation2 + $0x2f8] sm:$0xff] %vm4140_vm0, %v2701_v16  ;;  %1027 = vperm.xlu1 %2870, %v750_v27   ;;  %v599_v60 = vpop.xlane.xlu0 %598 }
 0x185   :  { %577 = vst.msk [vmem:[#allocation2 + $0x2f0] sm:$0xff] %vm4147_vm2, %v2696_v21  ;;  %1045 = vperm.xlu0 %2869, %v756_v59   ;;  %vm2702_vm11 = vcmp.lt.s32.totalorder %v599_v60, 0  ;;  %v2703_v30 = vceil.f32 %v599_v60  ;;  %v2704_v32 = vfloor.f32 %v599_v60  ;;  %v760_v59 = vld [vmem:[#allocation2 + $0x78] sm:$0xff] }
 0x186   :  { %v603_v23 = vpop.xlane.xlu2 %602  ;;  %v601_v25 = vpop.xlane.xlu1 %600 }
 0x187   :  { %vm2712_vm9 = vcmp.lt.s32.totalorder %v603_v23, 0  ;;  %v2713_v58 = vceil.f32 %v603_v23  ;;  %v2714_v28 = vfloor.f32 %v603_v23  ;;  %vm2707_vm6 = vcmp.lt.s32.totalorder %v601_v25, 0 }
 0x188   :  { %v2708_v29 = vceil.f32 %v601_v25  ;;  %v2709_v17 = vfloor.f32 %v601_v25  ;;  %v2705_v41 = vsel %vm2702_vm11, %v2703_v30, %v2704_v32 }
 0x189   :  { %v2715_v31 = vsel %vm2712_vm9, %v2713_v58, %v2714_v28  ;;  %v2706_v36 = vcvt.f32.s32 %v2705_v41  ;;  %vm4156_vm9 = vmmov %vm4151_vm1 }
 0x18a   :  { %v2716_v33 = vcvt.f32.s32 %v2715_v31  ;;  %v2710_v34 = vsel %vm2707_vm6, %v2708_v29, %v2709_v17  ;;  %vm4157_vm6 = vmmov %vm4151_vm1  ;;  %v761_v29 = vld [vmem:[#allocation2 + $0x80] sm:$0xff] }
 0x18b   :  { %v2711_v39 = vcvt.f32.s32 %v2710_v34  ;;  %1030 = vperm.xlu2 %2868, %v751_v38   ;;  %646 = vst.msk [vmem:[#allocation2 + $0x300] sm:$0xff] %vm4151_vm1, %v2706_v36  ;;  %v768_v38 = vld [vmem:[#allocation2 + $0xb8] sm:$0xff] }
 0x18c   :  { %648 = vst.msk [vmem:[#allocation2 + $0x310] sm:$0xff] %vm4149_vm5, %v2716_v33  ;;  %1033 = vperm.xlu1 %2870, %v752_v40   ;;  %v605_v9 = vpop.xlane.xlu0 %604 }
 0x18d   :  { %647 = vst.msk [vmem:[#allocation2 + $0x308] sm:$0xff] %vm4150_vm4, %v2711_v39  ;;  %1054 = vperm.xlu0 %2869, %v759_v46   ;;  %vm2717_vm14 = vcmp.lt.s32.totalorder %v605_v9, 0  ;;  %v2718_v49 = vceil.f32 %v605_v9  ;;  %v2719_v22 = vfloor.f32 %v605_v9  ;;  %v763_v46 = vld [vmem:[#allocation2 + $0x90] sm:$0xff] }
 0x18e   :  { %v609_v19 = vpop.xlane.xlu2 %608  ;;  %v607_v42 = vpop.xlane.xlu1 %606 }
 0x18f   :  { %vm2727_vm7 = vcmp.lt.s32.totalorder %v609_v19, 0  ;;  %v2728_v43 = vceil.f32 %v609_v19  ;;  %v2729_v37 = vfloor.f32 %v609_v19  ;;  %vm2722_vm13 = vcmp.lt.s32.totalorder %v607_v42, 0 }
 0x190   :  { %v2723_v48 = vceil.f32 %v607_v42  ;;  %v2724_v26 = vfloor.f32 %v607_v42  ;;  %v2720_v57 = vsel %vm2717_vm14, %v2718_v49, %v2719_v22 }
 0x191   :  { %v2730_v50 = vsel %vm2727_vm7, %v2728_v43, %v2729_v37  ;;  %v2721_v61 = vcvt.f32.s32 %v2720_v57  ;;  %vm4158_vm7 = vmmov %vm4151_vm1 }
 0x192   :  { %v2731_v51 = vcvt.f32.s32 %v2730_v50  ;;  %v2725_v52 = vsel %vm2722_vm13, %v2723_v48, %v2724_v26  ;;  %vm4159_vm13 = vmmov %vm4151_vm1  ;;  %v764_v48 = vld [vmem:[#allocation2 + $0x98] sm:$0xff] }
 0x193   :  { %v2726_v55 = vcvt.f32.s32 %v2725_v52  ;;  %1039 = vperm.xlu2 %2868, %v754_v53   ;;  %649 = vst.msk [vmem:[#allocation2 + $0x318] sm:$0xff] %vm4154_vm10, %v2721_v61  ;;  %vm4160_vm10 = vmmov %vm4151_vm1  ;;  %v771_v53 = vld [vmem:[#allocation2 + $0xd0] sm:$0xff] }
 0x194   :  { %651 = vst.msk [vmem:[#allocation2 + $0x328] sm:$0xff] %vm4152_vm3, %v2731_v51  ;;  %1042 = vperm.xlu1 %2870, %v755_v56   ;;  %v611_v0 = vpop.xlane.xlu0 %610 }
 0x195   :  { %650 = vst.msk [vmem:[#allocation2 + $0x320] sm:$0xff] %vm4153_vm8, %v2726_v55  ;;  %1063 = vperm.xlu0 %2869, %v762_v47   ;;  %vm2732_vm2 = vcmp.lt.s32.totalorder %v611_v0, 0  ;;  %v2733_v35 = vceil.f32 %v611_v0  ;;  %v2734_v4 = vfloor.f32 %v611_v0  ;;  %v766_v47 = vld [vmem:[#allocation2 + $0xa8] sm:$0xff] }
 0x196   :  { %v615_v45 = vpop.xlane.xlu2 %614  ;;  %v613_v62 = vpop.xlane.xlu1 %612 }
 0x197   :  { %vm2742_vm12 = vcmp.lt.s32.totalorder %v615_v45, 0  ;;  %v2743_v63 = vceil.f32 %v615_v45  ;;  %v2744_v7 = vfloor.f32 %v615_v45  ;;  %vm2737_vm0 = vcmp.lt.s32.totalorder %v613_v62, 0 }
 0x198   :  { %v2738_v1 = vceil.f32 %v613_v62  ;;  %v2739_v2 = vfloor.f32 %v613_v62  ;;  %v2735_v12 = vsel %vm2732_vm2, %v2733_v35, %v2734_v4 }
 0x199   :  { %v2745_v18 = vsel %vm2742_vm12, %v2743_v63, %v2744_v7  ;;  %v2736_v13 = vcvt.f32.s32 %v2735_v12  ;;  %vm4161_vm12 = vmmov %vm4151_vm1 }
 0x19a   :  { %v2746_v5 = vcvt.f32.s32 %v2745_v18  ;;  %v2740_v6 = vsel %vm2737_vm0, %v2738_v1, %v2739_v2  ;;  %vm4162_vm0 = vmmov %vm4151_vm1  ;;  %v767_v1 = vld [vmem:[#allocation2 + $0xb0] sm:$0xff] }
 0x19b   :  { %v2741_v10 = vcvt.f32.s32 %v2740_v6  ;;  %1048 = vperm.xlu2 %2868, %v757_v8   ;;  %652 = vst.msk [vmem:[#allocation2 + $0x330] sm:$0xff] %vm4157_vm6, %v2736_v13  ;;  %vm4163_vm6 = vmmov %vm4162_vm0  ;;  %v774_v8 = vld [vmem:[#allocation2 + $0xe8] sm:$0xff] }
 0x19c   :  { %654 = vst.msk [vmem:[#allocation2 + $0x340] sm:$0xff] %vm4155_vm15, %v2746_v5  ;;  %1051 = vperm.xlu1 %2870, %v758_v11   ;;  %v617_v21 = vpop.xlane.xlu0 %616 }
 0x19d   :  { %653 = vst.msk [vmem:[#allocation2 + $0x338] sm:$0xff] %vm4156_vm9, %v2741_v10  ;;  %1072 = vperm.xlu0 %2869, %v765_v20   ;;  %vm2747_vm4 = vcmp.lt.s32.totalorder %v617_v21, 0  ;;  %v2748_v44 = vceil.f32 %v617_v21  ;;  %v2749_v25 = vfloor.f32 %v617_v21  ;;  %v769_v20 = vld [vmem:[#allocation2 + $0xc0] sm:$0xff] }
 0x19e   :  { %v621_v14 = vpop.xlane.xlu2 %620  ;;  %v619_v15 = vpop.xlane.xlu1 %618 }
 0x19f   :  { %vm2757_vm11 = vcmp.lt.s32.totalorder %v621_v14, 0  ;;  %v2758_v16 = vceil.f32 %v621_v14  ;;  %v2759_v54 = vfloor.f32 %v621_v14  ;;  %vm2752_vm5 = vcmp.lt.s32.totalorder %v619_v15, 0 }
 0x1a0   :  { %v2753_v27 = vceil.f32 %v619_v15  ;;  %v2754_v24 = vfloor.f32 %v619_v15  ;;  %v2750_v17 = vsel %vm2747_vm4, %v2748_v44, %v2749_v25 }
 0x1a1   :  { %v2760_v23 = vsel %vm2757_vm11, %v2758_v16, %v2759_v54  ;;  %v2751_v30 = vcvt.f32.s32 %v2750_v17  ;;  %vm4164_vm11 = vmmov %vm4162_vm0 }
 0x1a2   :  { %v2761_v58 = vcvt.f32.s32 %v2760_v23  ;;  %v2755_v28 = vsel %vm2752_vm5, %v2753_v27, %v2754_v24  ;;  %vm4165_vm5 = vmmov %vm4162_vm0  ;;  %v770_v27 = vld [vmem:[#allocation2 + $0xc8] sm:$0xff] }
 0x1a3   :  { %v2756_v60 = vcvt.f32.s32 %v2755_v28  ;;  %1057 = vperm.xlu2 %2868, %v760_v59   ;;  %655 = vst.msk [vmem:[#allocation2 + $0x348] sm:$0xff] %vm4159_vm13, %v2751_v30  ;;  %vm4166_vm13 = vmmov %vm4162_vm0  ;;  %v777_v59 = vld [vmem:[#allocation2 + $0x100] sm:$0xff] }
 0x1a4   :  { %657 = vst.msk [vmem:[#allocation2 + $0x358] sm:$0xff] %vm4151_vm1, %v2761_v58  ;;  %1060 = vperm.xlu1 %2870, %v761_v29   ;;  %v623_v39 = vpop.xlane.xlu0 %622 }
 0x1a5   :  { %656 = vst.msk [vmem:[#allocation2 + $0x350] sm:$0xff] %vm4158_vm7, %v2756_v60  ;;  %1081 = vperm.xlu0 %2869, %v768_v38   ;;  %vm2762_vm8 = vcmp.lt.s32.totalorder %v623_v39, 0  ;;  %v2763_v36 = vceil.f32 %v623_v39  ;;  %v2764_v42 = vfloor.f32 %v623_v39  ;;  %v772_v38 = vld [vmem:[#allocation2 + $0xd8] sm:$0xff] }
 0x1a6   :  { %v627_v31 = vpop.xlane.xlu2 %626  ;;  %v625_v32 = vpop.xlane.xlu1 %624 }
 0x1a7   :  { %vm2772_vm14 = vcmp.lt.s32.totalorder %v627_v31, 0  ;;  %v2773_v33 = vceil.f32 %v627_v31  ;;  %v2774_v34 = vfloor.f32 %v627_v31  ;;  %vm2767_vm3 = vcmp.lt.s32.totalorder %v625_v32, 0 }
 0x1a8   :  { %v2768_v40 = vceil.f32 %v625_v32  ;;  %v2769_v41 = vfloor.f32 %v625_v32  ;;  %v2765_v26 = vsel %vm2762_vm8, %v2763_v36, %v2764_v42 }
 0x1a9   :  { %v2775_v19 = vsel %vm2772_vm14, %v2773_v33, %v2774_v34  ;;  %v2766_v49 = vcvt.f32.s32 %v2765_v26  ;;  %vm4167_vm14 = vmmov %vm4162_vm0 }
 0x1aa   :  { %v2776_v43 = vcvt.f32.s32 %v2775_v19  ;;  %v2770_v37 = vsel %vm2767_vm3, %v2768_v40, %v2769_v41  ;;  %vm4168_vm3 = vmmov %vm4162_vm0  ;;  %v773_v40 = vld [vmem:[#allocation2 + $0xe0] sm:$0xff] }
 0x1ab   :  { %v2771_v9 = vcvt.f32.s32 %v2770_v37  ;;  %1066 = vperm.xlu2 %2868, %v763_v46   ;;  %658 = vst.msk [vmem:[#allocation2 + $0x360] sm:$0xff] %vm4162_vm0, %v2766_v49  ;;  %v780_v46 = vld [vmem:[#allocation2 + $0x118] sm:$0xff] }
 0x1ac   :  { %660 = vst.msk [vmem:[#allocation2 + $0x370] sm:$0xff] %vm4160_vm10, %v2776_v43  ;;  %1069 = vperm.xlu1 %2870, %v764_v48   ;;  %v629_v55 = vpop.xlane.xlu0 %628 }
 0x1ad   :  { %659 = vst.msk [vmem:[#allocation2 + $0x368] sm:$0xff] %vm4161_vm12, %v2771_v9  ;;  %1090 = vperm.xlu0 %2869, %v771_v53   ;;  %vm2777_vm9 = vcmp.lt.s32.totalorder %v629_v55, 0  ;;  %v2778_v61 = vceil.f32 %v629_v55  ;;  %v2779_v62 = vfloor.f32 %v629_v55  ;;  %v775_v53 = vld [vmem:[#allocation2 + $0xf0] sm:$0xff] }
 0x1ae   :  { %v684_v50 = vpop.xlane.xlu2 %683  ;;  %v682_v22 = vpop.xlane.xlu1 %681 }
 0x1af   :  { %vm2787_vm2 = vcmp.lt.s32.totalorder %v684_v50, 0  ;;  %v2788_v51 = vceil.f32 %v684_v50  ;;  %v2789_v52 = vfloor.f32 %v684_v50  ;;  %vm2782_vm15 = vcmp.lt.s32.totalorder %v682_v22, 0 }
 0x1b0   :  { %v2783_v56 = vceil.f32 %v682_v22  ;;  %v2784_v57 = vfloor.f32 %v682_v22  ;;  %v2780_v2 = vsel %vm2777_vm9, %v2778_v61, %v2779_v62 }
 0x1b1   :  { %v2790_v45 = vsel %vm2787_vm2, %v2788_v51, %v2789_v52  ;;  %v2781_v35 = vcvt.f32.s32 %v2780_v2  ;;  %vm4169_vm2 = vmmov %vm4162_vm0 }
 0x1b2   :  { %v2791_v63 = vcvt.f32.s32 %v2790_v45  ;;  %v2785_v7 = vsel %vm2782_vm15, %v2783_v56, %v2784_v57  ;;  %vm4170_vm15 = vmmov %vm4162_vm0  ;;  %v776_v56 = vld [vmem:[#allocation2 + $0xf8] sm:$0xff] }
 0x1b3   :  { %v2786_v0 = vcvt.f32.s32 %v2785_v7  ;;  %1075 = vperm.xlu2 %2868, %v766_v47   ;;  %661 = vst.msk [vmem:[#allocation2 + $0x378] sm:$0xff] %vm4165_vm5, %v2781_v35  ;;  %vm4171_vm5 = vmmov %vm4162_vm0  ;;  %v783_v47 = vld [vmem:[#allocation2 + $0x130] sm:$0xff] }
 0x1b4   :  { %730 = vst.msk [vmem:[#allocation2 + $0x388] sm:$0xff] %vm4163_vm6, %v2791_v63  ;;  %1078 = vperm.xlu1 %2870, %v767_v1   ;;  %v686_v10 = vpop.xlane.xlu0 %685 }
 0x1b5   :  { %729 = vst.msk [vmem:[#allocation2 + $0x380] sm:$0xff] %vm4164_vm11, %v2786_v0  ;;  %1099 = vperm.xlu0 %2869, %v774_v8   ;;  %vm2792_vm7 = vcmp.lt.s32.totalorder %v686_v10, 0  ;;  %v2793_v13 = vceil.f32 %v686_v10  ;;  %v2794_v15 = vfloor.f32 %v686_v10  ;;  %v778_v8 = vld [vmem:[#allocation2 + $0x108] sm:$0xff] }
 0x1b6   :  { %v690_v18 = vpop.xlane.xlu2 %689  ;;  %v688_v4 = vpop.xlane.xlu1 %687 }
 0x1b7   :  { %vm2802_vm4 = vcmp.lt.s32.totalorder %v690_v18, 0  ;;  %v2803_v5 = vceil.f32 %v690_v18  ;;  %v2804_v6 = vfloor.f32 %v690_v18  ;;  %vm2797_vm1 = vcmp.lt.s32.totalorder %v688_v4, 0 }
 0x1b8   :  { %v2798_v11 = vceil.f32 %v688_v4  ;;  %v2799_v12 = vfloor.f32 %v688_v4  ;;  %v2795_v24 = vsel %vm2792_vm7, %v2793_v13, %v2794_v15 }
 0x1b9   :  { %v2805_v14 = vsel %vm2802_vm4, %v2803_v5, %v2804_v6  ;;  %v2796_v44 = vcvt.f32.s32 %v2795_v24  ;;  %vm4172_vm4 = vmmov %vm4162_vm0 }
 0x1ba   :  { %v2806_v16 = vcvt.f32.s32 %v2805_v14  ;;  %v2800_v54 = vsel %vm2797_vm1, %v2798_v11, %v2799_v12  ;;  %vm4173_vm1 = vmmov %vm4162_vm0  ;;  %v779_v11 = vld [vmem:[#allocation2 + $0x110] sm:$0xff] }
 0x1bb   :  { %v2801_v21 = vcvt.f32.s32 %v2800_v54  ;;  %1084 = vperm.xlu2 %2868, %v769_v20   ;;  %731 = vst.msk [vmem:[#allocation2 + $0x390] sm:$0xff] %vm4168_vm3, %v2796_v44  ;;  %vm4174_vm3 = vmmov %vm4162_vm0  ;;  %v786_v20 = vld [vmem:[#allocation2 + $0x148] sm:$0xff] }
 0x1bc   :  { %733 = vst.msk [vmem:[#allocation2 + $0x3a0] sm:$0xff] %vm4166_vm13, %v2806_v16  ;;  %1087 = vperm.xlu1 %2870, %v770_v27   ;;  %v692_v60 = vpop.xlane.xlu0 %691 }
 0x1bd   :  { %732 = vst.msk [vmem:[#allocation2 + $0x398] sm:$0xff] %vm4167_vm14, %v2801_v21  ;;  %1108 = vperm.xlu0 %2869, %v777_v59   ;;  %vm2807_vm12 = vcmp.lt.s32.totalorder %v692_v60, 0  ;;  %v2808_v30 = vceil.f32 %v692_v60  ;;  %v2809_v32 = vfloor.f32 %v692_v60 }
 0x1be   :  { %v696_v23 = vpop.xlane.xlu2 %695  ;;  %v694_v25 = vpop.xlane.xlu1 %693 }
 0x1bf   :  { %vm2817_vm8 = vcmp.lt.s32.totalorder %v696_v23, 0  ;;  %v2818_v58 = vceil.f32 %v696_v23  ;;  %v2819_v28 = vfloor.f32 %v696_v23  ;;  %vm2812_vm10 = vcmp.lt.s32.totalorder %v694_v25, 0 }
 0x1c0   :  { %v2813_v29 = vceil.f32 %v694_v25  ;;  %v2814_v17 = vfloor.f32 %v694_v25  ;;  %v2810_v41 = vsel %vm2807_vm12, %v2808_v30, %v2809_v32  ;;  %v781_v25 = vld [vmem:[#allocation2 + $0x120] sm:$0xff]  ;;  %v792_v32 = vld [vmem:[#allocation2 + $0x178] sm:$0xff] }
 0x1c1   :  { %v2820_v31 = vsel %vm2817_vm8, %v2818_v58, %v2819_v28  ;;  %v2811_v36 = vcvt.f32.s32 %v2810_v41  ;;  %vm4175_vm8 = vmmov %vm4162_vm0  ;;  %v782_v28 = vld [vmem:[#allocation2 + $0x128] sm:$0xff]  ;;  %v785_v30 = vld [vmem:[#allocation2 + $0x140] sm:$0xff] }
 0x1c2   :  { %v2821_v33 = vcvt.f32.s32 %v2820_v31  ;;  %v2815_v34 = vsel %vm2812_vm10, %v2813_v29, %v2814_v17  ;;  %vm4176_vm10 = vmmov %vm4162_vm0  ;;  %v789_v29 = vld [vmem:[#allocation2 + $0x160] sm:$0xff]  ;;  %v784_v17 = vld [vmem:[#allocation2 + $0x138] sm:$0xff] }
 0x1c3   :  { %v2816_v39 = vcvt.f32.s32 %v2815_v34  ;;  %1093 = vperm.xlu2 %2868, %v772_v38   ;;  %734 = vst.msk [vmem:[#allocation2 + $0x3a8] sm:$0xff] %vm4170_vm15, %v2811_v36  ;;  %vm4178_vm15 = vmmov %vm4173_vm1  ;;  %v787_v34 = vld [vmem:[#allocation2 + $0x150] sm:$0xff]  ;;  %v788_v38 = vld [vmem:[#allocation2 + $0x158] sm:$0xff] }
 0x1c4   :  { %736 = vst.msk [vmem:[#allocation2 + $0x3b8] sm:$0xff] %vm4162_vm0, %v2821_v33  ;;  %1096 = vperm.xlu1 %2870, %v773_v40   ;;  %v698_v9 = vpop.xlane.xlu0 %697  ;;  %v795_v41 = vld [vmem:[#allocation2 + $0x190] sm:$0xff] }
 0x1c5   :  { %735 = vst.msk [vmem:[#allocation2 + $0x3b0] sm:$0xff] %vm4169_vm2, %v2816_v39  ;;  %1117 = vperm.xlu0 %2869, %v780_v46   ;;  %vm2822_vm11 = vcmp.lt.s32.totalorder %v698_v9, 0  ;;  %v2823_v49 = vceil.f32 %v698_v9  ;;  %v2824_v22 = vfloor.f32 %v698_v9  ;;  %vm4177_vm2 = vmmov %vm4173_vm1  ;;  %v798_v46 = vld [vmem:[#allocation2 + $0x1a8] sm:$0xff] }
 0x1c6   :  { %v702_v19 = vpop.xlane.xlu2 %701  ;;  %v700_v42 = vpop.xlane.xlu1 %699 }
 0x1c7   :  { %vm2832_vm9 = vcmp.lt.s32.totalorder %v702_v19, 0  ;;  %v2833_v43 = vceil.f32 %v702_v19  ;;  %v2834_v37 = vfloor.f32 %v702_v19  ;;  %vm2827_vm6 = vcmp.lt.s32.totalorder %v700_v42, 0  ;;  %v790_v19 = vld [vmem:[#allocation2 + $0x168] sm:$0xff] }
 0x1c8   :  { %v2828_v48 = vceil.f32 %v700_v42  ;;  %v2829_v26 = vfloor.f32 %v700_v42  ;;  %v2825_v57 = vsel %vm2822_vm11, %v2823_v49, %v2824_v22  ;;  %v791_v42 = vld [vmem:[#allocation2 + $0x170] sm:$0xff]  ;;  %v801_v22 = vld [vmem:[#allocation2 + $0x1c0] sm:$0xff] }
 0x1c9   :  { %v2835_v50 = vsel %vm2832_vm9, %v2833_v43, %v2834_v37  ;;  %v2826_v61 = vcvt.f32.s32 %v2825_v57  ;;  %v804_v57 = vld [vmem:[#allocation2 + $0x1d8] sm:$0xff] }
 0x1ca   :  { %v2836_v51 = vcvt.f32.s32 %v2835_v50  ;;  %v2830_v52 = vsel %vm2827_vm6, %v2828_v48, %v2829_v26  ;;  %v793_v48 = vld [vmem:[#allocation2 + $0x180] sm:$0xff]  ;;  %v794_v26 = vld [vmem:[#allocation2 + $0x188] sm:$0xff] }
 0x1cb   :  { %v2831_v55 = vcvt.f32.s32 %v2830_v52  ;;  %1102 = vperm.xlu2 %2868, %v775_v53   ;;  %737 = vst.msk [vmem:[#allocation2 + $0x3c0] sm:$0xff] %vm4173_vm1, %v2826_v61  ;;  %v796_v52 = vld [vmem:[#allocation2 + $0x198] sm:$0xff]  ;;  %v797_v53 = vld [vmem:[#allocation2 + $0x1a0] sm:$0xff]  ;;  %v2952_v61 = vmov 1.0  }
 0x1cc   :  { %739 = vst.msk [vmem:[#allocation2 + $0x3d0] sm:$0xff] %vm4171_vm5, %v2836_v51  ;;  %1105 = vperm.xlu1 %2870, %v776_v56   ;;  %v704_v0 = vpop.xlane.xlu0 %703 }
 0x1cd   :  { %738 = vst.msk [vmem:[#allocation2 + $0x3c8] sm:$0xff] %vm4172_vm4, %v2831_v55  ;;  %1126 = vperm.xlu0 %2869, %v783_v47   ;;  %vm2837_vm14 = vcmp.lt.s32.totalorder %v704_v0, 0  ;;  %v2838_v35 = vceil.f32 %v704_v0  ;;  %v2839_v4 = vfloor.f32 %v704_v0  ;;  %v807_v0 = vld [vmem:[#allocation2 + $0x1f0] sm:$0xff] }
 0x1ce   :  { %v708_v45 = vpop.xlane.xlu2 %707  ;;  %v706_v62 = vpop.xlane.xlu1 %705 }
 0x1cf   :  { %vm2847_vm7 = vcmp.lt.s32.totalorder %v708_v45, 0  ;;  %v2848_v63 = vceil.f32 %v708_v45  ;;  %v2849_v7 = vfloor.f32 %v708_v45  ;;  %vm2842_vm13 = vcmp.lt.s32.totalorder %v706_v62, 0 }
 0x1d0   :  { %v2843_v1 = vceil.f32 %v706_v62  ;;  %v2844_v2 = vfloor.f32 %v706_v62  ;;  %v2840_v12 = vsel %vm2837_vm14, %v2838_v35, %v2839_v4  ;;  %v799_v62 = vld [vmem:[#allocation2 + $0x1b0] sm:$0xff] }
 0x1d1   :  { %v2850_v18 = vsel %vm2847_vm7, %v2848_v63, %v2849_v7  ;;  %v2841_v13 = vcvt.f32.s32 %v2840_v12  ;;  %v800_v63 = vld [vmem:[#allocation2 + $0x1b8] sm:$0xff]  ;;  %v803_v35 = vld [vmem:[#allocation2 + $0x1d0] sm:$0xff] }
 0x1d2   :  { %v2851_v5 = vcvt.f32.s32 %v2850_v18  ;;  %v2845_v6 = vsel %vm2842_vm13, %v2843_v1, %v2844_v2  ;;  %v802_v2 = vld [vmem:[#allocation2 + $0x1c8] sm:$0xff] }
 0x1d3   :  { %v2846_v10 = vcvt.f32.s32 %v2845_v6  ;;  %1111 = vperm.xlu2 %2868, %v778_v8   ;;  %740 = vst.msk [vmem:[#allocation2 + $0x3d8] sm:$0xff] %vm4176_vm10, %v2841_v13  ;;  %v805_v8 = vld [vmem:[#allocation2 + $0x1e0] sm:$0xff] }
 0x1d4   :  { %742 = vst.msk [vmem:[#allocation2 + $0x3e8] sm:$0xff] %vm4174_vm3, %v2851_v5  ;;  %1114 = vperm.xlu1 %2870, %v779_v11   ;;  %v710_v21 = vpop.xlane.xlu0 %709  ;;  %v810_v5 = vld [vmem:[#allocation2 + $0x208] sm:$0xff]  ;;  %v813_v13 = vld [vmem:[#allocation2 + $0x220] sm:$0xff] }
 0x1d5   :  { %741 = vst.msk [vmem:[#allocation2 + $0x3e0] sm:$0xff] %vm4175_vm8, %v2846_v10  ;;  %1135 = vperm.xlu0 %2869, %v786_v20   ;;  %vm2852_vm0 = vcmp.lt.s32.totalorder %v710_v21, 0  ;;  %v2853_v27 = vceil.f32 %v710_v21  ;;  %v2854_v24 = vfloor.f32 %v710_v21  ;;  %v806_v10 = vld [vmem:[#allocation2 + $0x1e8] sm:$0xff] }
 0x1d6   :  { %v712_v14 = vpop.xlane.xlu1 %711  ;;  %v3564_v15 = vpop.permute.xlu2 %1012 }
 0x1d7   :  { %vm2857_vm12 = vcmp.lt.s32.totalorder %v712_v14, 0  ;;  %v2858_v16 = vceil.f32 %v712_v14  ;;  %v2859_v54 = vfloor.f32 %v712_v14  ;;  %v2855_v58 = vsel %vm2852_vm0, %v2853_v27, %v2854_v24  ;;  %v816_v27 = vld [vmem:[#allocation2 + $0x238] sm:$0xff] }
 0x1d8   :  { %v2856_v59 = vcvt.f32.s32 %v2855_v58 }
 0x1d9   :  { %v2860_v44 = vsel %vm2857_vm12, %v2858_v16, %v2859_v54  ;;  %v808_v16 = vld [vmem:[#allocation2 + $0x1f8] sm:$0xff]  ;;  %v809_v54 = vld [vmem:[#allocation2 + $0x200] sm:$0xff] }
 0x1da   :  { %v2861_v23 = vcvt.f32.s32 %v2860_v44  ;;  %743 = vst.msk [vmem:[#allocation2 + $0x3f0] sm:$0xff] %vm4178_vm15, %v2856_v59  ;;  %vm1395_vm15 = vcmp.eq.s32.totalorder %v3564_v15, %v2978_v3  ;;  %v811_v44 = vld [vmem:[#allocation2 + $0x210] sm:$0xff]  ;;  %v822_v15 = vld [vmem:[#allocation2 + $0x268] sm:$0xff] }
 0x1db   :  { %1120 = vperm.xlu2 %2868, %v781_v25  }
 0x1dc   :  { %744 = vst.msk [vmem:[#allocation2 + $0x3f8] sm:$0xff] %vm4177_vm2, %v2861_v23  ;;  %1123 = vperm.xlu1 %2870, %v782_v28   ;;  %v812_v23 = vld [vmem:[#allocation2 + $0x218] sm:$0xff]  ;;  %v819_v28 = vld [vmem:[#allocation2 + $0x250] sm:$0xff] }
 0x1dd   :  { %1144 = vperm.xlu0 %2869, %v789_v29   ;;  %v815_v29 = vld [vmem:[#allocation2 + $0x230] sm:$0xff] }
 0x1de   :  { %v3569_v60 = vpop.permute.xlu2 %1021 }
 0x1df   :  { %vm1398_vm12 = vcmp.eq.s32.totalorder %v3569_v60, %v2978_v3  ;;  %v814_v60 = vld [vmem:[#allocation2 + $0x228] sm:$0xff] }
 0x1e3   :  { %1129 = vperm.xlu2 %2868, %v784_v17  }
 0x1e4   :  { %1132 = vperm.xlu1 %2870, %v785_v30  }
 0x1e5   :  { %1153 = vperm.xlu0 %2869, %v792_v32   ;;  %v817_v32 = vld [vmem:[#allocation2 + $0x240] sm:$0xff] }
 0x1e6   :  { %v3571_v31 = vpop.permute.xlu2 %1024 }
 0x1e7   :  { %v3573_v33 = vpop.permute.xlu0 %1015  ;;  %vm1399_vm10 = vcmp.eq.s32.totalorder %v3571_v31, %v2978_v3 }
 0x1e8   :  { %vm1396_vm2 = vcmp.eq.s32.totalorder %v3573_v33, %v2978_v3  ;;  %v818_v33 = vld [vmem:[#allocation2 + $0x248] sm:$0xff] }
 0x1eb   :  { %1138 = vperm.xlu2 %2868, %v787_v34  }
 0x1ec   :  { %1141 = vperm.xlu1 %2870, %v788_v38  }
 0x1ed   :  { %1162 = vperm.xlu0 %2869, %v795_v41   ;;  %v820_v41 = vld [vmem:[#allocation2 + $0x258] sm:$0xff] }
 0x1ee   :  { %v3575_v39 = vpop.permute.xlu1 %1018  ;;  %v3577_v40 = vpop.permute.xlu2 %1030 }
 0x1ef   :  { %v3579_v36 = vpop.permute.xlu0 %1036  ;;  %vm1401_vm3 = vcmp.eq.s32.totalorder %v3577_v40, %v2978_v3  ;;  %vm1397_vm0 = vcmp.eq.s32.totalorder %v3575_v39, %v2978_v3  ;;  %v825_v39 = vld [vmem:[#allocation2 + $0x280] sm:$0xff] }
 0x1f0   :  { %vm1403_vm13 = vcmp.eq.s32.totalorder %v3579_v36, %v2978_v3  ;;  %v821_v36 = vld [vmem:[#allocation2 + $0x260] sm:$0xff] }
 0x1f3   :  { %1147 = vperm.xlu2 %2868, %v790_v19  }
 0x1f4   :  { %1150 = vperm.xlu1 %2870, %v791_v42  }
 0x1f5   :  { %1171 = vperm.xlu0 %2869, %v798_v46   ;;  %v823_v46 = vld [vmem:[#allocation2 + $0x270] sm:$0xff] }
 0x1f6   :  { %v3581_v43 = vpop.permute.xlu1 %1027  ;;  %v1040_v37 = vpop.permute.xlu2 %1039 }
 0x1f7   :  { %v1046_v9 = vpop.permute.xlu0 %1045  ;;  %vm1404_vm7 = vcmp.eq.s32.totalorder %v1040_v37, %v2978_v3  ;;  %vm1400_vm8 = vcmp.eq.s32.totalorder %v3581_v43, %v2978_v3  ;;  %v828_v43 = vld [vmem:[#allocation2 + $0x298] sm:$0xff] }
 0x1f8   :  { %vm1406_vm4 = vcmp.eq.s32.totalorder %v1046_v9, %v2978_v3  ;;  %v824_v9 = vld [vmem:[#allocation2 + $0x278] sm:$0xff] }
 0x1fb   :  { %1156 = vperm.xlu2 %2868, %v793_v48  }
 0x1fc   :  { %1159 = vperm.xlu1 %2870, %v794_v26  }
 0x1fd   :  { %1180 = vperm.xlu0 %2869, %v801_v22   ;;  %v826_v22 = vld [vmem:[#allocation2 + $0x288] sm:$0xff] }
 0x1fe   :  { %v1034_v49 = vpop.permute.xlu1 %1033  ;;  %v1049_v50 = vpop.permute.xlu2 %1048 }
 0x1ff   :  { %v1055_v51 = vpop.permute.xlu0 %1054  ;;  %vm1407_vm5 = vcmp.eq.s32.totalorder %v1049_v50, %v2978_v3  ;;  %vm1402_vm14 = vcmp.eq.s32.totalorder %v1034_v49, %v2978_v3  ;;  %v831_v49 = vld [vmem:[#allocation2 + $0x2b0] sm:$0xff] }
 0x200   :  { %vm1409_vm6 = vcmp.eq.s32.totalorder %v1055_v51, %v2978_v3  ;;  %v827_v51 = vld [vmem:[#allocation2 + $0x290] sm:$0xff] }
 0x203   :  { %1165 = vperm.xlu2 %2868, %v796_v52  }
 0x204   :  { %1168 = vperm.xlu1 %2870, %v797_v53  }
 0x205   :  { %1189 = vperm.xlu0 %2869, %v804_v57   ;;  %v829_v57 = vld [vmem:[#allocation2 + $0x2a0] sm:$0xff] }
 0x206   :  { %v1043_v55 = vpop.permute.xlu1 %1042  ;;  %v1058_v56 = vpop.permute.xlu2 %1057 }
 0x207   :  { %vm1410_vm9 = vcmp.eq.s32.totalorder %v1058_v56, %v2978_v3  ;;  %v3586_v45 = vpop.permute.xlu0 %1063  ;;  %vm1405_vm1 = vcmp.eq.s32.totalorder %v1043_v55, %v2978_v3  ;;  %v834_v55 = vld [vmem:[#allocation2 + $0x2c8] sm:$0xff] }
 0x208   :  { %2094 = vmatpush.msk.msra.mxu0 %vm1410_vm9, %v2952_v61 }
 0x20a   :  { %2095 = vmatpush.msk.msra.mxu0 %vm1409_vm6, %v2952_v61 }
 0x20b   :  { %1174 = vperm.xlu2 %2868, %v799_v62   ;;  %v830_v62 = vld [vmem:[#allocation2 + $0x2a8] sm:$0xff] }
 0x20c   :  { %1177 = vperm.xlu1 %2870, %v800_v63  }
 0x20d   :  { %1198 = vperm.xlu0 %2869, %v807_v0  }
 0x20e   :  { %v1052_v7 = vpop.permute.xlu1 %1051  ;;  %v3589_v47 = vpop.permute.xlu2 %1066 }
 0x20f   :  { %vm1408_vm11 = vcmp.eq.s32.totalorder %v1052_v7, %v2978_v3  ;;  %v3594_v1 = vpop.permute.xlu0 %1072 }
 0x210   :  { %2096 = vmatpush.msk.msra.mxu0 %vm1408_vm11, %v2952_v61 }
 0x212   :  { %2097 = vmatpush.msk.msra.mxu0 %vm1407_vm5, %v2952_v61 }
 0x213   :  { %1183 = vperm.xlu2 %2868, %v802_v2  }
 0x214   :  { %1186 = vperm.xlu1 %2870, %v803_v35   ;;  %2098 = vmatpush.msk.msra.mxu0 %vm1406_vm4, %v2952_v61 }
 0x215   :  { %1207 = vperm.xlu0 %2869, %v810_v5   ;;  %v835_v5 = vld [vmem:[#allocation2 + $0x2d0] sm:$0xff] }
 0x216   :  { %v3600_v18 = vpop.permute.xlu1 %1060  ;;  %v3602_v4 = vpop.permute.xlu2 %1075  ;;  %2099 = vmatpush.msk.msra.mxu0 %vm1405_vm1, %v2952_v61 }
 0x217   :  { %v3609_v6 = vpop.permute.xlu0 %1081 }
 0x218   :  { %2100 = vmatpush.msk.msra.mxu0 %vm1404_vm7, %v2952_v61 }
 0x21a   :  { %2101 = vmatpush.msk.msra.mxu0 %vm1403_vm13, %v2952_v61 }
 0x21b   :  { %1192 = vperm.xlu2 %2868, %v805_v8  }
 0x21c   :  { %1195 = vperm.xlu1 %2870, %v806_v10   ;;  %2102 = vmatpush.msk.msra.mxu0 %vm1402_vm14, %v2952_v61  ;;  %vm1418_vm14 = vcmp.eq.s32.totalorder %v3609_v6, %v2978_v3  ;;  %v836_v6 = vld [vmem:[#allocation2 + $0x2d8] sm:$0xff] }
 0x21d   :  { %1216 = vperm.xlu0 %2869, %v813_v13   ;;  %v855_v13 = vld [vmem:[#allocation2 + $0x370] sm:$0xff] }
 0x21e   :  { %v3616_v11 = vpop.permute.xlu1 %1069  ;;  %v3618_v12 = vpop.permute.xlu2 %1084  ;;  %2103 = vmatpush.msk.msra.mxu0 %vm1401_vm3, %v2952_v61 }
 0x21f   :  { %v3626_v14 = vpop.permute.xlu0 %1090  ;;  %vm1419_vm13 = vcmp.eq.s32.totalorder %v3618_v12, %v2978_v3 }
 0x220   :  { %2104 = vmatpush.msk.msra.mxu0 %vm1400_vm8, %v2952_v61  ;;  %vm1421_vm1 = vcmp.eq.s32.totalorder %v3626_v14, %v2978_v3  ;;  %vm1416_vm8 = vcmp.eq.s32.totalorder %v3602_v4, %v2978_v3  ;;  %v840_v4 = vld [vmem:[#allocation2 + $0x2f8] sm:$0xff] }
 0x221   :  { %v872_v14 = vld [vmem:[#allocation2 + $0x3f8] sm:$0xff] }
 0x222   :  { %2105 = vmatpush.msk.msra.mxu0 %vm1399_vm10, %v2952_v61  ;;  %vm1415_vm10 = vcmp.eq.s32.totalorder %v3594_v1, %v2978_v3  ;;  %v832_v1 = vld [vmem:[#allocation2 + $0x2b8] sm:$0xff] }
 0x223   :  { %1201 = vperm.xlu2 %2868, %v808_v16  }
 0x224   :  { %1204 = vperm.xlu1 %2870, %v809_v54   ;;  %2106 = vmatpush.msk.msra.mxu0 %vm1398_vm12, %v2952_v61  ;;  %vm1414_vm12 = vcmp.eq.s32.totalorder %v3616_v11, %v2978_v3  ;;  %v839_v11 = vld [vmem:[#allocation2 + $0x2f0] sm:$0xff] }
 0x225   :  { %1225 = vperm.xlu0 %2869, %v816_v27   ;;  %v854_v27 = vld [vmem:[#allocation2 + $0x368] sm:$0xff] }
 0x226   :  { %v3634_v20 = vpop.permute.xlu1 %1078  ;;  %v1094_v21 = vpop.permute.xlu2 %1093  ;;  %2107 = vmatpush.msk.msra.mxu0 %vm1397_vm0, %v2952_v61  ;;  %vm1413_vm0 = vcmp.eq.s32.totalorder %v3589_v47, %v2978_v3  ;;  %v856_v47 = vld [vmem:[#allocation2 + $0x378] sm:$0xff] }
 0x227   :  { %v1100_v24 = vpop.permute.xlu0 %1099  ;;  %vm1422_vm4 = vcmp.eq.s32.totalorder %v1094_v21, %v2978_v3  ;;  %vm1417_vm3 = vcmp.eq.s32.totalorder %v3634_v20, %v2978_v3  ;;  %v838_v20 = vld [vmem:[#allocation2 + $0x2e8] sm:$0xff] }
 0x228   :  { %2108 = vmatpush.msk.msra.mxu0 %vm1396_vm2, %v2952_v61  ;;  %vm1424_vm11 = vcmp.eq.s32.totalorder %v1100_v24, %v2978_v3  ;;  %v871_v24 = vld [vmem:[#allocation2 + $0x3f0] sm:$0xff] }
 0x22a   :  { %2109 = vmatpush.msk.msra.mxu0 %vm1395_vm15, %v2952_v61  ;;  %vm1412_vm15 = vcmp.eq.s32.totalorder %v3586_v45, %v2978_v3  ;;  %v833_v45 = vld [vmem:[#allocation2 + $0x2c0] sm:$0xff] }
 0x22b   :  { %1210 = vperm.xlu2 %2868, %v811_v44  }
 0x22c   :  { %1213 = vperm.xlu1 %2870, %v812_v23  }
 0x22d   :  { %1234 = vperm.xlu0 %2869, %v819_v28   ;;  %v853_v28 = vld [vmem:[#allocation2 + $0x360] sm:$0xff] }
 0x22e   :  { %v1088_v25 = vpop.permute.xlu1 %1087  ;;  %v1103_v58 = vpop.permute.xlu2 %1102 }
 0x22f   :  { %v3643_v59 = vpop.permute.xlu0 %1108  ;;  %vm1425_vm6 = vcmp.eq.s32.totalorder %v1103_v58, %v2978_v3  ;;  %vm1420_vm7 = vcmp.eq.s32.totalorder %v1088_v25, %v2978_v3  ;;  %v837_v25 = vld [vmem:[#allocation2 + $0x2e0] sm:$0xff] }
 0x233   :  { %1219 = vperm.xlu2 %2868, %v814_v60   ;;  %v870_v60 = vld [vmem:[#allocation2 + $0x3e8] sm:$0xff] }
 0x234   :  { %1222 = vperm.xlu1 %2870, %v815_v29  }
 0x235   :  { %1243 = vperm.xlu0 %2869, %v822_v15   ;;  %v850_v15 = vld [vmem:[#allocation2 + $0x348] sm:$0xff] }
 0x236   :  { %v1097_v17 = vpop.permute.xlu1 %1096  ;;  %v3645_v30 = vpop.permute.xlu2 %1111 }
 0x237   :  { %v3647_v31 = vpop.permute.xlu0 %1117  ;;  %vm1423_vm5 = vcmp.eq.s32.totalorder %v1097_v17, %v2978_v3 }
 0x23b   :  { %1228 = vperm.xlu2 %2868, %v817_v32  }
 0x23c   :  { %1231 = vperm.xlu1 %2870, %v818_v33  }
 0x23d   :  { %1252 = vperm.xlu0 %2869, %v825_v39   ;;  %v851_v39 = vld [vmem:[#allocation2 + $0x350] sm:$0xff] }
 0x23e   :  { %v1106_v34 = vpop.permute.xlu1 %1105  ;;  %v3649_v38 = vpop.permute.xlu2 %1120 }
 0x23f   :  { %vm1426_vm9 = vcmp.eq.s32.totalorder %v1106_v34, %v2978_v3  ;;  %v3654_v40 = vpop.permute.xlu0 %1126  ;;  %v866_v34 = vld [vmem:[#allocation2 + $0x3c8] sm:$0xff] }
 0x240   :  { %2110 = vmatpush.msk.msra.mxu1 %vm1426_vm9, %v2952_v61  ;;  %vm1411_vm9 = vcmp.eq.s32.totalorder %v3600_v18, %v2978_v3 }
 0x242   :  { %2111 = vmatpush.msk.msra.mxu1 %vm1425_vm6, %v2952_v61 }
 0x243   :  { %1237 = vperm.xlu2 %2868, %v820_v41  }
 0x244   :  { %1240 = vperm.xlu1 %2870, %v821_v36   ;;  %2112 = vmatpush.msk.msra.mxu1 %vm1424_vm11, %v2952_v61 }
 0x245   :  { %1261 = vperm.xlu0 %2869, %v828_v43   ;;  %v867_v43 = vld [vmem:[#allocation2 + $0x3d0] sm:$0xff] }
 0x246   :  { %v3660_v19 = vpop.permute.xlu1 %1114  ;;  %v3662_v42 = vpop.permute.xlu2 %1129  ;;  %2113 = vmatpush.msk.msra.mxu1 %vm1423_vm5, %v2952_v61 }
 0x247   :  { %v3669_v37 = vpop.permute.xlu0 %1135 }
 0x248   :  { %2114 = vmatpush.msk.msra.mxu1 %vm1422_vm4, %v2952_v61 }
 0x24a   :  { %2115 = vmatpush.msk.msra.mxu1 %vm1421_vm1, %v2952_v61 }
 0x24b   :  { %1246 = vperm.xlu2 %2868, %v823_v46  }
 0x24c   :  { %1249 = vperm.xlu1 %2870, %v824_v9   ;;  %2116 = vmatpush.msk.msra.mxu1 %vm1420_vm7, %v2952_v61  ;;  %vm1436_vm7 = vcmp.eq.s32.totalorder %v3669_v37, %v2978_v3  ;;  %v849_v37 = vld [vmem:[#allocation2 + $0x340] sm:$0xff] }
 0x24d   :  { %1270 = vperm.xlu0 %2869, %v831_v49   ;;  %v848_v49 = vld [vmem:[#allocation2 + $0x338] sm:$0xff] }
 0x24e   :  { %v3676_v48 = vpop.permute.xlu1 %1123  ;;  %v3678_v26 = vpop.permute.xlu2 %1138  ;;  %2117 = vmatpush.msk.msra.mxu1 %vm1419_vm13, %v2952_v61 }
 0x24f   :  { %v1145_v50 = vpop.permute.xlu0 %1144  ;;  %vm1437_vm1 = vcmp.eq.s32.totalorder %v3678_v26, %v2978_v3 }
 0x250   :  { %2118 = vmatpush.msk.msra.mxu1 %vm1418_vm14, %v2952_v61  ;;  %vm1439_vm5 = vcmp.eq.s32.totalorder %v1145_v50, %v2978_v3  ;;  %vm1434_vm14 = vcmp.eq.s32.totalorder %v3662_v42, %v2978_v3  ;;  %v865_v50 = vld [vmem:[#allocation2 + $0x3c0] sm:$0xff] }
 0x252   :  { %2119 = vmatpush.msk.msra.mxu1 %vm1417_vm3, %v2952_v61  ;;  %vm1433_vm3 = vcmp.eq.s32.totalorder %v3654_v40, %v2978_v3  ;;  %v868_v40 = vld [vmem:[#allocation2 + $0x3d8] sm:$0xff] }
 0x253   :  { %1255 = vperm.xlu2 %2868, %v826_v22  }
 0x254   :  { %1258 = vperm.xlu1 %2870, %v827_v51   ;;  %2120 = vmatpush.msk.msra.mxu1 %vm1416_vm8, %v2952_v61  ;;  %vm1432_vm8 = vcmp.eq.s32.totalorder %v3676_v48, %v2978_v3  ;;  %v863_v48 = vld [vmem:[#allocation2 + $0x3b0] sm:$0xff] }
 0x255   :  { %1279 = vperm.xlu0 %2869, %v834_v55   ;;  %v864_v55 = vld [vmem:[#allocation2 + $0x3b8] sm:$0xff] }
 0x256   :  { %v1133_v52 = vpop.permute.xlu1 %1132  ;;  %v1148_v53 = vpop.permute.xlu2 %1147  ;;  %2121 = vmatpush.msk.msra.mxu1 %vm1415_vm10, %v2952_v61  ;;  %vm1431_vm10 = vcmp.eq.s32.totalorder %v3649_v38, %v2978_v3 }
 0x257   :  { %v1154_v56 = vpop.permute.xlu0 %1153  ;;  %vm1440_vm11 = vcmp.eq.s32.totalorder %v1148_v53, %v2978_v3  ;;  %vm1435_vm13 = vcmp.eq.s32.totalorder %v1133_v52, %v2978_v3  ;;  %v844_v52 = vld [vmem:[#allocation2 + $0x318] sm:$0xff] }
 0x258   :  { %2122 = vmatpush.msk.msra.mxu1 %vm1414_vm12, %v2952_v61  ;;  %vm1442_vm2 = vcmp.eq.s32.totalorder %v1154_v56, %v2978_v3  ;;  %vm1430_vm12 = vcmp.eq.s32.totalorder %v3647_v31, %v2978_v3  ;;  %v869_v31 = vld [vmem:[#allocation2 + $0x3e0] sm:$0xff]  ;;  %v846_v56 = vld [vmem:[#allocation2 + $0x328] sm:$0xff] }
 0x259   :  { %2126 = vmatpush.msk.msra.mxu2 %vm1442_vm2, %v2952_v61  ;;  %vm1428_vm2 = vcmp.eq.s32.totalorder %v3645_v30, %v2978_v3 }
 0x25a   :  { %2123 = vmatpush.msk.msra.mxu1 %vm1413_vm0, %v2952_v61  ;;  %vm1429_vm0 = vcmp.eq.s32.totalorder %v3660_v19, %v2978_v3  ;;  %v847_v19 = vld [vmem:[#allocation2 + $0x330] sm:$0xff] }
 0x25b   :  { %1264 = vperm.xlu2 %2868, %v829_v57  }
 0x25c   :  { %1267 = vperm.xlu1 %2870, %v830_v62   ;;  %2124 = vmatpush.msk.msra.mxu1 %vm1412_vm15, %v2952_v61  ;;  %vm1427_vm15 = vcmp.eq.s32.totalorder %v3643_v59, %v2978_v3  ;;  %v852_v59 = vld [vmem:[#allocation2 + $0x358] sm:$0xff] }
 0x25d   :  { %1345 = vperm.xlu0 %2869, %v856_v47  }
 0x25e   :  { %v1142_v63 = vpop.permute.xlu1 %1141  ;;  %v3706_v7 = vpop.permute.xlu2 %1156  ;;  %2125 = vmatpush.msk.msra.mxu1 %vm1411_vm9, %v2952_v61 }
 0x25f   :  { %v3709_v0 = vpop.permute.xlu0 %1162  ;;  %vm1438_vm4 = vcmp.eq.s32.totalorder %v1142_v63, %v2978_v3  ;;  %v860_v63 = vld [vmem:[#allocation2 + $0x398] sm:$0xff] }
 0x263   :  { %1273 = vperm.xlu2 %2868, %v832_v1   ;;  %v862_v1 = vld [vmem:[#allocation2 + $0x3a8] sm:$0xff] }
 0x264   :  { %1276 = vperm.xlu1 %2870, %v833_v45  }
 0x265   :  { %1297 = vperm.xlu0 %2869, %v840_v4   ;;  %v861_v4 = vld [vmem:[#allocation2 + $0x3a0] sm:$0xff] }
 0x266   :  { %v1151_v2 = vpop.permute.xlu1 %1150  ;;  %v3711_v35 = vpop.permute.xlu2 %1165 }
 0x267   :  { %vm1441_vm6 = vcmp.eq.s32.totalorder %v1151_v2, %v2978_v3  ;;  %v3716_v18 = vpop.permute.xlu0 %1171 }
 0x268   :  { %2127 = vmatpush.msk.msra.mxu2 %vm1441_vm6, %v2952_v61 }
 0x26a   :  { %2128 = vmatpush.msk.msra.mxu2 %vm1440_vm11, %v2952_v61 }
 0x26b   :  { %1282 = vperm.xlu2 %2868, %v835_v5  }
 0x26c   :  { %1285 = vperm.xlu1 %2870, %v836_v6   ;;  %2129 = vmatpush.msk.msra.mxu2 %vm1439_vm5, %v2952_v61 }
 0x26d   :  { %1294 = vperm.xlu0 %2869, %v839_v11   ;;  %v859_v11 = vld [vmem:[#allocation2 + $0x390] sm:$0xff] }
 0x26e   :  { %v3722_v8 = vpop.permute.xlu1 %1159  ;;  %v3724_v10 = vpop.permute.xlu2 %1174  ;;  %2130 = vmatpush.msk.msra.mxu2 %vm1438_vm4, %v2952_v61 }
 0x26f   :  { %v3732_v12 = vpop.permute.xlu0 %1180 }
 0x270   :  { %2131 = vmatpush.msk.msra.mxu2 %vm1437_vm1, %v2952_v61 }
 0x272   :  { %2132 = vmatpush.msk.msra.mxu2 %vm1436_vm7, %v2952_v61 }
 0x273   :  { %1342 = vperm.xlu2 %2868, %v855_v13  }
 0x274   :  { %1393 = vperm.xlu1 %2870, %v872_v14   ;;  %2133 = vmatpush.msk.msra.mxu2 %vm1435_vm13, %v2952_v61  ;;  %vm1451_vm13 = vcmp.eq.s32.totalorder %v3732_v12, %v2978_v3 }
 0x275   :  { %1291 = vperm.xlu0 %2869, %v838_v20  }
 0x276   :  { %v3739_v16 = vpop.permute.xlu1 %1168  ;;  %v3741_v54 = vpop.permute.xlu2 %1183  ;;  %2134 = vmatpush.msk.msra.mxu2 %vm1434_vm14, %v2952_v61 }
 0x277   :  { %v1190_v21 = vpop.permute.xlu0 %1189  ;;  %vm1452_vm7 = vcmp.eq.s32.totalorder %v3741_v54, %v2978_v3  ;;  %v857_v54 = vld [vmem:[#allocation2 + $0x380] sm:$0xff] }
 0x278   :  { %2135 = vmatpush.msk.msra.mxu2 %vm1433_vm3, %v2952_v61  ;;  %vm1454_vm4 = vcmp.eq.s32.totalorder %v1190_v21, %v2978_v3  ;;  %vm1449_vm3 = vcmp.eq.s32.totalorder %v3724_v10, %v2978_v3  ;;  %v842_v10 = vld [vmem:[#allocation2 + $0x308] sm:$0xff] }
 0x27a   :  { %2136 = vmatpush.msk.msra.mxu2 %vm1432_vm8, %v2952_v61  ;;  %vm1448_vm8 = vcmp.eq.s32.totalorder %v3716_v18, %v2978_v3  ;;  %v843_v18 = vld [vmem:[#allocation2 + $0x310] sm:$0xff] }
 0x27b   :  { %1339 = vperm.xlu2 %2868, %v854_v27  }
 0x27c   :  { %1390 = vperm.xlu1 %2870, %v871_v24   ;;  %2137 = vmatpush.msk.msra.mxu2 %vm1431_vm10, %v2952_v61  ;;  %vm1447_vm10 = vcmp.eq.s32.totalorder %v3739_v16, %v2978_v3  ;;  %v858_v16 = vld [vmem:[#allocation2 + $0x388] sm:$0xff] }
 0x27d   :  { %1288 = vperm.xlu0 %2869, %v837_v25  }
 0x27e   :  { %v1178_v44 = vpop.permute.xlu1 %1177  ;;  %v1193_v23 = vpop.permute.xlu2 %1192  ;;  %2138 = vmatpush.msk.msra.mxu2 %vm1430_vm12, %v2952_v61  ;;  %vm1446_vm12 = vcmp.eq.s32.totalorder %v3711_v35, %v2978_v3 }
 0x27f   :  { %v1199_v58 = vpop.permute.xlu0 %1198  ;;  %vm1455_vm5 = vcmp.eq.s32.totalorder %v1193_v23, %v2978_v3  ;;  %vm1450_vm14 = vcmp.eq.s32.totalorder %v1178_v44, %v2978_v3 }
 0x280   :  { %2139 = vmatpush.msk.msra.mxu2 %vm1429_vm0, %v2952_v61  ;;  %vm1457_vm6 = vcmp.eq.s32.totalorder %v1199_v58, %v2978_v3  ;;  %vm1445_vm0 = vcmp.eq.s32.totalorder %v3709_v0, %v2978_v3  ;;  %v845_v0 = vld [vmem:[#allocation2 + $0x320] sm:$0xff] }
 0x282   :  { %2140 = vmatpush.msk.msra.mxu2 %vm1428_vm2, %v2952_v61  ;;  %vm1444_vm2 = vcmp.eq.s32.totalorder %v3722_v8, %v2978_v3 }
 0x283   :  { %1336 = vperm.xlu2 %2868, %v853_v28  }
 0x284   :  { %1387 = vperm.xlu1 %2870, %v870_v60   ;;  %2141 = vmatpush.msk.msra.mxu2 %vm1427_vm15, %v2952_v61  ;;  %vm1443_vm15 = vcmp.eq.s32.totalorder %v3706_v7, %v2978_v3  ;;  %v841_v7 = vld [vmem:[#allocation2 + $0x300] sm:$0xff] }
 0x285   :  { %1327 = vperm.xlu0 %2869, %v850_v15  }
 0x286   :  { %v1187_v29 = vpop.permute.xlu1 %1186  ;;  %v1202_v17 = vpop.permute.xlu2 %1201 }
 0x287   :  { %vm1458_vm9 = vcmp.eq.s32.totalorder %v1202_v17, %v2978_v3  ;;  %v3768_v30 = vpop.permute.xlu0 %1207  ;;  %vm1453_vm1 = vcmp.eq.s32.totalorder %v1187_v29, %v2978_v3 }
 0x288   :  { %2142 = vmatpush.msk.msra.mxu3 %vm1458_vm9, %v2952_v61 }
 0x28a   :  { %2143 = vmatpush.msk.msra.mxu3 %vm1457_vm6, %v2952_v61 }
 0x28b   :  { %1333 = vperm.xlu2 %2868, %v852_v59  }
 0x28c   :  { %1384 = vperm.xlu1 %2870, %v869_v31  }
 0x28d   :  { %1375 = vperm.xlu0 %2869, %v866_v34  }
 0x28e   :  { %v1196_v32 = vpop.permute.xlu1 %1195  ;;  %v3771_v33 = vpop.permute.xlu2 %1210 }
 0x28f   :  { %vm1456_vm11 = vcmp.eq.s32.totalorder %v1196_v32, %v2978_v3  ;;  %v3776_v38 = vpop.permute.xlu0 %1216 }
 0x290   :  { %2144 = vmatpush.msk.msra.mxu3 %vm1456_vm11, %v2952_v61 }
 0x292   :  { %2145 = vmatpush.msk.msra.mxu3 %vm1455_vm5, %v2952_v61 }
 0x293   :  { %1330 = vperm.xlu2 %2868, %v851_v39  }
 0x294   :  { %1381 = vperm.xlu1 %2870, %v868_v40   ;;  %2146 = vmatpush.msk.msra.mxu3 %vm1454_vm4, %v2952_v61 }
 0x295   :  { %1318 = vperm.xlu0 %2869, %v847_v19  }
 0x296   :  { %v3782_v41 = vpop.permute.xlu1 %1204  ;;  %v3784_v36 = vpop.permute.xlu2 %1219  ;;  %2147 = vmatpush.msk.msra.mxu3 %vm1453_vm1, %v2952_v61 }
 0x297   :  { %v3792_v42 = vpop.permute.xlu0 %1225 }
 0x298   :  { %2148 = vmatpush.msk.msra.mxu3 %vm1452_vm7, %v2952_v61 }
 0x29a   :  { %2149 = vmatpush.msk.msra.mxu3 %vm1451_vm13, %v2952_v61 }
 0x29b   :  { %1378 = vperm.xlu2 %2868, %v867_v43  }
 0x29c   :  { %1324 = vperm.xlu1 %2870, %v849_v37   ;;  %2150 = vmatpush.msk.msra.mxu3 %vm1450_vm14, %v2952_v61  ;;  %vm1466_vm14 = vcmp.eq.s32.totalorder %v3792_v42, %v2978_v3  ;;  %v1005_v37 = vld [vmem:[#allocation6 + $0x10] sm:$0xff] }
 0x29d   :  { %1366 = vperm.xlu0 %2869, %v863_v48   ;;  %1836 = vmatmul.f32.vlgmr.msra.gmra.mxu2 %v1005_v37  ;;  %v1006_v48 = vld [vmem:[#allocation6 + $0x18] sm:$0xff] }
 0x29e   :  { %v3799_v46 = vpop.permute.xlu1 %1213  ;;  %v3801_v9 = vpop.permute.xlu2 %1228  ;;  %2151 = vmatpush.msk.msra.mxu3 %vm1449_vm3, %v2952_v61 }
 0x29f   :  { %v3809_v26 = vpop.permute.xlu0 %1234  ;;  %vm1467_vm13 = vcmp.eq.s32.totalorder %v3801_v9, %v2978_v3  ;;  %v1003_v9 = vld [vmem:[#allocation6] sm:$0xff] }
 0x2a0   :  { %2152 = vmatpush.msk.msra.mxu3 %vm1448_vm8, %v2952_v61  ;;  %vm1469_vm1 = vcmp.eq.s32.totalorder %v3809_v26, %v2978_v3  ;;  %vm1464_vm8 = vcmp.eq.s32.totalorder %v3784_v36, %v2978_v3  ;;  %1796 = vmatmul.f32.vlgmr.msra.gmra.mxu0 %v1003_v9 }
 0x2a2   :  { %2153 = vmatpush.msk.msra.mxu3 %vm1447_vm10, %v2952_v61 }
 0x2a3   :  { %1321 = vperm.xlu2 %2868, %v848_v49   ;;  %v1004_v49 = vld [vmem:[#allocation6 + $0x8] sm:$0xff] }
 0x2a4   :  { %1372 = vperm.xlu1 %2870, %v865_v50   ;;  %2154 = vmatpush.msk.msra.mxu3 %vm1446_vm12, %v2952_v61  ;;  %vm1463_vm12 = vcmp.eq.s32.totalorder %v3776_v38, %v2978_v3 }
 0x2a5   :  { %1309 = vperm.xlu0 %2869, %v844_v52   ;;  %1816 = vmatmul.f32.vlgmr.msra.gmra.mxu1 %v1004_v49  ;;  %v1008_v52 = vld [vmem:[#allocation6 + $0x28] sm:$0xff] }
 0x2a6   :  { %v3817_v22 = vpop.permute.xlu1 %1222  ;;  %v1238_v51 = vpop.permute.xlu2 %1237  ;;  %2155 = vmatpush.msk.msra.mxu3 %vm1445_vm0, %v2952_v61  ;;  %vm1462_vm0 = vcmp.eq.s32.totalorder %v3799_v46, %v2978_v3 }
 0x2a7   :  { %v1244_v53 = vpop.permute.xlu0 %1243  ;;  %vm1470_vm4 = vcmp.eq.s32.totalorder %v1238_v51, %v2978_v3  ;;  %vm1465_vm3 = vcmp.eq.s32.totalorder %v3817_v22, %v2978_v3  ;;  %v1007_v51 = vld [vmem:[#allocation6 + $0x20] sm:$0xff] }
 0x2a8   :  { %2156 = vmatpush.msk.msra.mxu3 %vm1444_vm2, %v2952_v61  ;;  %vm1472_vm11 = vcmp.eq.s32.totalorder %v1244_v53, %v2978_v3 }
 0x2aa   :  { %2157 = vmatpush.msk.msra.mxu3 %vm1443_vm15, %v2952_v61  ;;  %vm1461_vm15 = vcmp.eq.s32.totalorder %v3771_v33, %v2978_v3 }
 0x2ab   :  { %1369 = vperm.xlu2 %2868, %v864_v55   ;;  %1856 = vmatmul.f32.vlgmr.msra.gmra.mxu3 %v1006_v48 }
 0x2ac   :  { %1315 = vperm.xlu1 %2870, %v846_v56  }
 0x2ad   :  { %1357 = vperm.xlu0 %2869, %v860_v63  }
 0x2ae   :  { %v1232_v57 = vpop.permute.xlu1 %1231  ;;  %v1247_v62 = vpop.permute.xlu2 %1246 }
 0x2af   :  { %v3826_v47 = vpop.permute.xlu0 %1252  ;;  %vm1473_vm6 = vcmp.eq.s32.totalorder %v1247_v62, %v2978_v3  ;;  %vm1468_vm7 = vcmp.eq.s32.totalorder %v1232_v57, %v2978_v3 }
 0x2b3   :  { %1312 = vperm.xlu2 %2868, %v845_v0  }
 0x2b4   :  { %1363 = vperm.xlu1 %2870, %v862_v1  }
 0x2b5   :  { %1300 = vperm.xlu0 %2869, %v841_v7  }
 0x2b6   :  { %v1241_v45 = vpop.permute.xlu1 %1240  ;;  %v3828_v2 = vpop.permute.xlu2 %1255 }
 0x2b7   :  { %v3830_v35 = vpop.permute.xlu0 %1261  ;;  %vm1471_vm5 = vcmp.eq.s32.totalorder %v1241_v45, %v2978_v3 }
 0x2bb   :  { %1360 = vperm.xlu2 %2868, %v861_v4  }
 0x2bc   :  { %1306 = vperm.xlu1 %2870, %v843_v18  }
 0x2be   :  { %v1250_v5 = vpop.permute.xlu1 %1249  ;;  %v3832_v6 = vpop.permute.xlu2 %1264 }
 0x2bf   :  { %vm1474_vm9 = vcmp.eq.s32.totalorder %v1250_v5, %v2978_v3  ;;  %v3837_v8 = vpop.permute.xlu0 %1270 }
 0x2c0   :  { %2158 = vmatpush.msk.msrb.mxu0 %vm1474_vm9, %v2952_v61  ;;  %vm1460_vm9 = vcmp.eq.s32.totalorder %v3768_v30, %v2978_v3 }
 0x2c2   :  { %2159 = vmatpush.msk.msrb.mxu0 %vm1473_vm6, %v2952_v61 }
 0x2c3   :  { %1303 = vperm.xlu2 %2868, %v842_v10  }
 0x2c4   :  { %1354 = vperm.xlu1 %2870, %v859_v11   ;;  %2160 = vmatpush.msk.msrb.mxu0 %vm1472_vm11, %v2952_v61  ;;  %vm1459_vm11 = vcmp.eq.s32.totalorder %v3782_v41, %v2978_v3 }
 0x2c6   :  { %v3843_v12 = vpop.permute.xlu1 %1258  ;;  %v3845_v13 = vpop.permute.xlu2 %1273  ;;  %2161 = vmatpush.msk.msrb.mxu0 %vm1471_vm5, %v2952_v61 }
 0x2c7   :  { %v3852_v14 = vpop.permute.xlu0 %1279 }
 0x2c8   :  { %2162 = vmatpush.msk.msrb.mxu0 %vm1470_vm4, %v2952_v61 }
 0x2ca   :  { %2163 = vmatpush.msk.msrb.mxu0 %vm1469_vm1, %v2952_v61 }
 0x2cb   :  { %1351 = vperm.xlu2 %2868, %v858_v16  }
 0x2cc   :  { %1348 = vperm.xlu1 %2870, %v857_v54   ;;  %2164 = vmatpush.msk.msrb.mxu0 %vm1468_vm7, %v2952_v61 }
 0x2ce   :  { %v3859_v20 = vpop.permute.xlu1 %1267  ;;  %v1283_v21 = vpop.permute.xlu2 %1282  ;;  %2165 = vmatpush.msk.msrb.mxu0 %vm1467_vm13, %v2952_v61 }
 0x2cf   :  { %v1346_v27 = vpop.permute.xlu0 %1345 }
 0x2d0   :  { %2166 = vmatpush.msk.msrb.mxu0 %vm1466_vm14, %v2952_v61  ;;  %vm1506_vm10 = vcmp.eq.s32.totalorder %v1346_v27, %v2978_v3 }
 0x2d1   :  { %2190 = vmatpush.msk.msrb.mxu2 %vm1506_vm10, %v2952_v61 }
 0x2d2   :  { %2167 = vmatpush.msk.msrb.mxu0 %vm1465_vm3, %v2952_v61 }
 0x2d4   :  { %2168 = vmatpush.msk.msrb.mxu0 %vm1464_vm8, %v2952_v61 }
 0x2d6   :  { %v1277_v24 = vpop.permute.xlu1 %1276  ;;  %v1343_v44 = vpop.permute.xlu2 %1342  ;;  %2169 = vmatpush.msk.msrb.mxu0 %vm1463_vm12, %v2952_v61  ;;  %vm1485_vm12 = vcmp.eq.s32.totalorder %v1283_v21, %v2978_v3 }
 0x2d7   :  { %vm1505_vm2 = vcmp.eq.s32.totalorder %v1343_v44, %v2978_v3  ;;  %v1298_v23 = vpop.permute.xlu0 %1297 }
 0x2d8   :  { %2170 = vmatpush.msk.msrb.mxu0 %vm1462_vm0, %v2952_v61  ;;  %2191 = vmatpush.msk.msrb.mxu2 %vm1505_vm2, %v2952_v61  ;;  %vm1490_vm6 = vcmp.eq.s32.totalorder %v1298_v23, %v2978_v3 }
 0x2d9   :  { %2174 = vmatpush.msk.msrb.mxu1 %vm1490_vm6, %v2952_v61 }
 0x2da   :  { %2171 = vmatpush.msk.msrb.mxu0 %vm1461_vm15, %v2952_v61  ;;  %vm1484_vm15 = vcmp.eq.s32.totalorder %v3852_v14, %v2978_v3 }
 0x2dc   :  { %2172 = vmatpush.msk.msrb.mxu0 %vm1460_vm9, %v2952_v61  ;;  %vm1483_vm9 = vcmp.eq.s32.totalorder %v1277_v24, %v2978_v3 }
 0x2de   :  { %v1286_v25 = vpop.permute.xlu1 %1285  ;;  %v1340_v58 = vpop.permute.xlu2 %1339  ;;  %2173 = vmatpush.msk.msrb.mxu0 %vm1459_vm11, %v2952_v61  ;;  %vm1482_vm11 = vcmp.eq.s32.totalorder %v3845_v13, %v2978_v3 }
 0x2df   :  { %vm1504_vm5 = vcmp.eq.s32.totalorder %v1340_v58, %v2978_v3  ;;  %v1295_v28 = vpop.permute.xlu0 %1294  ;;  %vm1486_vm10 = vcmp.eq.s32.totalorder %v1286_v25, %v2978_v3  ;;  %1876 = vmatmul.f32.vlgmr.msrb.gmra.mxu0 %v1007_v51 }
 0x2e0   :  { %2192 = vmatpush.msk.msrb.mxu2 %vm1504_vm5, %v2952_v61  ;;  %vm1489_vm4 = vcmp.eq.s32.totalorder %v1295_v28, %v2978_v3  ;;  %vm1481_vm5 = vcmp.eq.s32.totalorder %v3837_v8, %v2978_v3 }
 0x2e1   :  { %2175 = vmatpush.msk.msrb.mxu1 %vm1489_vm4, %v2952_v61 }
 0x2e6   :  { %v1394_v60 = vpop.permute.xlu1 %1393  ;;  %v1337_v29 = vpop.permute.xlu2 %1336 }
 0x2e7   :  { %vm1522_vm1 = vcmp.eq.s32.totalorder %v1394_v60, %v2978_v3  ;;  %vm1503_vm7 = vcmp.eq.s32.totalorder %v1337_v29, %v2978_v3  ;;  %v1292_v17 = vpop.permute.xlu0 %1291 }
 0x2e8   :  { %2193 = vmatpush.msk.msrb.mxu2 %vm1503_vm7, %v2952_v61  ;;  %2206 = vmatpush.msk.msrb.mxu3 %vm1522_vm1, %v2952_v61  ;;  %vm1488_vm13 = vcmp.eq.s32.totalorder %v1292_v17, %v2978_v3  ;;  %vm1480_vm1 = vcmp.eq.s32.totalorder %v3859_v20, %v2978_v3  ;;  %vm1479_vm7 = vcmp.eq.s32.totalorder %v3832_v6, %v2978_v3 }
 0x2e9   :  { %2176 = vmatpush.msk.msrb.mxu1 %vm1488_vm13, %v2952_v61  ;;  %vm1478_vm13 = vcmp.eq.s32.totalorder %v3830_v35, %v2978_v3 }
 0x2ee   :  { %v1334_v15 = vpop.permute.xlu2 %1333  ;;  %v1391_v30 = vpop.permute.xlu1 %1390 }
 0x2ef   :  { %vm1502_vm14 = vcmp.eq.s32.totalorder %v1334_v15, %v2978_v3  ;;  %vm1521_vm3 = vcmp.eq.s32.totalorder %v1391_v30, %v2978_v3  ;;  %v1289_v59 = vpop.permute.xlu0 %1288 }
 0x2f0   :  { %2194 = vmatpush.msk.msrb.mxu2 %vm1502_vm14, %v2952_v61  ;;  %2207 = vmatpush.msk.msrb.mxu3 %vm1521_vm3, %v2952_v61  ;;  %vm1487_vm8 = vcmp.eq.s32.totalorder %v1289_v59, %v2978_v3  ;;  %vm1477_vm14 = vcmp.eq.s32.totalorder %v3843_v12, %v2978_v3 }
 0x2f1   :  { %2177 = vmatpush.msk.msrb.mxu1 %vm1487_vm8, %v2952_v61  ;;  %vm1476_vm8 = vcmp.eq.s32.totalorder %v3828_v2, %v2978_v3  ;;  %v1010_v2 = vld [vmem:[#allocation6 + $0x38] sm:$0xff] }
 0x2f3   :  { %2178 = vmatpush.msk.msrb.mxu1 %vm1486_vm10, %v2952_v61 }
 0x2f5   :  { %2179 = vmatpush.msk.msrb.mxu1 %vm1485_vm12, %v2952_v61  ;;  %vm1475_vm12 = vcmp.eq.s32.totalorder %v3826_v47, %v2978_v3  ;;  %v1009_v47 = vld [vmem:[#allocation6 + $0x30] sm:$0xff] }
 0x2f6   :  { %v1331_v31 = vpop.permute.xlu2 %1330  ;;  %v1388_v32 = vpop.permute.xlu1 %1387 }
 0x2f7   :  { %vm1501_vm0 = vcmp.eq.s32.totalorder %v1331_v31, %v2978_v3  ;;  %vm1520_vm2 = vcmp.eq.s32.totalorder %v1388_v32, %v2978_v3  ;;  %2180 = vmatpush.msk.msrb.mxu1 %vm1484_vm15, %v2952_v61  ;;  %v1328_v33 = vpop.permute.xlu0 %1327 }
 0x2f8   :  { %2195 = vmatpush.msk.msrb.mxu2 %vm1501_vm0, %v2952_v61  ;;  %2208 = vmatpush.msk.msrb.mxu3 %vm1520_vm2, %v2952_v61  ;;  %vm1500_vm6 = vcmp.eq.s32.totalorder %v1328_v33, %v2978_v3 }
 0x2f9   :  { %2181 = vmatpush.msk.msrb.mxu1 %vm1483_vm9, %v2952_v61 }
 0x2fa   :  { %2196 = vmatpush.msk.msrb.mxu2 %vm1500_vm6, %v2952_v61 }
 0x2fb   :  { %2182 = vmatpush.msk.msrb.mxu1 %vm1482_vm11, %v2952_v61 }
 0x2fd   :  { %2183 = vmatpush.msk.msrb.mxu1 %vm1481_vm5, %v2952_v61 }
 0x2fe   :  { %v1379_v34 = vpop.permute.xlu2 %1378  ;;  %v1385_v38 = vpop.permute.xlu1 %1384 }
 0x2ff   :  { %vm1519_vm4 = vcmp.eq.s32.totalorder %v1385_v38, %v2978_v3  ;;  %2184 = vmatpush.msk.msrb.mxu1 %vm1480_vm1, %v2952_v61  ;;  %v1376_v39 = vpop.permute.xlu0 %1375  ;;  %vm1517_vm10 = vcmp.eq.s32.totalorder %v1379_v34, %v2978_v3 }
 0x300   :  { %2209 = vmatpush.msk.msrb.mxu3 %vm1519_vm4, %v2952_v61  ;;  %vm1516_vm0 = vcmp.eq.s32.totalorder %v1376_v39, %v2978_v3 }
 0x301   :  { %2185 = vmatpush.msk.msrb.mxu1 %vm1479_vm7, %v2952_v61 }
 0x303   :  { %2186 = vmatpush.msk.msrb.mxu1 %vm1478_vm13, %v2952_v61 }
 0x305   :  { %2187 = vmatpush.msk.msrb.mxu1 %vm1477_vm14, %v2952_v61 }
 0x306   :  { %v1322_v40 = vpop.permute.xlu2 %1321  ;;  %v1382_v41 = vpop.permute.xlu1 %1381 }
 0x307   :  { %vm1518_vm3 = vcmp.eq.s32.totalorder %v1382_v41, %v2978_v3  ;;  %2188 = vmatpush.msk.msrb.mxu1 %vm1476_vm8, %v2952_v61  ;;  %v1319_v36 = vpop.permute.xlu0 %1318  ;;  %vm1498_vm15 = vcmp.eq.s32.totalorder %v1322_v40, %v2978_v3 }
 0x308   :  { %2210 = vmatpush.msk.msrb.mxu3 %vm1518_vm3, %v2952_v61  ;;  %vm1497_vm9 = vcmp.eq.s32.totalorder %v1319_v36, %v2978_v3 }
 0x309   :  { %2189 = vmatpush.msk.msrb.mxu1 %vm1475_vm12, %v2952_v61 }
 0x30a   :  { %2211 = vmatpush.msk.msrb.mxu3 %vm1517_vm10, %v2952_v61  ;;  %1896 = vmatmul.f32.vlgmr.msrb.gmra.mxu1 %v1008_v52 }
 0x30c   :  { %2212 = vmatpush.msk.msrb.mxu3 %vm1516_vm0, %v2952_v61 }
 0x30e   :  { %v1370_v19 = vpop.permute.xlu2 %1369  ;;  %v1325_v42 = vpop.permute.xlu1 %1324 }
 0x30f   :  { %vm1499_vm2 = vcmp.eq.s32.totalorder %v1325_v42, %v2978_v3  ;;  %v1367_v43 = vpop.permute.xlu0 %1366  ;;  %vm1514_vm11 = vcmp.eq.s32.totalorder %v1370_v19, %v2978_v3 }
 0x310   :  { %2197 = vmatpush.msk.msrb.mxu2 %vm1499_vm2, %v2952_v61  ;;  %vm1513_vm5 = vcmp.eq.s32.totalorder %v1367_v43, %v2978_v3 }
 0x312   :  { %2198 = vmatpush.msk.msrb.mxu2 %vm1498_vm15, %v2952_v61 }
 0x314   :  { %2199 = vmatpush.msk.msrb.mxu2 %vm1497_vm9, %v2952_v61 }
 0x316   :  { %v1373_v46 = vpop.permute.xlu1 %1372  ;;  %v1313_v26 = vpop.permute.xlu2 %1312 }
 0x317   :  { %vm1515_vm6 = vcmp.eq.s32.totalorder %v1373_v46, %v2978_v3  ;;  %v1310_v50 = vpop.permute.xlu0 %1309  ;;  %vm1495_vm1 = vcmp.eq.s32.totalorder %v1313_v26, %v2978_v3 }
 0x318   :  { %2213 = vmatpush.msk.msrb.mxu3 %vm1515_vm6, %v2952_v61  ;;  %vm1494_vm7 = vcmp.eq.s32.totalorder %v1310_v50, %v2978_v3 }
 0x31a   :  { %2214 = vmatpush.msk.msrb.mxu3 %vm1514_vm11, %v2952_v61 }
 0x31c   :  { %2215 = vmatpush.msk.msrb.mxu3 %vm1513_vm5, %v2952_v61 }
 0x31d   :  { %v1797_v35 = vpop.f32.mrf.mxu0 }
 0x31e   :  { %v1316_v22 = vpop.permute.xlu1 %1315  ;;  %v1361_v53 = vpop.permute.xlu2 %1360 }
 0x31f   :  { %vm1496_vm4 = vcmp.eq.s32.totalorder %v1316_v22, %v2978_v3  ;;  %v1358_v55 = vpop.permute.xlu0 %1357  ;;  %vm1511_vm14 = vcmp.eq.s32.totalorder %v1361_v53, %v2978_v3 }
 0x320   :  { %2200 = vmatpush.msk.msrb.mxu2 %vm1496_vm4, %v2952_v61  ;;  %vm1510_vm3 = vcmp.eq.s32.totalorder %v1358_v55, %v2978_v3  ;;  %v1837_v18 = vpop.f32.mrf.mxu2 }
 0x322   :  { %2201 = vmatpush.msk.msrb.mxu2 %vm1495_vm1, %v2952_v61  ;;  %v1817_v7 = vpop.f32.mrf.mxu1 }
 0x323   :  { %v1818_v4 = vadd.f32 %v1817_v7, %v1797_v35 }
 0x324   :  { %2202 = vmatpush.msk.msrb.mxu2 %vm1494_vm7, %v2952_v61 }
 0x325   :  { %v1838_v5 = vadd.f32 %v1837_v18, %v1818_v4 }
 0x326   :  { %v1364_v56 = vpop.permute.xlu1 %1363  ;;  %v1304_v57 = vpop.permute.xlu2 %1303 }
 0x327   :  { %vm1512_vm13 = vcmp.eq.s32.totalorder %v1364_v56, %v2978_v3  ;;  %v1301_v63 = vpop.permute.xlu0 %1300  ;;  %vm1492_vm10 = vcmp.eq.s32.totalorder %v1304_v57, %v2978_v3 }
 0x328   :  { %2216 = vmatpush.msk.msrb.mxu3 %vm1512_vm13, %v2952_v61  ;;  %vm1491_vm12 = vcmp.eq.s32.totalorder %v1301_v63, %v2978_v3 }
 0x32a   :  { %2217 = vmatpush.msk.msrb.mxu3 %vm1511_vm14, %v2952_v61 }
 0x32c   :  { %2218 = vmatpush.msk.msrb.mxu3 %vm1510_vm3, %v2952_v61 }
 0x32e   :  { %v1307_v62 = vpop.permute.xlu1 %1306  ;;  %v1352_v0 = vpop.permute.xlu2 %1351 }
 0x32f   :  { %vm1493_vm8 = vcmp.eq.s32.totalorder %v1307_v62, %v2978_v3  ;;  %vm1508_vm2 = vcmp.eq.s32.totalorder %v1352_v0, %v2978_v3  ;;  %v1857_v6 = vpop.f32.mrf.mxu3 }
 0x330   :  { %2203 = vmatpush.msk.msrb.mxu2 %vm1493_vm8, %v2952_v61  ;;  %v1858_v8 = vadd.f32 %v1857_v6, %v1838_v5 }
 0x332   :  { %2204 = vmatpush.msk.msrb.mxu2 %vm1492_vm10, %v2952_v61 }
 0x334   :  { %2205 = vmatpush.msk.msrb.mxu2 %vm1491_vm12, %v2952_v61 }
 0x335   :  { %1916 = vmatmul.f32.vlgmr.msrb.gmra.mxu2 %v1009_v47 }
 0x336   :  { %v1355_v1 = vpop.permute.xlu1 %1354 }
 0x337   :  { %vm1509_vm0 = vcmp.eq.s32.totalorder %v1355_v1, %v2978_v3 }
 0x338   :  { %2219 = vmatpush.msk.msrb.mxu3 %vm1509_vm0, %v2952_v61 }
 0x33a   :  { %2220 = vmatpush.msk.msrb.mxu3 %vm1508_vm2, %v2952_v61 }
 0x33e   :  { %v1349_v45 = vpop.permute.xlu1 %1348 }
 0x33f   :  { %vm1507_vm15 = vcmp.eq.s32.totalorder %v1349_v45, %v2978_v3 }
 0x340   :  { %2221 = vmatpush.msk.msrb.mxu3 %vm1507_vm15, %v2952_v61 }
 0x341   :  { %1936 = vmatmul.f32.vlgmr.msrb.gmra.mxu3 %v1010_v2 }
 0x35c   :  { %v1877_v10 = vpop.f32.mrf.mxu0 }
 0x35d   :  { %v1878_v11 = vadd.f32 %v1877_v10, %v1858_v8 }
 0x387   :  { %v1897_v12 = vpop.f32.mrf.mxu1 }
 0x388   :  { %v1898_v13 = vadd.f32 %v1897_v12, %v1878_v11 }
 0x3b8   :  { %v1917_v14 = vpop.f32.mrf.mxu2 }
 0x3b9   :  { %v1918_v16 = vadd.f32 %v1917_v14, %v1898_v13 }
 0x3c4   :  { %v1937_v54 = vpop.f32.mrf.mxu3 }
 0x3c5   :  { %v1938_v20 = vadd.f32 %v1937_v54, %v1918_v16 }
 0x3c7   :  { %v1946_v3 = vmul.f32 0.35355338, %v1938_v20 }
 0x3c9   :  { %1947 = vst [vmem:[#allocation8] sm:$0xff] %v1946_v3 }
 0x3ca   :  { %1958 = dma.vmem_to_hbm [thread:$0]  %s1954_s1, 128, %s1956_s21, [#allocation5]  }
 0x3cb   :  { %2947 = dma.done.wait [#allocation5], 128  }
 0x3cc   :  { %2948 = vsyncadd [#allocation5], 4294967168 }
 0x3cd   :  { %1963 = vsyncpa [#allocation4], 1 }
 0x3ce   :  { %1964 = vsyncpa [#allocation7], 1 }
 0x3cf   :  { %1965 = vsyncpa [#allocation5], 1 }

</bundles_post_ra>
